<compile_context>
chip_gen: v7x
topology: tpu7x:2x2x1
jax: 0.10.0
libtpu: 0.0.40
codegen_flags: <defaults>
</compile_context>

<pallas_src>
import functools

import jax
import jax.numpy as jnp
from jax import lax
from jax.experimental import pallas as pl
from jax.experimental.pallas import tpu as pltpu


_LN_EPS = 1e-5          # torch.nn.LayerNorm default
_Q_TILE = 512           # row-tile cap (512x128 f32 tile = 256 KiB)


# ------------------------------ in-kernel math ------------------------------ #

def _erf_poly(x):
    # Abramowitz & Stegun 7.1.26 (|err| < 1.5e-7); only exp/mul/add + an EUP reciprocal.
    p = 0.3275911
    a1, a2, a3, a4, a5 = (0.254829592, -0.284496736, 1.421413741,
                          -1.453152027, 1.061405429)
    ax = jnp.abs(x)
    den = 1.0 + p * ax
    t = pl.reciprocal(den, approx=True)
    t = t * (2.0 - den * t)                       # one Newton step -> full f32 accuracy
    poly = ((((a5 * t + a4) * t + a3) * t + a2) * t + a1) * t
    y = 1.0 - poly * jnp.exp(-(ax * ax))
    return jnp.where(x >= 0.0, y, -y)


def _gelu_exact(x):
    # torch.nn.GELU() default (erf formulation).
    return 0.5 * x * (1.0 + _erf_poly(x * 0.7071067811865476))


def _layer_norm(x, gamma, beta):
    mu = jnp.mean(x, axis=-1, keepdims=True)
    c = x - mu
    var = jnp.mean(c * c, axis=-1, keepdims=True)
    return c * lax.rsqrt(var + _LN_EPS) * gamma + beta


def _attention_core(xqn, k, v, wq, wout, bout, *, heads, dim_head, scale):
    """Multi-head softmax(Q K^T) V with the output projection folded per head.

    xqn: (tq, D) normalized queries;  k, v: (Nkv, inner);  wq: (D, inner);
    wout: (inner, D);  bout: (1, D).  Returns (tq, D) f32.
    """
    # Fold the softmax scale into q: tq*inner multiplies instead of tq*Nkv.
    q = jnp.dot(xqn, wq, preferred_element_type=jnp.float32) * scale
    tq = xqn.shape[0]
    d_model = wout.shape[1]
    y = jnp.zeros((tq, d_model), jnp.float32)
    for h in range(heads):                        # static unroll; heads is small
        sl = slice(h * dim_head, (h + 1) * dim_head)
        qh, kh, vh = q[:, sl], k[:, sl], v[:, sl]
        # NT contraction on the MXU -- no materialized transpose of k.
        dots = lax.dot_general(qh, kh, dimension_numbers=(((1,), (1,)), ((), ())),
                               preferred_element_type=jnp.float32)     # (tq, Nkv)
        m = jnp.max(dots, axis=-1, keepdims=True)
        e = jnp.exp(dots - m)
        denom = jnp.sum(e, axis=-1, keepdims=True)
        oh = jnp.dot(e, vh, preferred_element_type=jnp.float32)        # (tq, dim_head)
        # Normalize once on the (tq, dim_head) head output, not the (tq, Nkv) weights.
        inv = pl.reciprocal(denom, approx=True)
        inv = inv * (2.0 - denom * inv)
        # Per-head accumulation of the output projection (avoids lane-shuffle concat).
        y = y + jnp.dot(oh * inv, wout[sl, :], preferred_element_type=jnp.float32)
    return y + bout


# -------------------------------- kernels ----------------------------------- #

def _self_attn_kernel(g_ref, b_ref, xq_ref, xkv_ref, wq_ref, wk_ref, wv_ref,
                      wo_ref, bo_ref, o_ref, k_sc, v_sc, *, heads, dim_head, scale):
    """Fused Residual(PreNorm(Attention)) for one (stream, batch, q-tile)."""
    gamma = g_ref[0].astype(jnp.float32)          # (1, D)
    beta = b_ref[0].astype(jnp.float32)

    # Hoisted KV work: LN + K/V projection once per (stream, batch), cached in scratch
    # across the q-tile ("arbitrary") grid axis.
    @pl.when(pl.program_id(2) == 0)
    def _():
        xkv = xkv_ref[0, 0].astype(jnp.float32)
        xkvn = _layer_norm(xkv, gamma, beta)
        k_sc[...] = jnp.dot(xkvn, wk_ref[0], preferred_element_type=jnp.float32)
        v_sc[...] = jnp.dot(xkvn, wv_ref[0], preferred_element_type=jnp.float32)

    xq = xq_ref[0, 0].astype(jnp.float32)         # (tq, D) residual base
    xqn = _layer_norm(xq, gamma, beta)
    y = _attention_core(xqn, k_sc[...], v_sc[...], wq_ref[0], wo_ref[0], bo_ref[0],
                        heads=heads, dim_head=dim_head, scale=scale)
    o_ref[0, 0] = (xq + y).astype(o_ref.dtype)


def _cross_ffn_kernel(gm_ref, bm_ref, xq_ref, xkv_ref, wq_ref, wk_ref, wv_ref,
                      wo_ref, bo_ref, gf_ref, bf_ref, w1_ref, b1_ref, w2_ref, b2_ref,
                      o_ref, k_sc, v_sc, *, heads, dim_head, scale):
    """Fused Residual(PreNorm(MS_Attention)) + Residual(PreNorm(FeedForward))."""
    gm = gm_ref[0].astype(jnp.float32)
    bm = bm_ref[0].astype(jnp.float32)

    @pl.when(pl.program_id(2) == 0)
    def _():
        xkv = xkv_ref[0, 0].astype(jnp.float32)   # opposite stream, pre-cross values
        xkvn = _layer_norm(xkv, gm, bm)           # PreNorm shares the stream's LN params
        k_sc[...] = jnp.dot(xkvn, wk_ref[0], preferred_element_type=jnp.float32)
        v_sc[...] = jnp.dot(xkvn, wv_ref[0], preferred_element_type=jnp.float32)

    xq = xq_ref[0, 0].astype(jnp.float32)
    xqn = _layer_norm(xq, gm, bm)
    y = xq + _attention_core(xqn, k_sc[...], v_sc[...], wq_ref[0], wo_ref[0], bo_ref[0],
                             heads=heads, dim_head=dim_head, scale=scale)

    # Feed-forward on the cross output -- stays resident in VMEM (no HBM round trip).
    gf = gf_ref[0].astype(jnp.float32)
    bf = bf_ref[0].astype(jnp.float32)
    yn = _layer_norm(y, gf, bf)
    h = jnp.dot(yn, w1_ref[0], preferred_element_type=jnp.float32) + b1_ref[0]
    h = _gelu_exact(h)
    out = y + jnp.dot(h, w2_ref[0], preferred_element_type=jnp.float32) + b2_ref[0]
    o_ref[0, 0] = out.astype(o_ref.dtype)


# ----------------------------- pallas wrappers ------------------------------ #

@functools.lru_cache(maxsize=None)
def _vmem_limit_bytes():
    # Derive the scoped-VMEM budget per chip (v5e/v6e: 128 MiB, v7x: 64 MiB physical).
    phys = 64 * 1024 * 1024
    try:
        info = pltpu.get_tpu_info()
        phys = int(getattr(info, "vmem_capacity_bytes", phys))
    except Exception:
        pass
    return min((phys * 3) // 4, 96 * 1024 * 1024)


def _compiler_params():
    return pltpu.CompilerParams(
        # (stream, batch) parallel -> >=2*B work items for 2 TensorCores; q-tile axis must
        # be "arbitrary" so the cached K/V scratch is valid across q tiles.
        dimension_semantics=("parallel", "parallel", "arbitrary"),
        vmem_limit_bytes=_vmem_limit_bytes(),
    )


def _row_tile(n, cap=_Q_TILE):
    """Largest 8-aligned divisor of n that is <= cap (whole sequence if n <= cap)."""
    if n <= cap:
        return n
    for t in range(cap, 7, -1):
        if n % t == 0 and t % 8 == 0:
            return t
    # TODO(synk): pad/mask ragged sequence lengths instead of a whole-sequence tile.
    return n


def _stream_spec(arr):
    """BlockSpec for a per-stream weight: block = (1, full...), index = (stream, 0...)."""
    zeros = (0,) * (arr.ndim - 1)
    return pl.BlockSpec((1,) + arr.shape[1:], lambda s, b, t: (s,) + zeros)


def _self_attn_block(x, p, *, heads, dim_head):
    """x[s] + Attention(LN(x[s])) for both streams in one call.  x: (2, B, N, D)."""
    S, B, N, D = x.shape
    inner = heads * dim_head
    scale = float(D) ** -0.5        # module uses dim**-0.5 (NOT dim_head**-0.5)
    tq = _row_tile(N)
    kernel = functools.partial(_self_attn_kernel, heads=heads, dim_head=dim_head,
                               scale=scale)
    return pl.pallas_call(
        kernel,
        out_shape=jax.ShapeDtypeStruct(x.shape, x.dtype),
        grid=(S, B, N // tq),
        in_specs=[
            _stream_spec(p["ln_g"]), _stream_spec(p["ln_b"]),
            pl.BlockSpec((1, 1, tq, D), lambda s, b, t: (s, b, t, 0)),   # x_q tile
            pl.BlockSpec((1, 1, N, D), lambda s, b, t: (s, b, 0, 0)),    # x_kv full seq
            _stream_spec(p["w_q"]), _stream_spec(p["w_k"]), _stream_spec(p["w_v"]),
            _stream_spec(p["w_out"]), _stream_spec(p["b_out"]),
        ],
        out_specs=pl.BlockSpec((1, 1, tq, D), lambda s, b, t: (s, b, t, 0)),
        scratch_shapes=[pltpu.VMEM((N, inner), jnp.float32),
                        pltpu.VMEM((N, inner), jnp.float32)],
        # In-place residual update: safe here because each (stream,batch)'s KV block is
        # fetched before any of that (stream,batch)'s output rows are written back.
        input_output_aliases={2: 0},
        compiler_params=_compiler_params(),
    )(p["ln_g"], p["ln_b"], x, x,
      p["w_q"], p["w_k"], p["w_v"], p["w_out"], p["b_out"])


def _cross_ffn_block(x, pm, pf, *, heads, dim_head):
    """Fused cross-attention + FFN residual blocks for both streams.  x: (2, B, N, D)."""
    S, B, N, D = x.shape
    inner = heads * dim_head
    scale = float(D) ** -0.5
    tq = _row_tile(N)
    kernel = functools.partial(_cross_ffn_kernel, heads=heads, dim_head=dim_head,
                               scale=scale)
    # NOTE: no input_output_aliases here -- the KV input of stream s is stream 1-s and
    # must observe the pre-cross values, so the output needs its own buffer.
    return pl.pallas_call(
        kernel,
        out_shape=jax.ShapeDtypeStruct(x.shape, x.dtype),
        grid=(S, B, N // tq),
        in_specs=[
            _stream_spec(pm["ln_g"]), _stream_spec(pm["ln_b"]),
            pl.BlockSpec((1, 1, tq, D), lambda s, b, t: (s, b, t, 0)),       # queries
            pl.BlockSpec((1, 1, N, D), lambda s, b, t: (1 - s, b, 0, 0)),    # opposite stream
            _stream_spec(pm["w_q"]), _stream_spec(pm["w_k"]), _stream_spec(pm["w_v"]),
            _stream_spec(pm["w_out"]), _stream_spec(pm["b_out"]),
            _stream_spec(pf["ln_g"]), _stream_spec(pf["ln_b"]),
            _stream_spec(pf["w1"]), _stream_spec(pf["b1"]),
            _stream_spec(pf["w2"]), _stream_spec(pf["b2"]),
        ],
        out_specs=pl.BlockSpec((1, 1, tq, D), lambda s, b, t: (s, b, t, 0)),
        scratch_shapes=[pltpu.VMEM((N, inner), jnp.float32),
                        pltpu.VMEM((N, inner), jnp.float32)],
        compiler_params=_compiler_params(),
    )(pm["ln_g"], pm["ln_b"], x, x,
      pm["w_q"], pm["w_k"], pm["w_v"], pm["w_out"], pm["b_out"],
      pf["ln_g"], pf["ln_b"], pf["w1"], pf["b1"], pf["w2"], pf["b2"])


def dual_decoder_forward(x_A, x_B, params, *, heads, dim_head):
    """Pallas forward equivalent to Dual_decoder.forward(x_A, x_B, mask=None)."""
    x = jnp.stack([x_A, x_B], axis=0)        # (2, B, N, D): both streams in one buffer
    for layer in params["layers"]:
        x = _self_attn_block(x, layer["attn"], heads=heads, dim_head=dim_head)
        x = _cross_ffn_block(x, layer["ms_attn"], layer["ffn"],
                             heads=heads, dim_head=dim_head)
    return x[0], x[1]


# ------------------------------ pure-JAX reference -------------------------- #

def _layer_norm_ref(x, g, b):
    mu = jnp.mean(x, axis=-1, keepdims=True)
    var = jnp.mean(jnp.square(x - mu), axis=-1, keepdims=True)
    return (x - mu) / jnp.sqrt(var + _LN_EPS) * g + b


def _mha_ref(x_q, x_kv, p, s, *, heads, dim_head):
    b, nq, d = x_q.shape
    inner = heads * dim_head
    scale = float(d) ** -0.5
    q = x_q @ p["w_q"][s]
    k = x_kv @ p["w_k"][s]
    v = x_kv @ p["w_v"][s]

    def split_heads(t):
        return t.reshape(b, t.shape[1], heads, dim_head).transpose(0, 2, 1, 3)

    q, k, v = split_heads(q), split_heads(k), split_heads(v)
    dots = jnp.einsum("bhid,bhjd->bhij", q, k) * scale
    attn = jax.nn.softmax(dots, axis=-1)
    out = jnp.einsum("bhij,bhjd->bhid", attn, v)
    out = out.transpose(0, 2, 1, 3).reshape(b, nq, inner)
    return out @ p["w_out"][s] + p["b_out"][s]


def _ffn_ref(x, p, s):
    h = x @ p["w1"][s] + p["b1"][s]
    h = jax.nn.gelu(h, approximate=False)     # torch.nn.GELU default (erf)
    return h @ p["w2"][s] + p["b2"][s]


def dual_decoder_reference(x_A, x_B, params, *, heads, dim_head):
    kw = dict(heads=heads, dim_head=dim_head)
    for layer in params["layers"]:
        pa, pm, pf = layer["attn"], layer["ms_attn"], layer["ffn"]
        # self-attention
        xan = _layer_norm_ref(x_A, pa["ln_g"][0], pa["ln_b"][0])
        x_A = x_A + _mha_ref(xan, xan, pa, 0, **kw)
        xbn = _layer_norm_ref(x_B, pa["ln_g"][1], pa["ln_b"][1])
        x_B = x_B + _mha_ref(xbn, xbn, pa, 1, **kw)
        # cross attention (B uses the pre-cross x_A)
        xA_cross = x_A + _mha_ref(_layer_norm_ref(x_A, pm["ln_g"][0], pm["ln_b"][0]),
                                  _layer_norm_ref(x_B, pm["ln_g"][0], pm["ln_b"][0]),
                                  pm, 0, **kw)
        x_B = x_B + _mha_ref(_layer_norm_ref(x_B, pm["ln_g"][1], pm["ln_b"][1]),
                             _layer_norm_ref(x_A, pm["ln_g"][1], pm["ln_b"][1]),
                             pm, 1, **kw)
        # feed-forward
        x_A = xA_cross + _ffn_ref(
            _layer_norm_ref(xA_cross, pf["ln_g"][0], pf["ln_b"][0]), pf, 0)
        x_B = x_B + _ffn_ref(
            _layer_norm_ref(x_B, pf["ln_g"][1], pf["ln_b"][1]), pf, 1)
    return x_A, x_B


# --------------------------------- params ----------------------------------- #

def init_params(key, *, dim, depth, heads, dim_head, mlp_dim):
    """Per-layer params, with the two streams (A/B) stacked along a leading axis."""
    inner = heads * dim_head

    def linear_w(k, fan_in, fan_out):
        # Weights stored pre-transposed: (in, out) == torch weight.T
        return (fan_in ** -0.5) * jax.random.normal(k, (fan_in, fan_out), jnp.float32)

    def stream_params(k):
        ks = jax.random.split(k, 20)
        attn = dict(   # Attention: to_qkv weight pre-split into q / k / v column thirds
            ln_g=1.0 + 0.05 * jax.random.normal(ks[0], (1, dim), jnp.float32),
            ln_b=0.05 * jax.random.normal(ks[1], (1, dim), jnp.float32),
            w_q=linear_w(ks[2], dim, inner),
            w_k=linear_w(ks[3], dim, inner),
            w_v=linear_w(ks[4], dim, inner),
            w_out=linear_w(ks[5], inner, dim),
            b_out=0.05 * jax.random.normal(ks[6], (1, dim), jnp.float32),
        )
        ms_attn = dict(  # MS_Attention: to_q and to_kv (kv pre-split into k / v halves)
            ln_g=1.0 + 0.05 * jax.random.normal(ks[7], (1, dim), jnp.float32),
            ln_b=0.05 * jax.random.normal(ks[8], (1, dim), jnp.float32),
            w_q=linear_w(ks[9], dim, inner),
            w_k=linear_w(ks[10], dim, inner),
            w_v=linear_w(ks[11], dim, inner),
            w_out=linear_w(ks[12], inner, dim),
            b_out=0.05 * jax.random.normal(ks[13], (1, dim), jnp.float32),
        )
        ffn = dict(
            ln_g=1.0 + 0.05 * jax.random.normal(ks[14], (1, dim), jnp.float32),
            ln_b=0.05 * jax.random.normal(ks[15], (1, dim), jnp.float32),
            w1=linear_w(ks[16], dim, mlp_dim),
            b1=0.05 * jax.random.normal(ks[17], (1, mlp_dim), jnp.float32),
            w2=linear_w(ks[18], mlp_dim, dim),
            b2=0.05 * jax.random.normal(ks[19], (1, dim), jnp.float32),
        )
        return dict(attn=attn, ms_attn=ms_attn, ffn=ffn)

    layers = []
    for _ in range(depth):
        key, ka, kb = jax.random.split(key, 3)
        pa, pb = stream_params(ka), stream_params(kb)
        layers.append(jax.tree_util.tree_map(lambda a, b: jnp.stack([a, b], axis=0),
                                             pa, pb))
    return dict(layers=layers)


# ---------------------------------- main ------------------------------------ #

if __name__ == "__main__":
    # Small shapes; dim / inner chosen lane-dense (multiples of 128).
    B, N = 2, 8
    DIM, HEADS, DIM_HEAD, MLP_DIM, DEPTH = 128, 2, 64, 256, 2

    root = jax.random.PRNGKey(0)
    kxa, kxb, kp = jax.random.split(root, 3)
    x_A = jax.random.normal(kxa, (B, N, DIM), dtype=jnp.float32)
    x_B = jax.random.normal(kxb, (B, N, DIM), dtype=jnp.float32)
    params = init_params(kp, dim=DIM, depth=DEPTH, heads=HEADS,
                         dim_head=DIM_HEAD, mlp_dim=MLP_DIM)

    fwd = jax.jit(functools.partial(dual_decoder_forward,
                                    heads=HEADS, dim_head=DIM_HEAD))
    y_A, y_B = fwd(x_A, x_B, params)
    y_A, y_B = jax.block_until_ready((y_A, y_B))

    r_A, r_B = dual_decoder_reference(x_A, x_B, params,
                                      heads=HEADS, dim_head=DIM_HEAD)

    assert y_A.shape == (B, N, DIM) and y_B.shape == (B, N, DIM)
    # Tolerance budget: MXU f32 precision + approx-reciprocal/erf-polynomial refinements.
    err_A = float(jnp.max(jnp.abs(y_A - r_A)))
    err_B = float(jnp.max(jnp.abs(y_B - r_B)))
    assert jnp.allclose(y_A, r_A, atol=1e-3, rtol=1e-3), f"x_A mismatch, max err {err_A}"
    assert jnp.allclose(y_B, r_B, atol=1e-3, rtol=1e-3), f"x_B mismatch, max err {err_B}"

    print("KERNEL_OK")
</pallas_src>

<mosaic_0001>
module attributes {stable_mosaic.version = 11 : i64} {
  func.func @_self_attn_kernel(%arg0: i32, %arg1: i32, %arg2: i32, %arg3: memref<1x1x128xf32, #tpu.memory_space<vmem>>, %arg4: memref<1x1x128xf32, #tpu.memory_space<vmem>>, %arg5: memref<1x1x8x128xf32, #tpu.memory_space<vmem>>, %arg6: memref<1x1x8x128xf32, #tpu.memory_space<vmem>>, %arg7: memref<1x128x128xf32, #tpu.memory_space<vmem>>, %arg8: memref<1x128x128xf32, #tpu.memory_space<vmem>>, %arg9: memref<1x128x128xf32, #tpu.memory_space<vmem>>, %arg10: memref<1x128x128xf32, #tpu.memory_space<vmem>>, %arg11: memref<1x1x128xf32, #tpu.memory_space<vmem>>, %arg12: memref<1x1x8x128xf32, #tpu.memory_space<vmem>>, %arg13: memref<8x128xf32, #tpu.memory_space<vmem>>, %arg14: memref<8x128xf32, #tpu.memory_space<vmem>>) attributes {dimension_semantics = [#tpu.dimension_semantics<parallel>, #tpu.dimension_semantics<parallel>, #tpu.dimension_semantics<arbitrary>], iteration_bounds = array<i64: 2, 2, 1>, scalar_prefetch = 0 : i64, scratch_operands = 2 : i64, tpu.core_type = #tpu.core_type<tc>, window_params = [{transform_indices = @transform_0, window_bounds = array<i64: 1, 1, 128>}, {transform_indices = @transform_1, window_bounds = array<i64: 1, 1, 128>}, {transform_indices = @transform_2, window_bounds = array<i64: 1, 1, 8, 128>}, {transform_indices = @transform_3, window_bounds = array<i64: 1, 1, 8, 128>}, {transform_indices = @transform_4, window_bounds = array<i64: 1, 128, 128>}, {transform_indices = @transform_5, window_bounds = array<i64: 1, 128, 128>}, {transform_indices = @transform_6, window_bounds = array<i64: 1, 128, 128>}, {transform_indices = @transform_7, window_bounds = array<i64: 1, 128, 128>}, {transform_indices = @transform_8, window_bounds = array<i64: 1, 1, 128>}, {transform_indices = @transform_9, window_bounds = array<i64: 1, 1, 8, 128>}]} {
    %c0 = arith.constant 0 : index
    %c0_0 = arith.constant 0 : index
    %c0_1 = arith.constant 0 : index
    %0 = vector.load %arg3[%c0, %c0_0, %c0_1] : memref<1x1x128xf32, #tpu.memory_space<vmem>>, vector<1x1x128xf32>
    %1 = vector.shape_cast %0 : vector<1x1x128xf32> to vector<1x128xf32>
    %c0_2 = arith.constant 0 : index
    %c0_3 = arith.constant 0 : index
    %c0_4 = arith.constant 0 : index
    %2 = vector.load %arg4[%c0_2, %c0_3, %c0_4] : memref<1x1x128xf32, #tpu.memory_space<vmem>>, vector<1x1x128xf32>
    %3 = vector.shape_cast %2 : vector<1x1x128xf32> to vector<1x128xf32>
    %c0_i32 = arith.constant 0 : i32
    %4 = arith.cmpi eq, %arg2, %c0_i32 : i32
    %5 = arith.extui %4 : i1 to i32
    %c0_i32_5 = arith.constant 0 : i32
    %6 = arith.cmpi ne, %5, %c0_i32_5 : i32
    scf.if %6 {
      %c0_46 = arith.constant 0 : index
      %c0_47 = arith.constant 0 : index
      %c0_48 = arith.constant 0 : index
      %c0_49 = arith.constant 0 : index
      %91 = vector.load %arg6[%c0_46, %c0_47, %c0_48, %c0_49] : memref<1x1x8x128xf32, #tpu.memory_space<vmem>>, vector<1x1x8x128xf32>
      %92 = vector.shape_cast %91 : vector<1x1x8x128xf32> to vector<8x128xf32>
      %cst_50 = arith.constant dense<0.000000e+00> : vector<8xf32>
      %93 = vector.multi_reduction <add>, %92, %cst_50 [1] : vector<8x128xf32> to vector<8xf32>
      %94 = vector.shape_cast %93 : vector<8xf32> to vector<8x1xf32>
      %cst_51 = arith.constant 1.280000e+02 : f32
      %95 = vector.broadcast %cst_51 : f32 to vector<8x1xf32>
      %96 = arith.divf %94, %95 : vector<8x1xf32>
      %97 = vector.broadcast %96 : vector<8x1xf32> to vector<8x128xf32>
      %98 = arith.subf %92, %97 : vector<8x128xf32>
      %99 = arith.mulf %98, %98 : vector<8x128xf32>
      %cst_52 = arith.constant dense<0.000000e+00> : vector<8xf32>
      %100 = vector.multi_reduction <add>, %99, %cst_52 [1] : vector<8x128xf32> to vector<8xf32>
      %101 = vector.shape_cast %100 : vector<8xf32> to vector<8x1xf32>
      %cst_53 = arith.constant 1.280000e+02 : f32
      %102 = vector.broadcast %cst_53 : f32 to vector<8x1xf32>
      %103 = arith.divf %101, %102 : vector<8x1xf32>
      %cst_54 = arith.constant 9.99999974E-6 : f32
      %104 = vector.broadcast %cst_54 : f32 to vector<8x1xf32>
      %105 = arith.addf %103, %104 : vector<8x1xf32>
      %106 = math.rsqrt %105 : vector<8x1xf32>
      %107 = vector.broadcast %106 : vector<8x1xf32> to vector<8x128xf32>
      %108 = arith.mulf %98, %107 : vector<8x128xf32>
      %109 = vector.broadcast %1 : vector<1x128xf32> to vector<8x128xf32>
      %110 = arith.mulf %108, %109 : vector<8x128xf32>
      %111 = vector.broadcast %3 : vector<1x128xf32> to vector<8x128xf32>
      %112 = arith.addf %110, %111 : vector<8x128xf32>
      %c0_55 = arith.constant 0 : index
      %c0_56 = arith.constant 0 : index
      %c0_57 = arith.constant 0 : index
      %113 = vector.load %arg8[%c0_55, %c0_56, %c0_57] : memref<1x128x128xf32, #tpu.memory_space<vmem>>, vector<1x128x128xf32>
      %114 = vector.shape_cast %113 : vector<1x128x128xf32> to vector<128x128xf32>
      %cst_58 = arith.constant dense<0.000000e+00> : vector<8x128xf32>
      %115 = tpu.matmul %112, %114, %cst_58 {dimension_numbers = #tpu.dot_dimension_numbers<[1], [0], [0], [1], [0, 0, 1, 1], [], []>} : vector<8x128xf32>, vector<128x128xf32>, vector<8x128xf32> -> vector<8x128xf32>
      %c0_59 = arith.constant 0 : index
      %c0_60 = arith.constant 0 : index
      %116 = vector.load %arg13[%c0_59, %c0_60] : memref<8x128xf32, #tpu.memory_space<vmem>>, vector<8x128xf32>
      tpu.vector_store %arg13[%c0_59, %c0_60], %115 {strides = array<i32>} : memref<8x128xf32, #tpu.memory_space<vmem>>, vector<8x128xf32>,
      %c0_61 = arith.constant 0 : index
      %c0_62 = arith.constant 0 : index
      %c0_63 = arith.constant 0 : index
      %117 = vector.load %arg9[%c0_61, %c0_62, %c0_63] : memref<1x128x128xf32, #tpu.memory_space<vmem>>, vector<1x128x128xf32>
      %118 = vector.shape_cast %117 : vector<1x128x128xf32> to vector<128x128xf32>
      %cst_64 = arith.constant dense<0.000000e+00> : vector<8x128xf32>
      %119 = tpu.matmul %112, %118, %cst_64 {dimension_numbers = #tpu.dot_dimension_numbers<[1], [0], [0], [1], [0, 0, 1, 1], [], []>} : vector<8x128xf32>, vector<128x128xf32>, vector<8x128xf32> -> vector<8x128xf32>
      %c0_65 = arith.constant 0 : index
      %c0_66 = arith.constant 0 : index
      %120 = vector.load %arg14[%c0_65, %c0_66] : memref<8x128xf32, #tpu.memory_space<vmem>>, vector<8x128xf32>
      tpu.vector_store %arg14[%c0_65, %c0_66], %119 {strides = array<i32>} : memref<8x128xf32, #tpu.memory_space<vmem>>, vector<8x128xf32>,
    } else {
    }
    %c0_6 = arith.constant 0 : index
    %c0_7 = arith.constant 0 : index
    %c0_8 = arith.constant 0 : index
    %c0_9 = arith.constant 0 : index
    %7 = vector.load %arg5[%c0_6, %c0_7, %c0_8, %c0_9] : memref<1x1x8x128xf32, #tpu.memory_space<vmem>>, vector<1x1x8x128xf32>
    %8 = vector.shape_cast %7 : vector<1x1x8x128xf32> to vector<8x128xf32>
    %cst = arith.constant dense<0.000000e+00> : vector<8xf32>
    %9 = vector.multi_reduction <add>, %8, %cst [1] : vector<8x128xf32> to vector<8xf32>
    %10 = vector.shape_cast %9 : vector<8xf32> to vector<8x1xf32>
    %cst_10 = arith.constant 1.280000e+02 : f32
    %11 = vector.broadcast %cst_10 : f32 to vector<8x1xf32>
    %12 = arith.divf %10, %11 : vector<8x1xf32>
    %13 = vector.broadcast %12 : vector<8x1xf32> to vector<8x128xf32>
    %14 = arith.subf %8, %13 : vector<8x128xf32>
    %15 = arith.mulf %14, %14 : vector<8x128xf32>
    %cst_11 = arith.constant dense<0.000000e+00> : vector<8xf32>
    %16 = vector.multi_reduction <add>, %15, %cst_11 [1] : vector<8x128xf32> to vector<8xf32>
    %17 = vector.shape_cast %16 : vector<8xf32> to vector<8x1xf32>
    %cst_12 = arith.constant 1.280000e+02 : f32
    %18 = vector.broadcast %cst_12 : f32 to vector<8x1xf32>
    %19 = arith.divf %17, %18 : vector<8x1xf32>
    %cst_13 = arith.constant 9.99999974E-6 : f32
    %20 = vector.broadcast %cst_13 : f32 to vector<8x1xf32>
    %21 = arith.addf %19, %20 : vector<8x1xf32>
    %22 = math.rsqrt %21 : vector<8x1xf32>
    %23 = vector.broadcast %22 : vector<8x1xf32> to vector<8x128xf32>
    %24 = arith.mulf %14, %23 : vector<8x128xf32>
    %25 = vector.broadcast %1 : vector<1x128xf32> to vector<8x128xf32>
    %26 = arith.mulf %24, %25 : vector<8x128xf32>
    %27 = vector.broadcast %3 : vector<1x128xf32> to vector<8x128xf32>
    %28 = arith.addf %26, %27 : vector<8x128xf32>
    %c0_14 = arith.constant 0 : index
    %c0_15 = arith.constant 0 : index
    %29 = vector.load %arg13[%c0_14, %c0_15] : memref<8x128xf32, #tpu.memory_space<vmem>>, vector<8x128xf32>
    %c0_16 = arith.constant 0 : index
    %c0_17 = arith.constant 0 : index
    %30 = vector.load %arg14[%c0_16, %c0_17] : memref<8x128xf32, #tpu.memory_space<vmem>>, vector<8x128xf32>
    %c0_18 = arith.constant 0 : index
    %c0_19 = arith.constant 0 : index
    %c0_20 = arith.constant 0 : index
    %31 = vector.load %arg7[%c0_18, %c0_19, %c0_20] : memref<1x128x128xf32, #tpu.memory_space<vmem>>, vector<1x128x128xf32>
    %32 = vector.shape_cast %31 : vector<1x128x128xf32> to vector<128x128xf32>
    %c0_21 = arith.constant 0 : index
    %c0_22 = arith.constant 0 : index
    %c0_23 = arith.constant 0 : index
    %33 = vector.load %arg10[%c0_21, %c0_22, %c0_23] : memref<1x128x128xf32, #tpu.memory_space<vmem>>, vector<1x128x128xf32>
    %34 = vector.shape_cast %33 : vector<1x128x128xf32> to vector<128x128xf32>
    %c0_24 = arith.constant 0 : index
    %c0_25 = arith.constant 0 : index
    %c0_26 = arith.constant 0 : index
    %35 = vector.load %arg11[%c0_24, %c0_25, %c0_26] : memref<1x1x128xf32, #tpu.memory_space<vmem>>, vector<1x1x128xf32>
    %36 = vector.shape_cast %35 : vector<1x1x128xf32> to vector<1x128xf32>
    %cst_27 = arith.constant dense<0.000000e+00> : vector<8x128xf32>
    %37 = tpu.matmul %28, %32, %cst_27 {dimension_numbers = #tpu.dot_dimension_numbers<[1], [0], [0], [1], [0, 0, 1, 1], [], []>} : vector<8x128xf32>, vector<128x128xf32>, vector<8x128xf32> -> vector<8x128xf32>
    %cst_28 = arith.constant 0.0883883461 : f32
    %38 = vector.broadcast %cst_28 : f32 to vector<8x128xf32>
    %39 = arith.mulf %37, %38 : vector<8x128xf32>
    %cst_29 = arith.constant 0.000000e+00 : f32
    %40 = vector.broadcast %cst_29 : f32 to vector<8x128xf32>
    %41 = vector.extract_strided_slice %39 {offsets = [0, 0], sizes = [8, 64], strides = [1, 1]} : vector<8x128xf32> to vector<8x64xf32>
    %42 = vector.extract_strided_slice %29 {offsets = [0, 0], sizes = [8, 64], strides = [1, 1]} : vector<8x128xf32> to vector<8x64xf32>
    %43 = vector.extract_strided_slice %30 {offsets = [0, 0], sizes = [8, 64], strides = [1, 1]} : vector<8x128xf32> to vector<8x64xf32>
    %cst_30 = arith.constant dense<0.000000e+00> : vector<8x8xf32>
    %44 = tpu.matmul %41, %42, %cst_30 {dimension_numbers = #tpu.dot_dimension_numbers<[1], [1], [0], [0], [0, 0, 1, 0], [], []>} : vector<8x64xf32>, vector<8x64xf32>, vector<8x8xf32> -> vector<8x8xf32>
    %cst_31 = arith.constant dense<0xFF800000> : vector<8xf32>
    %45 = vector.multi_reduction <maximumf>, %44, %cst_31 [1] : vector<8x8xf32> to vector<8xf32>
    %46 = vector.shape_cast %45 : vector<8xf32> to vector<8x1xf32>
    %47 = vector.broadcast %46 : vector<8x1xf32> to vector<8x8xf32>
    %48 = arith.subf %44, %47 : vector<8x8xf32>
    %49 = math.exp %48 : vector<8x8xf32>
    %cst_32 = arith.constant dense<0.000000e+00> : vector<8xf32>
    %50 = vector.multi_reduction <add>, %49, %cst_32 [1] : vector<8x8xf32> to vector<8xf32>
    %51 = vector.shape_cast %50 : vector<8xf32> to vector<8x1xf32>
    %cst_33 = arith.constant dense<0.000000e+00> : vector<8x64xf32>
    %52 = tpu.matmul %49, %43, %cst_33 {dimension_numbers = #tpu.dot_dimension_numbers<[1], [0], [0], [1], [0, 0, 1, 1], [], []>} : vector<8x8xf32>, vector<8x64xf32>, vector<8x64xf32> -> vector<8x64xf32>
    %53 = tpu.reciprocal %51 {approx = true} : vector<8x1xf32> -> vector<8x1xf32>
    %54 = arith.mulf %51, %53 : vector<8x1xf32>
    %cst_34 = arith.constant 2.000000e+00 : f32
    %55 = vector.broadcast %cst_34 : f32 to vector<8x1xf32>
    %56 = arith.subf %55, %54 : vector<8x1xf32>
    %57 = arith.mulf %53, %56 : vector<8x1xf32>
    %58 = vector.broadcast %57 : vector<8x1xf32> to vector<8x64xf32>
    %59 = arith.mulf %52, %58 : vector<8x64xf32>
    %60 = vector.extract_strided_slice %34 {offsets = [0, 0], sizes = [64, 128], strides = [1, 1]} : vector<128x128xf32> to vector<64x128xf32>
    %cst_35 = arith.constant dense<0.000000e+00> : vector<8x128xf32>
    %61 = tpu.matmul %59, %60, %cst_35 {dimension_numbers = #tpu.dot_dimension_numbers<[1], [0], [0], [1], [0, 0, 1, 1], [], []>} : vector<8x64xf32>, vector<64x128xf32>, vector<8x128xf32> -> vector<8x128xf32>
    %62 = arith.addf %40, %61 : vector<8x128xf32>
    %63 = vector.extract_strided_slice %39 {offsets = [0, 64], sizes = [8, 64], strides = [1, 1]} : vector<8x128xf32> to vector<8x64xf32>
    %64 = vector.extract_strided_slice %29 {offsets = [0, 64], sizes = [8, 64], strides = [1, 1]} : vector<8x128xf32> to vector<8x64xf32>
    %65 = vector.extract_strided_slice %30 {offsets = [0, 64], sizes = [8, 64], strides = [1, 1]} : vector<8x128xf32> to vector<8x64xf32>
    %cst_36 = arith.constant dense<0.000000e+00> : vector<8x8xf32>
    %66 = tpu.matmul %63, %64, %cst_36 {dimension_numbers = #tpu.dot_dimension_numbers<[1], [1], [0], [0], [0, 0, 1, 0], [], []>} : vector<8x64xf32>, vector<8x64xf32>, vector<8x8xf32> -> vector<8x8xf32>
    %cst_37 = arith.constant dense<0xFF800000> : vector<8xf32>
    %67 = vector.multi_reduction <maximumf>, %66, %cst_37 [1] : vector<8x8xf32> to vector<8xf32>
    %68 = vector.shape_cast %67 : vector<8xf32> to vector<8x1xf32>
    %69 = vector.broadcast %68 : vector<8x1xf32> to vector<8x8xf32>
    %70 = arith.subf %66, %69 : vector<8x8xf32>
    %71 = math.exp %70 : vector<8x8xf32>
    %cst_38 = arith.constant dense<0.000000e+00> : vector<8xf32>
    %72 = vector.multi_reduction <add>, %71, %cst_38 [1] : vector<8x8xf32> to vector<8xf32>
    %73 = vector.shape_cast %72 : vector<8xf32> to vector<8x1xf32>
    %cst_39 = arith.constant dense<0.000000e+00> : vector<8x64xf32>
    %74 = tpu.matmul %71, %65, %cst_39 {dimension_numbers = #tpu.dot_dimension_numbers<[1], [0], [0], [1], [0, 0, 1, 1], [], []>} : vector<8x8xf32>, vector<8x64xf32>, vector<8x64xf32> -> vector<8x64xf32>
    %75 = tpu.reciprocal %73 {approx = true} : vector<8x1xf32> -> vector<8x1xf32>
    %76 = arith.mulf %73, %75 : vector<8x1xf32>
    %cst_40 = arith.constant 2.000000e+00 : f32
    %77 = vector.broadcast %cst_40 : f32 to vector<8x1xf32>
    %78 = arith.subf %77, %76 : vector<8x1xf32>
    %79 = arith.mulf %75, %78 : vector<8x1xf32>
    %80 = vector.broadcast %79 : vector<8x1xf32> to vector<8x64xf32>
    %81 = arith.mulf %74, %80 : vector<8x64xf32>
    %82 = vector.extract_strided_slice %34 {offsets = [64, 0], sizes = [64, 128], strides = [1, 1]} : vector<128x128xf32> to vector<64x128xf32>
    %cst_41 = arith.constant dense<0.000000e+00> : vector<8x128xf32>
    %83 = tpu.matmul %81, %82, %cst_41 {dimension_numbers = #tpu.dot_dimension_numbers<[1], [0], [0], [1], [0, 0, 1, 1], [], []>} : vector<8x64xf32>, vector<64x128xf32>, vector<8x128xf32> -> vector<8x128xf32>
    %84 = arith.addf %62, %83 : vector<8x128xf32>
    %85 = vector.broadcast %36 : vector<1x128xf32> to vector<8x128xf32>
    %86 = arith.addf %84, %85 : vector<8x128xf32>
    %87 = arith.addf %8, %86 : vector<8x128xf32>
    %c0_42 = arith.constant 0 : index
    %c0_43 = arith.constant 0 : index
    %c0_44 = arith.constant 0 : index
    %c0_45 = arith.constant 0 : index
    %88 = vector.load %arg12[%c0_42, %c0_43, %c0_44, %c0_45] : memref<1x1x8x128xf32, #tpu.memory_space<vmem>>, vector<1x1x8x128xf32>
    %89 = vector.shape_cast %88 : vector<1x1x8x128xf32> to vector<8x128xf32>
    %90 = vector.shape_cast %87 : vector<8x128xf32> to vector<1x1x8x128xf32>
    tpu.vector_store %arg12[%c0_42, %c0_43, %c0_44, %c0_45], %90 {strides = array<i32>} : memref<1x1x8x128xf32, #tpu.memory_space<vmem>>, vector<1x1x8x128xf32>,
    return
  }
  func.func @transform_0(%arg0: i32, %arg1: i32, %arg2: i32) -> (i32, i32, i32) {
    %c0_i32 = arith.constant 0 : i32
    %c0_i32_0 = arith.constant 0 : i32
    %c0_i32_1 = arith.constant 0 : i32
    return %arg0, %c0_i32, %c0_i32_0 : i32, i32, i32
  }
  func.func @transform_1(%arg0: i32, %arg1: i32, %arg2: i32) -> (i32, i32, i32) {
    %c0_i32 = arith.constant 0 : i32
    %c0_i32_0 = arith.constant 0 : i32
    %c0_i32_1 = arith.constant 0 : i32
    return %arg0, %c0_i32, %c0_i32_0 : i32, i32, i32
  }
  func.func @transform_2(%arg0: i32, %arg1: i32, %arg2: i32) -> (i32, i32, i32, i32) {
    %c0_i32 = arith.constant 0 : i32
    %c0_i32_0 = arith.constant 0 : i32
    return %arg0, %arg1, %arg2, %c0_i32 : i32, i32, i32, i32
  }
  func.func @transform_3(%arg0: i32, %arg1: i32, %arg2: i32) -> (i32, i32, i32, i32) {
    %c0_i32 = arith.constant 0 : i32
    %c0_i32_0 = arith.constant 0 : i32
    %c0_i32_1 = arith.constant 0 : i32
    return %arg0, %arg1, %c0_i32, %c0_i32_0 : i32, i32, i32, i32
  }
  func.func @transform_4(%arg0: i32, %arg1: i32, %arg2: i32) -> (i32, i32, i32) {
    %c0_i32 = arith.constant 0 : i32
    %c0_i32_0 = arith.constant 0 : i32
    %c0_i32_1 = arith.constant 0 : i32
    return %arg0, %c0_i32, %c0_i32_0 : i32, i32, i32
  }
  func.func @transform_5(%arg0: i32, %arg1: i32, %arg2: i32) -> (i32, i32, i32) {
    %c0_i32 = arith.constant 0 : i32
    %c0_i32_0 = arith.constant 0 : i32
    %c0_i32_1 = arith.constant 0 : i32
    return %arg0, %c0_i32, %c0_i32_0 : i32, i32, i32
  }
  func.func @transform_6(%arg0: i32, %arg1: i32, %arg2: i32) -> (i32, i32, i32) {
    %c0_i32 = arith.constant 0 : i32
    %c0_i32_0 = arith.constant 0 : i32
    %c0_i32_1 = arith.constant 0 : i32
    return %arg0, %c0_i32, %c0_i32_0 : i32, i32, i32
  }
  func.func @transform_7(%arg0: i32, %arg1: i32, %arg2: i32) -> (i32, i32, i32) {
    %c0_i32 = arith.constant 0 : i32
    %c0_i32_0 = arith.constant 0 : i32
    %c0_i32_1 = arith.constant 0 : i32
    return %arg0, %c0_i32, %c0_i32_0 : i32, i32, i32
  }
  func.func @transform_8(%arg0: i32, %arg1: i32, %arg2: i32) -> (i32, i32, i32) {
    %c0_i32 = arith.constant 0 : i32
    %c0_i32_0 = arith.constant 0 : i32
    %c0_i32_1 = arith.constant 0 : i32
    return %arg0, %c0_i32, %c0_i32_0 : i32, i32, i32
  }
  func.func @transform_9(%arg0: i32, %arg1: i32, %arg2: i32) -> (i32, i32, i32, i32) {
    %c0_i32 = arith.constant 0 : i32
    %c0_i32_0 = arith.constant 0 : i32
    return %arg0, %arg1, %arg2, %c0_i32 : i32, i32, i32, i32
  }
}

module attributes {stable_mosaic.version = 11 : i64} {
  func.func @_cross_ffn_kernel(%arg0: i32, %arg1: i32, %arg2: i32, %arg3: memref<1x1x128xf32, #tpu.memory_space<vmem>>, %arg4: memref<1x1x128xf32, #tpu.memory_space<vmem>>, %arg5: memref<1x1x8x128xf32, #tpu.memory_space<vmem>>, %arg6: memref<1x1x8x128xf32, #tpu.memory_space<vmem>>, %arg7: memref<1x128x128xf32, #tpu.memory_space<vmem>>, %arg8: memref<1x128x128xf32, #tpu.memory_space<vmem>>, %arg9: memref<1x128x128xf32, #tpu.memory_space<vmem>>, %arg10: memref<1x128x128xf32, #tpu.memory_space<vmem>>, %arg11: memref<1x1x128xf32, #tpu.memory_space<vmem>>, %arg12: memref<1x1x128xf32, #tpu.memory_space<vmem>>, %arg13: memref<1x1x128xf32, #tpu.memory_space<vmem>>, %arg14: memref<1x128x256xf32, #tpu.memory_space<vmem>>, %arg15: memref<1x1x256xf32, #tpu.memory_space<vmem>>, %arg16: memref<1x256x128xf32, #tpu.memory_space<vmem>>, %arg17: memref<1x1x128xf32, #tpu.memory_space<vmem>>, %arg18: memref<1x1x8x128xf32, #tpu.memory_space<vmem>>, %arg19: memref<8x128xf32, #tpu.memory_space<vmem>>, %arg20: memref<8x128xf32, #tpu.memory_space<vmem>>) attributes {dimension_semantics = [#tpu.dimension_semantics<parallel>, #tpu.dimension_semantics<parallel>, #tpu.dimension_semantics<arbitrary>], iteration_bounds = array<i64: 2, 2, 1>, scalar_prefetch = 0 : i64, scratch_operands = 2 : i64, tpu.core_type = #tpu.core_type<tc>, window_params = [{transform_indices = @transform_0, window_bounds = array<i64: 1, 1, 128>}, {transform_indices = @transform_1, window_bounds = array<i64: 1, 1, 128>}, {transform_indices = @transform_2, window_bounds = array<i64: 1, 1, 8, 128>}, {transform_indices = @transform_3, window_bounds = array<i64: 1, 1, 8, 128>}, {transform_indices = @transform_4, window_bounds = array<i64: 1, 128, 128>}, {transform_indices = @transform_5, window_bounds = array<i64: 1, 128, 128>}, {transform_indices = @transform_6, window_bounds = array<i64: 1, 128, 128>}, {transform_indices = @transform_7, window_bounds = array<i64: 1, 128, 128>}, {transform_indices = @transform_8, window_bounds = array<i64: 1, 1, 128>}, {transform_indices = @transform_9, window_bounds = array<i64: 1, 1, 128>}, {transform_indices = @transform_10, window_bounds = array<i64: 1, 1, 128>}, {transform_indices = @transform_11, window_bounds = array<i64: 1, 128, 256>}, {transform_indices = @transform_12, window_bounds = array<i64: 1, 1, 256>}, {transform_indices = @transform_13, window_bounds = array<i64: 1, 256, 128>}, {transform_indices = @transform_14, window_bounds = array<i64: 1, 1, 128>}, {transform_indices = @transform_15, window_bounds = array<i64: 1, 1, 8, 128>}]} {
    %c0 = arith.constant 0 : index
    %c0_0 = arith.constant 0 : index
    %c0_1 = arith.constant 0 : index
    %0 = vector.load %arg3[%c0, %c0_0, %c0_1] : memref<1x1x128xf32, #tpu.memory_space<vmem>>, vector<1x1x128xf32>
    %1 = vector.shape_cast %0 : vector<1x1x128xf32> to vector<1x128xf32>
    %c0_2 = arith.constant 0 : index
    %c0_3 = arith.constant 0 : index
    %c0_4 = arith.constant 0 : index
    %2 = vector.load %arg4[%c0_2, %c0_3, %c0_4] : memref<1x1x128xf32, #tpu.memory_space<vmem>>, vector<1x1x128xf32>
    %3 = vector.shape_cast %2 : vector<1x1x128xf32> to vector<1x128xf32>
    %c0_i32 = arith.constant 0 : i32
    %4 = arith.cmpi eq, %arg2, %c0_i32 : i32
    %5 = arith.extui %4 : i1 to i32
    %c0_i32_5 = arith.constant 0 : i32
    %6 = arith.cmpi ne, %5, %c0_i32_5 : i32
    scf.if %6 {
      %c0_86 = arith.constant 0 : index
      %c0_87 = arith.constant 0 : index
      %c0_88 = arith.constant 0 : index
      %c0_89 = arith.constant 0 : index
      %173 = vector.load %arg6[%c0_86, %c0_87, %c0_88, %c0_89] : memref<1x1x8x128xf32, #tpu.memory_space<vmem>>, vector<1x1x8x128xf32>
      %174 = vector.shape_cast %173 : vector<1x1x8x128xf32> to vector<8x128xf32>
      %cst_90 = arith.constant dense<0.000000e+00> : vector<8xf32>
      %175 = vector.multi_reduction <add>, %174, %cst_90 [1] : vector<8x128xf32> to vector<8xf32>
      %176 = vector.shape_cast %175 : vector<8xf32> to vector<8x1xf32>
      %cst_91 = arith.constant 1.280000e+02 : f32
      %177 = vector.broadcast %cst_91 : f32 to vector<8x1xf32>
      %178 = arith.divf %176, %177 : vector<8x1xf32>
      %179 = vector.broadcast %178 : vector<8x1xf32> to vector<8x128xf32>
      %180 = arith.subf %174, %179 : vector<8x128xf32>
      %181 = arith.mulf %180, %180 : vector<8x128xf32>
      %cst_92 = arith.constant dense<0.000000e+00> : vector<8xf32>
      %182 = vector.multi_reduction <add>, %181, %cst_92 [1] : vector<8x128xf32> to vector<8xf32>
      %183 = vector.shape_cast %182 : vector<8xf32> to vector<8x1xf32>
      %cst_93 = arith.constant 1.280000e+02 : f32
      %184 = vector.broadcast %cst_93 : f32 to vector<8x1xf32>
      %185 = arith.divf %183, %184 : vector<8x1xf32>
      %cst_94 = arith.constant 9.99999974E-6 : f32
      %186 = vector.broadcast %cst_94 : f32 to vector<8x1xf32>
      %187 = arith.addf %185, %186 : vector<8x1xf32>
      %188 = math.rsqrt %187 : vector<8x1xf32>
      %189 = vector.broadcast %188 : vector<8x1xf32> to vector<8x128xf32>
      %190 = arith.mulf %180, %189 : vector<8x128xf32>
      %191 = vector.broadcast %1 : vector<1x128xf32> to vector<8x128xf32>
      %192 = arith.mulf %190, %191 : vector<8x128xf32>
      %193 = vector.broadcast %3 : vector<1x128xf32> to vector<8x128xf32>
      %194 = arith.addf %192, %193 : vector<8x128xf32>
      %c0_95 = arith.constant 0 : index
      %c0_96 = arith.constant 0 : index
      %c0_97 = arith.constant 0 : index
      %195 = vector.load %arg8[%c0_95, %c0_96, %c0_97] : memref<1x128x128xf32, #tpu.memory_space<vmem>>, vector<1x128x128xf32>
      %196 = vector.shape_cast %195 : vector<1x128x128xf32> to vector<128x128xf32>
      %cst_98 = arith.constant dense<0.000000e+00> : vector<8x128xf32>
      %197 = tpu.matmul %194, %196, %cst_98 {dimension_numbers = #tpu.dot_dimension_numbers<[1], [0], [0], [1], [0, 0, 1, 1], [], []>} : vector<8x128xf32>, vector<128x128xf32>, vector<8x128xf32> -> vector<8x128xf32>
      %c0_99 = arith.constant 0 : index
      %c0_100 = arith.constant 0 : index
      %198 = vector.load %arg19[%c0_99, %c0_100] : memref<8x128xf32, #tpu.memory_space<vmem>>, vector<8x128xf32>
      tpu.vector_store %arg19[%c0_99, %c0_100], %197 {strides = array<i32>} : memref<8x128xf32, #tpu.memory_space<vmem>>, vector<8x128xf32>,
      %c0_101 = arith.constant 0 : index
      %c0_102 = arith.constant 0 : index
      %c0_103 = arith.constant 0 : index
      %199 = vector.load %arg9[%c0_101, %c0_102, %c0_103] : memref<1x128x128xf32, #tpu.memory_space<vmem>>, vector<1x128x128xf32>
      %200 = vector.shape_cast %199 : vector<1x128x128xf32> to vector<128x128xf32>
      %cst_104 = arith.constant dense<0.000000e+00> : vector<8x128xf32>
      %201 = tpu.matmul %194, %200, %cst_104 {dimension_numbers = #tpu.dot_dimension_numbers<[1], [0], [0], [1], [0, 0, 1, 1], [], []>} : vector<8x128xf32>, vector<128x128xf32>, vector<8x128xf32> -> vector<8x128xf32>
      %c0_105 = arith.constant 0 : index
      %c0_106 = arith.constant 0 : index
      %202 = vector.load %arg20[%c0_105, %c0_106] : memref<8x128xf32, #tpu.memory_space<vmem>>, vector<8x128xf32>
      tpu.vector_store %arg20[%c0_105, %c0_106], %201 {strides = array<i32>} : memref<8x128xf32, #tpu.memory_space<vmem>>, vector<8x128xf32>,
    } else {
    }
    %c0_6 = arith.constant 0 : index
    %c0_7 = arith.constant 0 : index
    %c0_8 = arith.constant 0 : index
    %c0_9 = arith.constant 0 : index
    %7 = vector.load %arg5[%c0_6, %c0_7, %c0_8, %c0_9] : memref<1x1x8x128xf32, #tpu.memory_space<vmem>>, vector<1x1x8x128xf32>
    %8 = vector.shape_cast %7 : vector<1x1x8x128xf32> to vector<8x128xf32>
    %cst = arith.constant dense<0.000000e+00> : vector<8xf32>
    %9 = vector.multi_reduction <add>, %8, %cst [1] : vector<8x128xf32> to vector<8xf32>
    %10 = vector.shape_cast %9 : vector<8xf32> to vector<8x1xf32>
    %cst_10 = arith.constant 1.280000e+02 : f32
    %11 = vector.broadcast %cst_10 : f32 to vector<8x1xf32>
    %12 = arith.divf %10, %11 : vector<8x1xf32>
    %13 = vector.broadcast %12 : vector<8x1xf32> to vector<8x128xf32>
    %14 = arith.subf %8, %13 : vector<8x128xf32>
    %15 = arith.mulf %14, %14 : vector<8x128xf32>
    %cst_11 = arith.constant dense<0.000000e+00> : vector<8xf32>
    %16 = vector.multi_reduction <add>, %15, %cst_11 [1] : vector<8x128xf32> to vector<8xf32>
    %17 = vector.shape_cast %16 : vector<8xf32> to vector<8x1xf32>
    %cst_12 = arith.constant 1.280000e+02 : f32
    %18 = vector.broadcast %cst_12 : f32 to vector<8x1xf32>
    %19 = arith.divf %17, %18 : vector<8x1xf32>
    %cst_13 = arith.constant 9.99999974E-6 : f32
    %20 = vector.broadcast %cst_13 : f32 to vector<8x1xf32>
    %21 = arith.addf %19, %20 : vector<8x1xf32>
    %22 = math.rsqrt %21 : vector<8x1xf32>
    %23 = vector.broadcast %22 : vector<8x1xf32> to vector<8x128xf32>
    %24 = arith.mulf %14, %23 : vector<8x128xf32>
    %25 = vector.broadcast %1 : vector<1x128xf32> to vector<8x128xf32>
    %26 = arith.mulf %24, %25 : vector<8x128xf32>
    %27 = vector.broadcast %3 : vector<1x128xf32> to vector<8x128xf32>
    %28 = arith.addf %26, %27 : vector<8x128xf32>
    %c0_14 = arith.constant 0 : index
    %c0_15 = arith.constant 0 : index
    %29 = vector.load %arg19[%c0_14, %c0_15] : memref<8x128xf32, #tpu.memory_space<vmem>>, vector<8x128xf32>
    %c0_16 = arith.constant 0 : index
    %c0_17 = arith.constant 0 : index
    %30 = vector.load %arg20[%c0_16, %c0_17] : memref<8x128xf32, #tpu.memory_space<vmem>>, vector<8x128xf32>
    %c0_18 = arith.constant 0 : index
    %c0_19 = arith.constant 0 : index
    %c0_20 = arith.constant 0 : index
    %31 = vector.load %arg7[%c0_18, %c0_19, %c0_20] : memref<1x128x128xf32, #tpu.memory_space<vmem>>, vector<1x128x128xf32>
    %32 = vector.shape_cast %31 : vector<1x128x128xf32> to vector<128x128xf32>
    %c0_21 = arith.constant 0 : index
    %c0_22 = arith.constant 0 : index
    %c0_23 = arith.constant 0 : index
    %33 = vector.load %arg10[%c0_21, %c0_22, %c0_23] : memref<1x128x128xf32, #tpu.memory_space<vmem>>, vector<1x128x128xf32>
    %34 = vector.shape_cast %33 : vector<1x128x128xf32> to vector<128x128xf32>
    %c0_24 = arith.constant 0 : index
    %c0_25 = arith.constant 0 : index
    %c0_26 = arith.constant 0 : index
    %35 = vector.load %arg11[%c0_24, %c0_25, %c0_26] : memref<1x1x128xf32, #tpu.memory_space<vmem>>, vector<1x1x128xf32>
    %36 = vector.shape_cast %35 : vector<1x1x128xf32> to vector<1x128xf32>
    %cst_27 = arith.constant dense<0.000000e+00> : vector<8x128xf32>
    %37 = tpu.matmul %28, %32, %cst_27 {dimension_numbers = #tpu.dot_dimension_numbers<[1], [0], [0], [1], [0, 0, 1, 1], [], []>} : vector<8x128xf32>, vector<128x128xf32>, vector<8x128xf32> -> vector<8x128xf32>
    %cst_28 = arith.constant 0.0883883461 : f32
    %38 = vector.broadcast %cst_28 : f32 to vector<8x128xf32>
    %39 = arith.mulf %37, %38 : vector<8x128xf32>
    %cst_29 = arith.constant 0.000000e+00 : f32
    %40 = vector.broadcast %cst_29 : f32 to vector<8x128xf32>
    %41 = vector.extract_strided_slice %39 {offsets = [0, 0], sizes = [8, 64], strides = [1, 1]} : vector<8x128xf32> to vector<8x64xf32>
    %42 = vector.extract_strided_slice %29 {offsets = [0, 0], sizes = [8, 64], strides = [1, 1]} : vector<8x128xf32> to vector<8x64xf32>
    %43 = vector.extract_strided_slice %30 {offsets = [0, 0], sizes = [8, 64], strides = [1, 1]} : vector<8x128xf32> to vector<8x64xf32>
    %cst_30 = arith.constant dense<0.000000e+00> : vector<8x8xf32>
    %44 = tpu.matmul %41, %42, %cst_30 {dimension_numbers = #tpu.dot_dimension_numbers<[1], [1], [0], [0], [0, 0, 1, 0], [], []>} : vector<8x64xf32>, vector<8x64xf32>, vector<8x8xf32> -> vector<8x8xf32>
    %cst_31 = arith.constant dense<0xFF800000> : vector<8xf32>
    %45 = vector.multi_reduction <maximumf>, %44, %cst_31 [1] : vector<8x8xf32> to vector<8xf32>
    %46 = vector.shape_cast %45 : vector<8xf32> to vector<8x1xf32>
    %47 = vector.broadcast %46 : vector<8x1xf32> to vector<8x8xf32>
    %48 = arith.subf %44, %47 : vector<8x8xf32>
    %49 = math.exp %48 : vector<8x8xf32>
    %cst_32 = arith.constant dense<0.000000e+00> : vector<8xf32>
    %50 = vector.multi_reduction <add>, %49, %cst_32 [1] : vector<8x8xf32> to vector<8xf32>
    %51 = vector.shape_cast %50 : vector<8xf32> to vector<8x1xf32>
    %cst_33 = arith.constant dense<0.000000e+00> : vector<8x64xf32>
    %52 = tpu.matmul %49, %43, %cst_33 {dimension_numbers = #tpu.dot_dimension_numbers<[1], [0], [0], [1], [0, 0, 1, 1], [], []>} : vector<8x8xf32>, vector<8x64xf32>, vector<8x64xf32> -> vector<8x64xf32>
    %53 = tpu.reciprocal %51 {approx = true} : vector<8x1xf32> -> vector<8x1xf32>
    %54 = arith.mulf %51, %53 : vector<8x1xf32>
    %cst_34 = arith.constant 2.000000e+00 : f32
    %55 = vector.broadcast %cst_34 : f32 to vector<8x1xf32>
    %56 = arith.subf %55, %54 : vector<8x1xf32>
    %57 = arith.mulf %53, %56 : vector<8x1xf32>
    %58 = vector.broadcast %57 : vector<8x1xf32> to vector<8x64xf32>
    %59 = arith.mulf %52, %58 : vector<8x64xf32>
    %60 = vector.extract_strided_slice %34 {offsets = [0, 0], sizes = [64, 128], strides = [1, 1]} : vector<128x128xf32> to vector<64x128xf32>
    %cst_35 = arith.constant dense<0.000000e+00> : vector<8x128xf32>
    %61 = tpu.matmul %59, %60, %cst_35 {dimension_numbers = #tpu.dot_dimension_numbers<[1], [0], [0], [1], [0, 0, 1, 1], [], []>} : vector<8x64xf32>, vector<64x128xf32>, vector<8x128xf32> -> vector<8x128xf32>
    %62 = arith.addf %40, %61 : vector<8x128xf32>
    %63 = vector.extract_strided_slice %39 {offsets = [0, 64], sizes = [8, 64], strides = [1, 1]} : vector<8x128xf32> to vector<8x64xf32>
    %64 = vector.extract_strided_slice %29 {offsets = [0, 64], sizes = [8, 64], strides = [1, 1]} : vector<8x128xf32> to vector<8x64xf32>
    %65 = vector.extract_strided_slice %30 {offsets = [0, 64], sizes = [8, 64], strides = [1, 1]} : vector<8x128xf32> to vector<8x64xf32>
    %cst_36 = arith.constant dense<0.000000e+00> : vector<8x8xf32>
    %66 = tpu.matmul %63, %64, %cst_36 {dimension_numbers = #tpu.dot_dimension_numbers<[1], [1], [0], [0], [0, 0, 1, 0], [], []>} : vector<8x64xf32>, vector<8x64xf32>, vector<8x8xf32> -> vector<8x8xf32>
    %cst_37 = arith.constant dense<0xFF800000> : vector<8xf32>
    %67 = vector.multi_reduction <maximumf>, %66, %cst_37 [1] : vector<8x8xf32> to vector<8xf32>
    %68 = vector.shape_cast %67 : vector<8xf32> to vector<8x1xf32>
    %69 = vector.broadcast %68 : vector<8x1xf32> to vector<8x8xf32>
    %70 = arith.subf %66, %69 : vector<8x8xf32>
    %71 = math.exp %70 : vector<8x8xf32>
    %cst_38 = arith.constant dense<0.000000e+00> : vector<8xf32>
    %72 = vector.multi_reduction <add>, %71, %cst_38 [1] : vector<8x8xf32> to vector<8xf32>
    %73 = vector.shape_cast %72 : vector<8xf32> to vector<8x1xf32>
    %cst_39 = arith.constant dense<0.000000e+00> : vector<8x64xf32>
    %74 = tpu.matmul %71, %65, %cst_39 {dimension_numbers = #tpu.dot_dimension_numbers<[1], [0], [0], [1], [0, 0, 1, 1], [], []>} : vector<8x8xf32>, vector<8x64xf32>, vector<8x64xf32> -> vector<8x64xf32>
    %75 = tpu.reciprocal %73 {approx = true} : vector<8x1xf32> -> vector<8x1xf32>
    %76 = arith.mulf %73, %75 : vector<8x1xf32>
    %cst_40 = arith.constant 2.000000e+00 : f32
    %77 = vector.broadcast %cst_40 : f32 to vector<8x1xf32>
    %78 = arith.subf %77, %76 : vector<8x1xf32>
    %79 = arith.mulf %75, %78 : vector<8x1xf32>
    %80 = vector.broadcast %79 : vector<8x1xf32> to vector<8x64xf32>
    %81 = arith.mulf %74, %80 : vector<8x64xf32>
    %82 = vector.extract_strided_slice %34 {offsets = [64, 0], sizes = [64, 128], strides = [1, 1]} : vector<128x128xf32> to vector<64x128xf32>
    %cst_41 = arith.constant dense<0.000000e+00> : vector<8x128xf32>
    %83 = tpu.matmul %81, %82, %cst_41 {dimension_numbers = #tpu.dot_dimension_numbers<[1], [0], [0], [1], [0, 0, 1, 1], [], []>} : vector<8x64xf32>, vector<64x128xf32>, vector<8x128xf32> -> vector<8x128xf32>
    %84 = arith.addf %62, %83 : vector<8x128xf32>
    %85 = vector.broadcast %36 : vector<1x128xf32> to vector<8x128xf32>
    %86 = arith.addf %84, %85 : vector<8x128xf32>
    %87 = arith.addf %8, %86 : vector<8x128xf32>
    %c0_42 = arith.constant 0 : index
    %c0_43 = arith.constant 0 : index
    %c0_44 = arith.constant 0 : index
    %88 = vector.load %arg12[%c0_42, %c0_43, %c0_44] : memref<1x1x128xf32, #tpu.memory_space<vmem>>, vector<1x1x128xf32>
    %89 = vector.shape_cast %88 : vector<1x1x128xf32> to vector<1x128xf32>
    %c0_45 = arith.constant 0 : index
    %c0_46 = arith.constant 0 : index
    %c0_47 = arith.constant 0 : index
    %90 = vector.load %arg13[%c0_45, %c0_46, %c0_47] : memref<1x1x128xf32, #tpu.memory_space<vmem>>, vector<1x1x128xf32>
    %91 = vector.shape_cast %90 : vector<1x1x128xf32> to vector<1x128xf32>
    %cst_48 = arith.constant dense<0.000000e+00> : vector<8xf32>
    %92 = vector.multi_reduction <add>, %87, %cst_48 [1] : vector<8x128xf32> to vector<8xf32>
    %93 = vector.shape_cast %92 : vector<8xf32> to vector<8x1xf32>
    %cst_49 = arith.constant 1.280000e+02 : f32
    %94 = vector.broadcast %cst_49 : f32 to vector<8x1xf32>
    %95 = arith.divf %93, %94 : vector<8x1xf32>
    %96 = vector.broadcast %95 : vector<8x1xf32> to vector<8x128xf32>
    %97 = arith.subf %87, %96 : vector<8x128xf32>
    %98 = arith.mulf %97, %97 : vector<8x128xf32>
    %cst_50 = arith.constant dense<0.000000e+00> : vector<8xf32>
    %99 = vector.multi_reduction <add>, %98, %cst_50 [1] : vector<8x128xf32> to vector<8xf32>
    %100 = vector.shape_cast %99 : vector<8xf32> to vector<8x1xf32>
    %cst_51 = arith.constant 1.280000e+02 : f32
    %101 = vector.broadcast %cst_51 : f32 to vector<8x1xf32>
    %102 = arith.divf %100, %101 : vector<8x1xf32>
    %cst_52 = arith.constant 9.99999974E-6 : f32
    %103 = vector.broadcast %cst_52 : f32 to vector<8x1xf32>
    %104 = arith.addf %102, %103 : vector<8x1xf32>
    %105 = math.rsqrt %104 : vector<8x1xf32>
    %106 = vector.broadcast %105 : vector<8x1xf32> to vector<8x128xf32>
    %107 = arith.mulf %97, %106 : vector<8x128xf32>
    %108 = vector.broadcast %89 : vector<1x128xf32> to vector<8x128xf32>
    %109 = arith.mulf %107, %108 : vector<8x128xf32>
    %110 = vector.broadcast %91 : vector<1x128xf32> to vector<8x128xf32>
    %111 = arith.addf %109, %110 : vector<8x128xf32>
    %c0_53 = arith.constant 0 : index
    %c0_54 = arith.constant 0 : index
    %c0_55 = arith.constant 0 : index
    %112 = vector.load %arg14[%c0_53, %c0_54, %c0_55] : memref<1x128x256xf32, #tpu.memory_space<vmem>>, vector<1x128x256xf32>
    %113 = vector.shape_cast %112 : vector<1x128x256xf32> to vector<128x256xf32>
    %cst_56 = arith.constant dense<0.000000e+00> : vector<8x256xf32>
    %114 = tpu.matmul %111, %113, %cst_56 {dimension_numbers = #tpu.dot_dimension_numbers<[1], [0], [0], [1], [0, 0, 1, 1], [], []>} : vector<8x128xf32>, vector<128x256xf32>, vector<8x256xf32> -> vector<8x256xf32>
    %c0_57 = arith.constant 0 : index
    %c0_58 = arith.constant 0 : index
    %c0_59 = arith.constant 0 : index
    %115 = vector.load %arg15[%c0_57, %c0_58, %c0_59] : memref<1x1x256xf32, #tpu.memory_space<vmem>>, vector<1x1x256xf32>
    %116 = vector.shape_cast %115 : vector<1x1x256xf32> to vector<1x256xf32>
    %117 = vector.broadcast %116 : vector<1x256xf32> to vector<8x256xf32>
    %118 = arith.addf %114, %117 : vector<8x256xf32>
    %cst_60 = arith.constant 5.000000e-01 : f32
    %119 = vector.broadcast %cst_60 : f32 to vector<8x256xf32>
    %120 = arith.mulf %119, %118 : vector<8x256xf32>
    %cst_61 = arith.constant 0.707106769 : f32
    %121 = vector.broadcast %cst_61 : f32 to vector<8x256xf32>
    %122 = arith.mulf %118, %121 : vector<8x256xf32>
    %123 = math.absf %122 : vector<8x256xf32>
    %cst_62 = arith.constant 0.327591091 : f32
    %124 = vector.broadcast %cst_62 : f32 to vector<8x256xf32>
    %125 = arith.mulf %124, %123 : vector<8x256xf32>
    %cst_63 = arith.constant 1.000000e+00 : f32
    %126 = vector.broadcast %cst_63 : f32 to vector<8x256xf32>
    %127 = arith.addf %126, %125 : vector<8x256xf32>
    %128 = tpu.reciprocal %127 {approx = true} : vector<8x256xf32> -> vector<8x256xf32>
    %129 = arith.mulf %127, %128 : vector<8x256xf32>
    %cst_64 = arith.constant 2.000000e+00 : f32
    %130 = vector.broadcast %cst_64 : f32 to vector<8x256xf32>
    %131 = arith.subf %130, %129 : vector<8x256xf32>
    %132 = arith.mulf %128, %131 : vector<8x256xf32>
    %cst_65 = arith.constant 1.06140542 : f32
    %133 = vector.broadcast %cst_65 : f32 to vector<8x256xf32>
    %134 = arith.mulf %133, %132 : vector<8x256xf32>
    %cst_66 = arith.constant -1.45315206 : f32
    %135 = vector.broadcast %cst_66 : f32 to vector<8x256xf32>
    %136 = arith.addf %134, %135 : vector<8x256xf32>
    %137 = arith.mulf %136, %132 : vector<8x256xf32>
    %cst_67 = arith.constant 1.42141378 : f32
    %138 = vector.broadcast %cst_67 : f32 to vector<8x256xf32>
    %139 = arith.addf %137, %138 : vector<8x256xf32>
    %140 = arith.mulf %139, %132 : vector<8x256xf32>
    %cst_68 = arith.constant -0.284496725 : f32
    %141 = vector.broadcast %cst_68 : f32 to vector<8x256xf32>
    %142 = arith.addf %140, %141 : vector<8x256xf32>
    %143 = arith.mulf %142, %132 : vector<8x256xf32>
    %cst_69 = arith.constant 0.254829586 : f32
    %144 = vector.broadcast %cst_69 : f32 to vector<8x256xf32>
    %145 = arith.addf %143, %144 : vector<8x256xf32>
    %146 = arith.mulf %145, %132 : vector<8x256xf32>
    %147 = arith.mulf %123, %123 : vector<8x256xf32>
    %cst_70 = arith.constant 0.000000e+00 : f32
    %148 = vector.broadcast %cst_70 : f32 to vector<8x256xf32>
    %149 = arith.subf %148, %147 : vector<8x256xf32>
    %150 = math.exp %149 : vector<8x256xf32>
    %151 = arith.mulf %146, %150 : vector<8x256xf32>
    %cst_71 = arith.constant 1.000000e+00 : f32
    %152 = vector.broadcast %cst_71 : f32 to vector<8x256xf32>
    %153 = arith.subf %152, %151 : vector<8x256xf32>
    %cst_72 = arith.constant 0.000000e+00 : f32
    %154 = vector.broadcast %cst_72 : f32 to vector<8x256xf32>
    %155 = arith.cmpf oge, %122, %154 : vector<8x256xf32>
    %cst_73 = arith.constant 0.000000e+00 : f32
    %156 = vector.broadcast %cst_73 : f32 to vector<8x256xf32>
    %157 = arith.subf %156, %153 : vector<8x256xf32>
    %158 = arith.select %155, %153, %157 : vector<8x256xi1>, vector<8x256xf32>
    %cst_74 = arith.constant 1.000000e+00 : f32
    %159 = vector.broadcast %cst_74 : f32 to vector<8x256xf32>
    %160 = arith.addf %159, %158 : vector<8x256xf32>
    %161 = arith.mulf %120, %160 : vector<8x256xf32>
    %c0_75 = arith.constant 0 : index
    %c0_76 = arith.constant 0 : index
    %c0_77 = arith.constant 0 : index
    %162 = vector.load %arg16[%c0_75, %c0_76, %c0_77] : memref<1x256x128xf32, #tpu.memory_space<vmem>>, vector<1x256x128xf32>
    %163 = vector.shape_cast %162 : vector<1x256x128xf32> to vector<256x128xf32>
    %cst_78 = arith.constant dense<0.000000e+00> : vector<8x128xf32>
    %164 = tpu.matmul %161, %163, %cst_78 {dimension_numbers = #tpu.dot_dimension_numbers<[1], [0], [0], [1], [0, 0, 1, 1], [], []>} : vector<8x256xf32>, vector<256x128xf32>, vector<8x128xf32> -> vector<8x128xf32>
    %165 = arith.addf %87, %164 : vector<8x128xf32>
    %c0_79 = arith.constant 0 : index
    %c0_80 = arith.constant 0 : index
    %c0_81 = arith.constant 0 : index
    %166 = vector.load %arg17[%c0_79, %c0_80, %c0_81] : memref<1x1x128xf32, #tpu.memory_space<vmem>>, vector<1x1x128xf32>
    %167 = vector.shape_cast %166 : vector<1x1x128xf32> to vector<1x128xf32>
    %168 = vector.broadcast %167 : vector<1x128xf32> to vector<8x128xf32>
    %169 = arith.addf %165, %168 : vector<8x128xf32>
    %c0_82 = arith.constant 0 : index
    %c0_83 = arith.constant 0 : index
    %c0_84 = arith.constant 0 : index
    %c0_85 = arith.constant 0 : index
    %170 = vector.load %arg18[%c0_82, %c0_83, %c0_84, %c0_85] : memref<1x1x8x128xf32, #tpu.memory_space<vmem>>, vector<1x1x8x128xf32>
    %171 = vector.shape_cast %170 : vector<1x1x8x128xf32> to vector<8x128xf32>
    %172 = vector.shape_cast %169 : vector<8x128xf32> to vector<1x1x8x128xf32>
    tpu.vector_store %arg18[%c0_82, %c0_83, %c0_84, %c0_85], %172 {strides = array<i32>} : memref<1x1x8x128xf32, #tpu.memory_space<vmem>>, vector<1x1x8x128xf32>,
    return
  }
  func.func @transform_0(%arg0: i32, %arg1: i32, %arg2: i32) -> (i32, i32, i32) {
    %c0_i32 = arith.constant 0 : i32
    %c0_i32_0 = arith.constant 0 : i32
    %c0_i32_1 = arith.constant 0 : i32
    return %arg0, %c0_i32, %c0_i32_0 : i32, i32, i32
  }
  func.func @transform_1(%arg0: i32, %arg1: i32, %arg2: i32) -> (i32, i32, i32) {
    %c0_i32 = arith.constant 0 : i32
    %c0_i32_0 = arith.constant 0 : i32
    %c0_i32_1 = arith.constant 0 : i32
    return %arg0, %c0_i32, %c0_i32_0 : i32, i32, i32
  }
  func.func @transform_2(%arg0: i32, %arg1: i32, %arg2: i32) -> (i32, i32, i32, i32) {
    %c0_i32 = arith.constant 0 : i32
    %c0_i32_0 = arith.constant 0 : i32
    return %arg0, %arg1, %arg2, %c0_i32 : i32, i32, i32, i32
  }
  func.func @transform_3(%arg0: i32, %arg1: i32, %arg2: i32) -> (i32, i32, i32, i32) {
    %c1_i32 = arith.constant 1 : i32
    %0 = arith.subi %c1_i32, %arg0 : i32
    %c0_i32 = arith.constant 0 : i32
    %c0_i32_0 = arith.constant 0 : i32
    %c0_i32_1 = arith.constant 0 : i32
    return %0, %arg1, %c0_i32, %c0_i32_0 : i32, i32, i32, i32
  }
  func.func @transform_4(%arg0: i32, %arg1: i32, %arg2: i32) -> (i32, i32, i32) {
    %c0_i32 = arith.constant 0 : i32
    %c0_i32_0 = arith.constant 0 : i32
    %c0_i32_1 = arith.constant 0 : i32
    return %arg0, %c0_i32, %c0_i32_0 : i32, i32, i32
  }
  func.func @transform_5(%arg0: i32, %arg1: i32, %arg2: i32) -> (i32, i32, i32) {
    %c0_i32 = arith.constant 0 : i32
    %c0_i32_0 = arith.constant 0 : i32
    %c0_i32_1 = arith.constant 0 : i32
    return %arg0, %c0_i32, %c0_i32_0 : i32, i32, i32
  }
  func.func @transform_6(%arg0: i32, %arg1: i32, %arg2: i32) -> (i32, i32, i32) {
    %c0_i32 = arith.constant 0 : i32
    %c0_i32_0 = arith.constant 0 : i32
    %c0_i32_1 = arith.constant 0 : i32
    return %arg0, %c0_i32, %c0_i32_0 : i32, i32, i32
  }
  func.func @transform_7(%arg0: i32, %arg1: i32, %arg2: i32) -> (i32, i32, i32) {
    %c0_i32 = arith.constant 0 : i32
    %c0_i32_0 = arith.constant 0 : i32
    %c0_i32_1 = arith.constant 0 : i32
    return %arg0, %c0_i32, %c0_i32_0 : i32, i32, i32
  }
  func.func @transform_8(%arg0: i32, %arg1: i32, %arg2: i32) -> (i32, i32, i32) {
    %c0_i32 = arith.constant 0 : i32
    %c0_i32_0 = arith.constant 0 : i32
    %c0_i32_1 = arith.constant 0 : i32
    return %arg0, %c0_i32, %c0_i32_0 : i32, i32, i32
  }
  func.func @transform_9(%arg0: i32, %arg1: i32, %arg2: i32) -> (i32, i32, i32) {
    %c0_i32 = arith.constant 0 : i32
    %c0_i32_0 = arith.constant 0 : i32
    %c0_i32_1 = arith.constant 0 : i32
    return %arg0, %c0_i32, %c0_i32_0 : i32, i32, i32
  }
  func.func @transform_10(%arg0: i32, %arg1: i32, %arg2: i32) -> (i32, i32, i32) {
    %c0_i32 = arith.constant 0 : i32
    %c0_i32_0 = arith.constant 0 : i32
    %c0_i32_1 = arith.constant 0 : i32
    return %arg0, %c0_i32, %c0_i32_0 : i32, i32, i32
  }
  func.func @transform_11(%arg0: i32, %arg1: i32, %arg2: i32) -> (i32, i32, i32) {
    %c0_i32 = arith.constant 0 : i32
    %c0_i32_0 = arith.constant 0 : i32
    %c0_i32_1 = arith.constant 0 : i32
    return %arg0, %c0_i32, %c0_i32_0 : i32, i32, i32
  }
  func.func @transform_12(%arg0: i32, %arg1: i32, %arg2: i32) -> (i32, i32, i32) {
    %c0_i32 = arith.constant 0 : i32
    %c0_i32_0 = arith.constant 0 : i32
    %c0_i32_1 = arith.constant 0 : i32
    return %arg0, %c0_i32, %c0_i32_0 : i32, i32, i32
  }
  func.func @transform_13(%arg0: i32, %arg1: i32, %arg2: i32) -> (i32, i32, i32) {
    %c0_i32 = arith.constant 0 : i32
    %c0_i32_0 = arith.constant 0 : i32
    %c0_i32_1 = arith.constant 0 : i32
    return %arg0, %c0_i32, %c0_i32_0 : i32, i32, i32
  }
  func.func @transform_14(%arg0: i32, %arg1: i32, %arg2: i32) -> (i32, i32, i32) {
    %c0_i32 = arith.constant 0 : i32
    %c0_i32_0 = arith.constant 0 : i32
    %c0_i32_1 = arith.constant 0 : i32
    return %arg0, %c0_i32, %c0_i32_0 : i32, i32, i32
  }
  func.func @transform_15(%arg0: i32, %arg1: i32, %arg2: i32) -> (i32, i32, i32, i32) {
    %c0_i32 = arith.constant 0 : i32
    %c0_i32_0 = arith.constant 0 : i32
    return %arg0, %arg1, %arg2, %c0_i32 : i32, i32, i32, i32
  }
}

module attributes {stable_mosaic.version = 11 : i64} {
  func.func @_self_attn_kernel(%arg0: i32, %arg1: i32, %arg2: i32, %arg3: memref<1x1x128xf32, #tpu.memory_space<vmem>>, %arg4: memref<1x1x128xf32, #tpu.memory_space<vmem>>, %arg5: memref<1x1x8x128xf32, #tpu.memory_space<vmem>>, %arg6: memref<1x1x8x128xf32, #tpu.memory_space<vmem>>, %arg7: memref<1x128x128xf32, #tpu.memory_space<vmem>>, %arg8: memref<1x128x128xf32, #tpu.memory_space<vmem>>, %arg9: memref<1x128x128xf32, #tpu.memory_space<vmem>>, %arg10: memref<1x128x128xf32, #tpu.memory_space<vmem>>, %arg11: memref<1x1x128xf32, #tpu.memory_space<vmem>>, %arg12: memref<1x1x8x128xf32, #tpu.memory_space<vmem>>, %arg13: memref<8x128xf32, #tpu.memory_space<vmem>>, %arg14: memref<8x128xf32, #tpu.memory_space<vmem>>) attributes {dimension_semantics = [#tpu.dimension_semantics<parallel>, #tpu.dimension_semantics<parallel>, #tpu.dimension_semantics<arbitrary>], iteration_bounds = array<i64: 2, 2, 1>, scalar_prefetch = 0 : i64, scratch_operands = 2 : i64, tpu.core_type = #tpu.core_type<tc>, window_params = [{transform_indices = @transform_0, window_bounds = array<i64: 1, 1, 128>}, {transform_indices = @transform_1, window_bounds = array<i64: 1, 1, 128>}, {transform_indices = @transform_2, window_bounds = array<i64: 1, 1, 8, 128>}, {transform_indices = @transform_3, window_bounds = array<i64: 1, 1, 8, 128>}, {transform_indices = @transform_4, window_bounds = array<i64: 1, 128, 128>}, {transform_indices = @transform_5, window_bounds = array<i64: 1, 128, 128>}, {transform_indices = @transform_6, window_bounds = array<i64: 1, 128, 128>}, {transform_indices = @transform_7, window_bounds = array<i64: 1, 128, 128>}, {transform_indices = @transform_8, window_bounds = array<i64: 1, 1, 128>}, {transform_indices = @transform_9, window_bounds = array<i64: 1, 1, 8, 128>}]} {
    %c0 = arith.constant 0 : index
    %c0_0 = arith.constant 0 : index
    %c0_1 = arith.constant 0 : index
    %0 = vector.load %arg3[%c0, %c0_0, %c0_1] : memref<1x1x128xf32, #tpu.memory_space<vmem>>, vector<1x1x128xf32>
    %1 = vector.shape_cast %0 : vector<1x1x128xf32> to vector<1x128xf32>
    %c0_2 = arith.constant 0 : index
    %c0_3 = arith.constant 0 : index
    %c0_4 = arith.constant 0 : index
    %2 = vector.load %arg4[%c0_2, %c0_3, %c0_4] : memref<1x1x128xf32, #tpu.memory_space<vmem>>, vector<1x1x128xf32>
    %3 = vector.shape_cast %2 : vector<1x1x128xf32> to vector<1x128xf32>
    %c0_i32 = arith.constant 0 : i32
    %4 = arith.cmpi eq, %arg2, %c0_i32 : i32
    %5 = arith.extui %4 : i1 to i32
    %c0_i32_5 = arith.constant 0 : i32
    %6 = arith.cmpi ne, %5, %c0_i32_5 : i32
    scf.if %6 {
      %c0_46 = arith.constant 0 : index
      %c0_47 = arith.constant 0 : index
      %c0_48 = arith.constant 0 : index
      %c0_49 = arith.constant 0 : index
      %91 = vector.load %arg6[%c0_46, %c0_47, %c0_48, %c0_49] : memref<1x1x8x128xf32, #tpu.memory_space<vmem>>, vector<1x1x8x128xf32>
      %92 = vector.shape_cast %91 : vector<1x1x8x128xf32> to vector<8x128xf32>
      %cst_50 = arith.constant dense<0.000000e+00> : vector<8xf32>
      %93 = vector.multi_reduction <add>, %92, %cst_50 [1] : vector<8x128xf32> to vector<8xf32>
      %94 = vector.shape_cast %93 : vector<8xf32> to vector<8x1xf32>
      %cst_51 = arith.constant 1.280000e+02 : f32
      %95 = vector.broadcast %cst_51 : f32 to vector<8x1xf32>
      %96 = arith.divf %94, %95 : vector<8x1xf32>
      %97 = vector.broadcast %96 : vector<8x1xf32> to vector<8x128xf32>
      %98 = arith.subf %92, %97 : vector<8x128xf32>
      %99 = arith.mulf %98, %98 : vector<8x128xf32>
      %cst_52 = arith.constant dense<0.000000e+00> : vector<8xf32>
      %100 = vector.multi_reduction <add>, %99, %cst_52 [1] : vector<8x128xf32> to vector<8xf32>
      %101 = vector.shape_cast %100 : vector<8xf32> to vector<8x1xf32>
      %cst_53 = arith.constant 1.280000e+02 : f32
      %102 = vector.broadcast %cst_53 : f32 to vector<8x1xf32>
      %103 = arith.divf %101, %102 : vector<8x1xf32>
      %cst_54 = arith.constant 9.99999974E-6 : f32
      %104 = vector.broadcast %cst_54 : f32 to vector<8x1xf32>
      %105 = arith.addf %103, %104 : vector<8x1xf32>
      %106 = math.rsqrt %105 : vector<8x1xf32>
      %107 = vector.broadcast %106 : vector<8x1xf32> to vector<8x128xf32>
      %108 = arith.mulf %98, %107 : vector<8x128xf32>
      %109 = vector.broadcast %1 : vector<1x128xf32> to vector<8x128xf32>
      %110 = arith.mulf %108, %109 : vector<8x128xf32>
      %111 = vector.broadcast %3 : vector<1x128xf32> to vector<8x128xf32>
      %112 = arith.addf %110, %111 : vector<8x128xf32>
      %c0_55 = arith.constant 0 : index
      %c0_56 = arith.constant 0 : index
      %c0_57 = arith.constant 0 : index
      %113 = vector.load %arg8[%c0_55, %c0_56, %c0_57] : memref<1x128x128xf32, #tpu.memory_space<vmem>>, vector<1x128x128xf32>
      %114 = vector.shape_cast %113 : vector<1x128x128xf32> to vector<128x128xf32>
      %cst_58 = arith.constant dense<0.000000e+00> : vector<8x128xf32>
      %115 = tpu.matmul %112, %114, %cst_58 {dimension_numbers = #tpu.dot_dimension_numbers<[1], [0], [0], [1], [0, 0, 1, 1], [], []>} : vector<8x128xf32>, vector<128x128xf32>, vector<8x128xf32> -> vector<8x128xf32>
      %c0_59 = arith.constant 0 : index
      %c0_60 = arith.constant 0 : index
      %116 = vector.load %arg13[%c0_59, %c0_60] : memref<8x128xf32, #tpu.memory_space<vmem>>, vector<8x128xf32>
      tpu.vector_store %arg13[%c0_59, %c0_60], %115 {strides = array<i32>} : memref<8x128xf32, #tpu.memory_space<vmem>>, vector<8x128xf32>,
      %c0_61 = arith.constant 0 : index
      %c0_62 = arith.constant 0 : index
      %c0_63 = arith.constant 0 : index
      %117 = vector.load %arg9[%c0_61, %c0_62, %c0_63] : memref<1x128x128xf32, #tpu.memory_space<vmem>>, vector<1x128x128xf32>
      %118 = vector.shape_cast %117 : vector<1x128x128xf32> to vector<128x128xf32>
      %cst_64 = arith.constant dense<0.000000e+00> : vector<8x128xf32>
      %119 = tpu.matmul %112, %118, %cst_64 {dimension_numbers = #tpu.dot_dimension_numbers<[1], [0], [0], [1], [0, 0, 1, 1], [], []>} : vector<8x128xf32>, vector<128x128xf32>, vector<8x128xf32> -> vector<8x128xf32>
      %c0_65 = arith.constant 0 : index
      %c0_66 = arith.constant 0 : index
      %120 = vector.load %arg14[%c0_65, %c0_66] : memref<8x128xf32, #tpu.memory_space<vmem>>, vector<8x128xf32>
      tpu.vector_store %arg14[%c0_65, %c0_66], %119 {strides = array<i32>} : memref<8x128xf32, #tpu.memory_space<vmem>>, vector<8x128xf32>,
    } else {
    }
    %c0_6 = arith.constant 0 : index
    %c0_7 = arith.constant 0 : index
    %c0_8 = arith.constant 0 : index
    %c0_9 = arith.constant 0 : index
    %7 = vector.load %arg5[%c0_6, %c0_7, %c0_8, %c0_9] : memref<1x1x8x128xf32, #tpu.memory_space<vmem>>, vector<1x1x8x128xf32>
    %8 = vector.shape_cast %7 : vector<1x1x8x128xf32> to vector<8x128xf32>
    %cst = arith.constant dense<0.000000e+00> : vector<8xf32>
    %9 = vector.multi_reduction <add>, %8, %cst [1] : vector<8x128xf32> to vector<8xf32>
    %10 = vector.shape_cast %9 : vector<8xf32> to vector<8x1xf32>
    %cst_10 = arith.constant 1.280000e+02 : f32
    %11 = vector.broadcast %cst_10 : f32 to vector<8x1xf32>
    %12 = arith.divf %10, %11 : vector<8x1xf32>
    %13 = vector.broadcast %12 : vector<8x1xf32> to vector<8x128xf32>
    %14 = arith.subf %8, %13 : vector<8x128xf32>
    %15 = arith.mulf %14, %14 : vector<8x128xf32>
    %cst_11 = arith.constant dense<0.000000e+00> : vector<8xf32>
    %16 = vector.multi_reduction <add>, %15, %cst_11 [1] : vector<8x128xf32> to vector<8xf32>
    %17 = vector.shape_cast %16 : vector<8xf32> to vector<8x1xf32>
    %cst_12 = arith.constant 1.280000e+02 : f32
    %18 = vector.broadcast %cst_12 : f32 to vector<8x1xf32>
    %19 = arith.divf %17, %18 : vector<8x1xf32>
    %cst_13 = arith.constant 9.99999974E-6 : f32
    %20 = vector.broadcast %cst_13 : f32 to vector<8x1xf32>
    %21 = arith.addf %19, %20 : vector<8x1xf32>
    %22 = math.rsqrt %21 : vector<8x1xf32>
    %23 = vector.broadcast %22 : vector<8x1xf32> to vector<8x128xf32>
    %24 = arith.mulf %14, %23 : vector<8x128xf32>
    %25 = vector.broadcast %1 : vector<1x128xf32> to vector<8x128xf32>
    %26 = arith.mulf %24, %25 : vector<8x128xf32>
    %27 = vector.broadcast %3 : vector<1x128xf32> to vector<8x128xf32>
    %28 = arith.addf %26, %27 : vector<8x128xf32>
    %c0_14 = arith.constant 0 : index
    %c0_15 = arith.constant 0 : index
    %29 = vector.load %arg13[%c0_14, %c0_15] : memref<8x128xf32, #tpu.memory_space<vmem>>, vector<8x128xf32>
    %c0_16 = arith.constant 0 : index
    %c0_17 = arith.constant 0 : index
    %30 = vector.load %arg14[%c0_16, %c0_17] : memref<8x128xf32, #tpu.memory_space<vmem>>, vector<8x128xf32>
    %c0_18 = arith.constant 0 : index
    %c0_19 = arith.constant 0 : index
    %c0_20 = arith.constant 0 : index
    %31 = vector.load %arg7[%c0_18, %c0_19, %c0_20] : memref<1x128x128xf32, #tpu.memory_space<vmem>>, vector<1x128x128xf32>
    %32 = vector.shape_cast %31 : vector<1x128x128xf32> to vector<128x128xf32>
    %c0_21 = arith.constant 0 : index
    %c0_22 = arith.constant 0 : index
    %c0_23 = arith.constant 0 : index
    %33 = vector.load %arg10[%c0_21, %c0_22, %c0_23] : memref<1x128x128xf32, #tpu.memory_space<vmem>>, vector<1x128x128xf32>
    %34 = vector.shape_cast %33 : vector<1x128x128xf32> to vector<128x128xf32>
    %c0_24 = arith.constant 0 : index
    %c0_25 = arith.constant 0 : index
    %c0_26 = arith.constant 0 : index
    %35 = vector.load %arg11[%c0_24, %c0_25, %c0_26] : memref<1x1x128xf32, #tpu.memory_space<vmem>>, vector<1x1x128xf32>
    %36 = vector.shape_cast %35 : vector<1x1x128xf32> to vector<1x128xf32>
    %cst_27 = arith.constant dense<0.000000e+00> : vector<8x128xf32>
    %37 = tpu.matmul %28, %32, %cst_27 {dimension_numbers = #tpu.dot_dimension_numbers<[1], [0], [0], [1], [0, 0, 1, 1], [], []>} : vector<8x128xf32>, vector<128x128xf32>, vector<8x128xf32> -> vector<8x128xf32>
    %cst_28 = arith.constant 0.0883883461 : f32
    %38 = vector.broadcast %cst_28 : f32 to vector<8x128xf32>
    %39 = arith.mulf %37, %38 : vector<8x128xf32>
    %cst_29 = arith.constant 0.000000e+00 : f32
    %40 = vector.broadcast %cst_29 : f32 to vector<8x128xf32>
    %41 = vector.extract_strided_slice %39 {offsets = [0, 0], sizes = [8, 64], strides = [1, 1]} : vector<8x128xf32> to vector<8x64xf32>
    %42 = vector.extract_strided_slice %29 {offsets = [0, 0], sizes = [8, 64], strides = [1, 1]} : vector<8x128xf32> to vector<8x64xf32>
    %43 = vector.extract_strided_slice %30 {offsets = [0, 0], sizes = [8, 64], strides = [1, 1]} : vector<8x128xf32> to vector<8x64xf32>
    %cst_30 = arith.constant dense<0.000000e+00> : vector<8x8xf32>
    %44 = tpu.matmul %41, %42, %cst_30 {dimension_numbers = #tpu.dot_dimension_numbers<[1], [1], [0], [0], [0, 0, 1, 0], [], []>} : vector<8x64xf32>, vector<8x64xf32>, vector<8x8xf32> -> vector<8x8xf32>
    %cst_31 = arith.constant dense<0xFF800000> : vector<8xf32>
    %45 = vector.multi_reduction <maximumf>, %44, %cst_31 [1] : vector<8x8xf32> to vector<8xf32>
    %46 = vector.shape_cast %45 : vector<8xf32> to vector<8x1xf32>
    %47 = vector.broadcast %46 : vector<8x1xf32> to vector<8x8xf32>
    %48 = arith.subf %44, %47 : vector<8x8xf32>
    %49 = math.exp %48 : vector<8x8xf32>
    %cst_32 = arith.constant dense<0.000000e+00> : vector<8xf32>
    %50 = vector.multi_reduction <add>, %49, %cst_32 [1] : vector<8x8xf32> to vector<8xf32>
    %51 = vector.shape_cast %50 : vector<8xf32> to vector<8x1xf32>
    %cst_33 = arith.constant dense<0.000000e+00> : vector<8x64xf32>
    %52 = tpu.matmul %49, %43, %cst_33 {dimension_numbers = #tpu.dot_dimension_numbers<[1], [0], [0], [1], [0, 0, 1, 1], [], []>} : vector<8x8xf32>, vector<8x64xf32>, vector<8x64xf32> -> vector<8x64xf32>
    %53 = tpu.reciprocal %51 {approx = true} : vector<8x1xf32> -> vector<8x1xf32>
    %54 = arith.mulf %51, %53 : vector<8x1xf32>
    %cst_34 = arith.constant 2.000000e+00 : f32
    %55 = vector.broadcast %cst_34 : f32 to vector<8x1xf32>
    %56 = arith.subf %55, %54 : vector<8x1xf32>
    %57 = arith.mulf %53, %56 : vector<8x1xf32>
    %58 = vector.broadcast %57 : vector<8x1xf32> to vector<8x64xf32>
    %59 = arith.mulf %52, %58 : vector<8x64xf32>
    %60 = vector.extract_strided_slice %34 {offsets = [0, 0], sizes = [64, 128], strides = [1, 1]} : vector<128x128xf32> to vector<64x128xf32>
    %cst_35 = arith.constant dense<0.000000e+00> : vector<8x128xf32>
    %61 = tpu.matmul %59, %60, %cst_35 {dimension_numbers = #tpu.dot_dimension_numbers<[1], [0], [0], [1], [0, 0, 1, 1], [], []>} : vector<8x64xf32>, vector<64x128xf32>, vector<8x128xf32> -> vector<8x128xf32>
    %62 = arith.addf %40, %61 : vector<8x128xf32>
    %63 = vector.extract_strided_slice %39 {offsets = [0, 64], sizes = [8, 64], strides = [1, 1]} : vector<8x128xf32> to vector<8x64xf32>
    %64 = vector.extract_strided_slice %29 {offsets = [0, 64], sizes = [8, 64], strides = [1, 1]} : vector<8x128xf32> to vector<8x64xf32>
    %65 = vector.extract_strided_slice %30 {offsets = [0, 64], sizes = [8, 64], strides = [1, 1]} : vector<8x128xf32> to vector<8x64xf32>
    %cst_36 = arith.constant dense<0.000000e+00> : vector<8x8xf32>
    %66 = tpu.matmul %63, %64, %cst_36 {dimension_numbers = #tpu.dot_dimension_numbers<[1], [1], [0], [0], [0, 0, 1, 0], [], []>} : vector<8x64xf32>, vector<8x64xf32>, vector<8x8xf32> -> vector<8x8xf32>
    %cst_37 = arith.constant dense<0xFF800000> : vector<8xf32>
    %67 = vector.multi_reduction <maximumf>, %66, %cst_37 [1] : vector<8x8xf32> to vector<8xf32>
    %68 = vector.shape_cast %67 : vector<8xf32> to vector<8x1xf32>
    %69 = vector.broadcast %68 : vector<8x1xf32> to vector<8x8xf32>
    %70 = arith.subf %66, %69 : vector<8x8xf32>
    %71 = math.exp %70 : vector<8x8xf32>
    %cst_38 = arith.constant dense<0.000000e+00> : vector<8xf32>
    %72 = vector.multi_reduction <add>, %71, %cst_38 [1] : vector<8x8xf32> to vector<8xf32>
    %73 = vector.shape_cast %72 : vector<8xf32> to vector<8x1xf32>
    %cst_39 = arith.constant dense<0.000000e+00> : vector<8x64xf32>
    %74 = tpu.matmul %71, %65, %cst_39 {dimension_numbers = #tpu.dot_dimension_numbers<[1], [0], [0], [1], [0, 0, 1, 1], [], []>} : vector<8x8xf32>, vector<8x64xf32>, vector<8x64xf32> -> vector<8x64xf32>
    %75 = tpu.reciprocal %73 {approx = true} : vector<8x1xf32> -> vector<8x1xf32>
    %76 = arith.mulf %73, %75 : vector<8x1xf32>
    %cst_40 = arith.constant 2.000000e+00 : f32
    %77 = vector.broadcast %cst_40 : f32 to vector<8x1xf32>
    %78 = arith.subf %77, %76 : vector<8x1xf32>
    %79 = arith.mulf %75, %78 : vector<8x1xf32>
    %80 = vector.broadcast %79 : vector<8x1xf32> to vector<8x64xf32>
    %81 = arith.mulf %74, %80 : vector<8x64xf32>
    %82 = vector.extract_strided_slice %34 {offsets = [64, 0], sizes = [64, 128], strides = [1, 1]} : vector<128x128xf32> to vector<64x128xf32>
    %cst_41 = arith.constant dense<0.000000e+00> : vector<8x128xf32>
    %83 = tpu.matmul %81, %82, %cst_41 {dimension_numbers = #tpu.dot_dimension_numbers<[1], [0], [0], [1], [0, 0, 1, 1], [], []>} : vector<8x64xf32>, vector<64x128xf32>, vector<8x128xf32> -> vector<8x128xf32>
    %84 = arith.addf %62, %83 : vector<8x128xf32>
    %85 = vector.broadcast %36 : vector<1x128xf32> to vector<8x128xf32>
    %86 = arith.addf %84, %85 : vector<8x128xf32>
    %87 = arith.addf %8, %86 : vector<8x128xf32>
    %c0_42 = arith.constant 0 : index
    %c0_43 = arith.constant 0 : index
    %c0_44 = arith.constant 0 : index
    %c0_45 = arith.constant 0 : index
    %88 = vector.load %arg12[%c0_42, %c0_43, %c0_44, %c0_45] : memref<1x1x8x128xf32, #tpu.memory_space<vmem>>, vector<1x1x8x128xf32>
    %89 = vector.shape_cast %88 : vector<1x1x8x128xf32> to vector<8x128xf32>
    %90 = vector.shape_cast %87 : vector<8x128xf32> to vector<1x1x8x128xf32>
    tpu.vector_store %arg12[%c0_42, %c0_43, %c0_44, %c0_45], %90 {strides = array<i32>} : memref<1x1x8x128xf32, #tpu.memory_space<vmem>>, vector<1x1x8x128xf32>,
    return
  }
  func.func @transform_0(%arg0: i32, %arg1: i32, %arg2: i32) -> (i32, i32, i32) {
    %c0_i32 = arith.constant 0 : i32
    %c0_i32_0 = arith.constant 0 : i32
    %c0_i32_1 = arith.constant 0 : i32
    return %arg0, %c0_i32, %c0_i32_0 : i32, i32, i32
  }
  func.func @transform_1(%arg0: i32, %arg1: i32, %arg2: i32) -> (i32, i32, i32) {
    %c0_i32 = arith.constant 0 : i32
    %c0_i32_0 = arith.constant 0 : i32
    %c0_i32_1 = arith.constant 0 : i32
    return %arg0, %c0_i32, %c0_i32_0 : i32, i32, i32
  }
  func.func @transform_2(%arg0: i32, %arg1: i32, %arg2: i32) -> (i32, i32, i32, i32) {
    %c0_i32 = arith.constant 0 : i32
    %c0_i32_0 = arith.constant 0 : i32
    return %arg0, %arg1, %arg2, %c0_i32 : i32, i32, i32, i32
  }
  func.func @transform_3(%arg0: i32, %arg1: i32, %arg2: i32) -> (i32, i32, i32, i32) {
    %c0_i32 = arith.constant 0 : i32
    %c0_i32_0 = arith.constant 0 : i32
    %c0_i32_1 = arith.constant 0 : i32
    return %arg0, %arg1, %c0_i32, %c0_i32_0 : i32, i32, i32, i32
  }
  func.func @transform_4(%arg0: i32, %arg1: i32, %arg2: i32) -> (i32, i32, i32) {
    %c0_i32 = arith.constant 0 : i32
    %c0_i32_0 = arith.constant 0 : i32
    %c0_i32_1 = arith.constant 0 : i32
    return %arg0, %c0_i32, %c0_i32_0 : i32, i32, i32
  }
  func.func @transform_5(%arg0: i32, %arg1: i32, %arg2: i32) -> (i32, i32, i32) {
    %c0_i32 = arith.constant 0 : i32
    %c0_i32_0 = arith.constant 0 : i32
    %c0_i32_1 = arith.constant 0 : i32
    return %arg0, %c0_i32, %c0_i32_0 : i32, i32, i32
  }
  func.func @transform_6(%arg0: i32, %arg1: i32, %arg2: i32) -> (i32, i32, i32) {
    %c0_i32 = arith.constant 0 : i32
    %c0_i32_0 = arith.constant 0 : i32
    %c0_i32_1 = arith.constant 0 : i32
    return %arg0, %c0_i32, %c0_i32_0 : i32, i32, i32
  }
  func.func @transform_7(%arg0: i32, %arg1: i32, %arg2: i32) -> (i32, i32, i32) {
    %c0_i32 = arith.constant 0 : i32
    %c0_i32_0 = arith.constant 0 : i32
    %c0_i32_1 = arith.constant 0 : i32
    return %arg0, %c0_i32, %c0_i32_0 : i32, i32, i32
  }
  func.func @transform_8(%arg0: i32, %arg1: i32, %arg2: i32) -> (i32, i32, i32) {
    %c0_i32 = arith.constant 0 : i32
    %c0_i32_0 = arith.constant 0 : i32
    %c0_i32_1 = arith.constant 0 : i32
    return %arg0, %c0_i32, %c0_i32_0 : i32, i32, i32
  }
  func.func @transform_9(%arg0: i32, %arg1: i32, %arg2: i32) -> (i32, i32, i32, i32) {
    %c0_i32 = arith.constant 0 : i32
    %c0_i32_0 = arith.constant 0 : i32
    return %arg0, %arg1, %arg2, %c0_i32 : i32, i32, i32, i32
  }
}

module attributes {stable_mosaic.version = 11 : i64} {
  func.func @_cross_ffn_kernel(%arg0: i32, %arg1: i32, %arg2: i32, %arg3: memref<1x1x128xf32, #tpu.memory_space<vmem>>, %arg4: memref<1x1x128xf32, #tpu.memory_space<vmem>>, %arg5: memref<1x1x8x128xf32, #tpu.memory_space<vmem>>, %arg6: memref<1x1x8x128xf32, #tpu.memory_space<vmem>>, %arg7: memref<1x128x128xf32, #tpu.memory_space<vmem>>, %arg8: memref<1x128x128xf32, #tpu.memory_space<vmem>>, %arg9: memref<1x128x128xf32, #tpu.memory_space<vmem>>, %arg10: memref<1x128x128xf32, #tpu.memory_space<vmem>>, %arg11: memref<1x1x128xf32, #tpu.memory_space<vmem>>, %arg12: memref<1x1x128xf32, #tpu.memory_space<vmem>>, %arg13: memref<1x1x128xf32, #tpu.memory_space<vmem>>, %arg14: memref<1x128x256xf32, #tpu.memory_space<vmem>>, %arg15: memref<1x1x256xf32, #tpu.memory_space<vmem>>, %arg16: memref<1x256x128xf32, #tpu.memory_space<vmem>>, %arg17: memref<1x1x128xf32, #tpu.memory_space<vmem>>, %arg18: memref<1x1x8x128xf32, #tpu.memory_space<vmem>>, %arg19: memref<8x128xf32, #tpu.memory_space<vmem>>, %arg20: memref<8x128xf32, #tpu.memory_space<vmem>>) attributes {dimension_semantics = [#tpu.dimension_semantics<parallel>, #tpu.dimension_semantics<parallel>, #tpu.dimension_semantics<arbitrary>], iteration_bounds = array<i64: 2, 2, 1>, scalar_prefetch = 0 : i64, scratch_operands = 2 : i64, tpu.core_type = #tpu.core_type<tc>, window_params = [{transform_indices = @transform_0, window_bounds = array<i64: 1, 1, 128>}, {transform_indices = @transform_1, window_bounds = array<i64: 1, 1, 128>}, {transform_indices = @transform_2, window_bounds = array<i64: 1, 1, 8, 128>}, {transform_indices = @transform_3, window_bounds = array<i64: 1, 1, 8, 128>}, {transform_indices = @transform_4, window_bounds = array<i64: 1, 128, 128>}, {transform_indices = @transform_5, window_bounds = array<i64: 1, 128, 128>}, {transform_indices = @transform_6, window_bounds = array<i64: 1, 128, 128>}, {transform_indices = @transform_7, window_bounds = array<i64: 1, 128, 128>}, {transform_indices = @transform_8, window_bounds = array<i64: 1, 1, 128>}, {transform_indices = @transform_9, window_bounds = array<i64: 1, 1, 128>}, {transform_indices = @transform_10, window_bounds = array<i64: 1, 1, 128>}, {transform_indices = @transform_11, window_bounds = array<i64: 1, 128, 256>}, {transform_indices = @transform_12, window_bounds = array<i64: 1, 1, 256>}, {transform_indices = @transform_13, window_bounds = array<i64: 1, 256, 128>}, {transform_indices = @transform_14, window_bounds = array<i64: 1, 1, 128>}, {transform_indices = @transform_15, window_bounds = array<i64: 1, 1, 8, 128>}]} {
    %c0 = arith.constant 0 : index
    %c0_0 = arith.constant 0 : index
    %c0_1 = arith.constant 0 : index
    %0 = vector.load %arg3[%c0, %c0_0, %c0_1] : memref<1x1x128xf32, #tpu.memory_space<vmem>>, vector<1x1x128xf32>
    %1 = vector.shape_cast %0 : vector<1x1x128xf32> to vector<1x128xf32>
    %c0_2 = arith.constant 0 : index
    %c0_3 = arith.constant 0 : index
    %c0_4 = arith.constant 0 : index
    %2 = vector.load %arg4[%c0_2, %c0_3, %c0_4] : memref<1x1x128xf32, #tpu.memory_space<vmem>>, vector<1x1x128xf32>
    %3 = vector.shape_cast %2 : vector<1x1x128xf32> to vector<1x128xf32>
    %c0_i32 = arith.constant 0 : i32
    %4 = arith.cmpi eq, %arg2, %c0_i32 : i32
    %5 = arith.extui %4 : i1 to i32
    %c0_i32_5 = arith.constant 0 : i32
    %6 = arith.cmpi ne, %5, %c0_i32_5 : i32
    scf.if %6 {
      %c0_86 = arith.constant 0 : index
      %c0_87 = arith.constant 0 : index
      %c0_88 = arith.constant 0 : index
      %c0_89 = arith.constant 0 : index
      %173 = vector.load %arg6[%c0_86, %c0_87, %c0_88, %c0_89] : memref<1x1x8x128xf32, #tpu.memory_space<vmem>>, vector<1x1x8x128xf32>
      %174 = vector.shape_cast %173 : vector<1x1x8x128xf32> to vector<8x128xf32>
      %cst_90 = arith.constant dense<0.000000e+00> : vector<8xf32>
      %175 = vector.multi_reduction <add>, %174, %cst_90 [1] : vector<8x128xf32> to vector<8xf32>
      %176 = vector.shape_cast %175 : vector<8xf32> to vector<8x1xf32>
      %cst_91 = arith.constant 1.280000e+02 : f32
      %177 = vector.broadcast %cst_91 : f32 to vector<8x1xf32>
      %178 = arith.divf %176, %177 : vector<8x1xf32>
      %179 = vector.broadcast %178 : vector<8x1xf32> to vector<8x128xf32>
      %180 = arith.subf %174, %179 : vector<8x128xf32>
      %181 = arith.mulf %180, %180 : vector<8x128xf32>
      %cst_92 = arith.constant dense<0.000000e+00> : vector<8xf32>
      %182 = vector.multi_reduction <add>, %181, %cst_92 [1] : vector<8x128xf32> to vector<8xf32>
      %183 = vector.shape_cast %182 : vector<8xf32> to vector<8x1xf32>
      %cst_93 = arith.constant 1.280000e+02 : f32
      %184 = vector.broadcast %cst_93 : f32 to vector<8x1xf32>
      %185 = arith.divf %183, %184 : vector<8x1xf32>
      %cst_94 = arith.constant 9.99999974E-6 : f32
      %186 = vector.broadcast %cst_94 : f32 to vector<8x1xf32>
      %187 = arith.addf %185, %186 : vector<8x1xf32>
      %188 = math.rsqrt %187 : vector<8x1xf32>
      %189 = vector.broadcast %188 : vector<8x1xf32> to vector<8x128xf32>
      %190 = arith.mulf %180, %189 : vector<8x128xf32>
      %191 = vector.broadcast %1 : vector<1x128xf32> to vector<8x128xf32>
      %192 = arith.mulf %190, %191 : vector<8x128xf32>
      %193 = vector.broadcast %3 : vector<1x128xf32> to vector<8x128xf32>
      %194 = arith.addf %192, %193 : vector<8x128xf32>
      %c0_95 = arith.constant 0 : index
      %c0_96 = arith.constant 0 : index
      %c0_97 = arith.constant 0 : index
      %195 = vector.load %arg8[%c0_95, %c0_96, %c0_97] : memref<1x128x128xf32, #tpu.memory_space<vmem>>, vector<1x128x128xf32>
      %196 = vector.shape_cast %195 : vector<1x128x128xf32> to vector<128x128xf32>
      %cst_98 = arith.constant dense<0.000000e+00> : vector<8x128xf32>
      %197 = tpu.matmul %194, %196, %cst_98 {dimension_numbers = #tpu.dot_dimension_numbers<[1], [0], [0], [1], [0, 0, 1, 1], [], []>} : vector<8x128xf32>, vector<128x128xf32>, vector<8x128xf32> -> vector<8x128xf32>
      %c0_99 = arith.constant 0 : index
      %c0_100 = arith.constant 0 : index
      %198 = vector.load %arg19[%c0_99, %c0_100] : memref<8x128xf32, #tpu.memory_space<vmem>>, vector<8x128xf32>
      tpu.vector_store %arg19[%c0_99, %c0_100], %197 {strides = array<i32>} : memref<8x128xf32, #tpu.memory_space<vmem>>, vector<8x128xf32>,
      %c0_101 = arith.constant 0 : index
      %c0_102 = arith.constant 0 : index
      %c0_103 = arith.constant 0 : index
      %199 = vector.load %arg9[%c0_101, %c0_102, %c0_103] : memref<1x128x128xf32, #tpu.memory_space<vmem>>, vector<1x128x128xf32>
      %200 = vector.shape_cast %199 : vector<1x128x128xf32> to vector<128x128xf32>
      %cst_104 = arith.constant dense<0.000000e+00> : vector<8x128xf32>
      %201 = tpu.matmul %194, %200, %cst_104 {dimension_numbers = #tpu.dot_dimension_numbers<[1], [0], [0], [1], [0, 0, 1, 1], [], []>} : vector<8x128xf32>, vector<128x128xf32>, vector<8x128xf32> -> vector<8x128xf32>
      %c0_105 = arith.constant 0 : index
      %c0_106 = arith.constant 0 : index
      %202 = vector.load %arg20[%c0_105, %c0_106] : memref<8x128xf32, #tpu.memory_space<vmem>>, vector<8x128xf32>
      tpu.vector_store %arg20[%c0_105, %c0_106], %201 {strides = array<i32>} : memref<8x128xf32, #tpu.memory_space<vmem>>, vector<8x128xf32>,
    } else {
    }
    %c0_6 = arith.constant 0 : index
    %c0_7 = arith.constant 0 : index
    %c0_8 = arith.constant 0 : index
    %c0_9 = arith.constant 0 : index
    %7 = vector.load %arg5[%c0_6, %c0_7, %c0_8, %c0_9] : memref<1x1x8x128xf32, #tpu.memory_space<vmem>>, vector<1x1x8x128xf32>
    %8 = vector.shape_cast %7 : vector<1x1x8x128xf32> to vector<8x128xf32>
    %cst = arith.constant dense<0.000000e+00> : vector<8xf32>
    %9 = vector.multi_reduction <add>, %8, %cst [1] : vector<8x128xf32> to vector<8xf32>
    %10 = vector.shape_cast %9 : vector<8xf32> to vector<8x1xf32>
    %cst_10 = arith.constant 1.280000e+02 : f32
    %11 = vector.broadcast %cst_10 : f32 to vector<8x1xf32>
    %12 = arith.divf %10, %11 : vector<8x1xf32>
    %13 = vector.broadcast %12 : vector<8x1xf32> to vector<8x128xf32>
    %14 = arith.subf %8, %13 : vector<8x128xf32>
    %15 = arith.mulf %14, %14 : vector<8x128xf32>
    %cst_11 = arith.constant dense<0.000000e+00> : vector<8xf32>
    %16 = vector.multi_reduction <add>, %15, %cst_11 [1] : vector<8x128xf32> to vector<8xf32>
    %17 = vector.shape_cast %16 : vector<8xf32> to vector<8x1xf32>
    %cst_12 = arith.constant 1.280000e+02 : f32
    %18 = vector.broadcast %cst_12 : f32 to vector<8x1xf32>
    %19 = arith.divf %17, %18 : vector<8x1xf32>
    %cst_13 = arith.constant 9.99999974E-6 : f32
    %20 = vector.broadcast %cst_13 : f32 to vector<8x1xf32>
    %21 = arith.addf %19, %20 : vector<8x1xf32>
    %22 = math.rsqrt %21 : vector<8x1xf32>
    %23 = vector.broadcast %22 : vector<8x1xf32> to vector<8x128xf32>
    %24 = arith.mulf %14, %23 : vector<8x128xf32>
    %25 = vector.broadcast %1 : vector<1x128xf32> to vector<8x128xf32>
    %26 = arith.mulf %24, %25 : vector<8x128xf32>
    %27 = vector.broadcast %3 : vector<1x128xf32> to vector<8x128xf32>
    %28 = arith.addf %26, %27 : vector<8x128xf32>
    %c0_14 = arith.constant 0 : index
    %c0_15 = arith.constant 0 : index
    %29 = vector.load %arg19[%c0_14, %c0_15] : memref<8x128xf32, #tpu.memory_space<vmem>>, vector<8x128xf32>
    %c0_16 = arith.constant 0 : index
    %c0_17 = arith.constant 0 : index
    %30 = vector.load %arg20[%c0_16, %c0_17] : memref<8x128xf32, #tpu.memory_space<vmem>>, vector<8x128xf32>
    %c0_18 = arith.constant 0 : index
    %c0_19 = arith.constant 0 : index
    %c0_20 = arith.constant 0 : index
    %31 = vector.load %arg7[%c0_18, %c0_19, %c0_20] : memref<1x128x128xf32, #tpu.memory_space<vmem>>, vector<1x128x128xf32>
    %32 = vector.shape_cast %31 : vector<1x128x128xf32> to vector<128x128xf32>
    %c0_21 = arith.constant 0 : index
    %c0_22 = arith.constant 0 : index
    %c0_23 = arith.constant 0 : index
    %33 = vector.load %arg10[%c0_21, %c0_22, %c0_23] : memref<1x128x128xf32, #tpu.memory_space<vmem>>, vector<1x128x128xf32>
    %34 = vector.shape_cast %33 : vector<1x128x128xf32> to vector<128x128xf32>
    %c0_24 = arith.constant 0 : index
    %c0_25 = arith.constant 0 : index
    %c0_26 = arith.constant 0 : index
    %35 = vector.load %arg11[%c0_24, %c0_25, %c0_26] : memref<1x1x128xf32, #tpu.memory_space<vmem>>, vector<1x1x128xf32>
    %36 = vector.shape_cast %35 : vector<1x1x128xf32> to vector<1x128xf32>
    %cst_27 = arith.constant dense<0.000000e+00> : vector<8x128xf32>
    %37 = tpu.matmul %28, %32, %cst_27 {dimension_numbers = #tpu.dot_dimension_numbers<[1], [0], [0], [1], [0, 0, 1, 1], [], []>} : vector<8x128xf32>, vector<128x128xf32>, vector<8x128xf32> -> vector<8x128xf32>
    %cst_28 = arith.constant 0.0883883461 : f32
    %38 = vector.broadcast %cst_28 : f32 to vector<8x128xf32>
    %39 = arith.mulf %37, %38 : vector<8x128xf32>
    %cst_29 = arith.constant 0.000000e+00 : f32
    %40 = vector.broadcast %cst_29 : f32 to vector<8x128xf32>
    %41 = vector.extract_strided_slice %39 {offsets = [0, 0], sizes = [8, 64], strides = [1, 1]} : vector<8x128xf32> to vector<8x64xf32>
    %42 = vector.extract_strided_slice %29 {offsets = [0, 0], sizes = [8, 64], strides = [1, 1]} : vector<8x128xf32> to vector<8x64xf32>
    %43 = vector.extract_strided_slice %30 {offsets = [0, 0], sizes = [8, 64], strides = [1, 1]} : vector<8x128xf32> to vector<8x64xf32>
    %cst_30 = arith.constant dense<0.000000e+00> : vector<8x8xf32>
    %44 = tpu.matmul %41, %42, %cst_30 {dimension_numbers = #tpu.dot_dimension_numbers<[1], [1], [0], [0], [0, 0, 1, 0], [], []>} : vector<8x64xf32>, vector<8x64xf32>, vector<8x8xf32> -> vector<8x8xf32>
    %cst_31 = arith.constant dense<0xFF800000> : vector<8xf32>
    %45 = vector.multi_reduction <maximumf>, %44, %cst_31 [1] : vector<8x8xf32> to vector<8xf32>
    %46 = vector.shape_cast %45 : vector<8xf32> to vector<8x1xf32>
    %47 = vector.broadcast %46 : vector<8x1xf32> to vector<8x8xf32>
    %48 = arith.subf %44, %47 : vector<8x8xf32>
    %49 = math.exp %48 : vector<8x8xf32>
    %cst_32 = arith.constant dense<0.000000e+00> : vector<8xf32>
    %50 = vector.multi_reduction <add>, %49, %cst_32 [1] : vector<8x8xf32> to vector<8xf32>
    %51 = vector.shape_cast %50 : vector<8xf32> to vector<8x1xf32>
    %cst_33 = arith.constant dense<0.000000e+00> : vector<8x64xf32>
    %52 = tpu.matmul %49, %43, %cst_33 {dimension_numbers = #tpu.dot_dimension_numbers<[1], [0], [0], [1], [0, 0, 1, 1], [], []>} : vector<8x8xf32>, vector<8x64xf32>, vector<8x64xf32> -> vector<8x64xf32>
    %53 = tpu.reciprocal %51 {approx = true} : vector<8x1xf32> -> vector<8x1xf32>
    %54 = arith.mulf %51, %53 : vector<8x1xf32>
    %cst_34 = arith.constant 2.000000e+00 : f32
    %55 = vector.broadcast %cst_34 : f32 to vector<8x1xf32>
    %56 = arith.subf %55, %54 : vector<8x1xf32>
    %57 = arith.mulf %53, %56 : vector<8x1xf32>
    %58 = vector.broadcast %57 : vector<8x1xf32> to vector<8x64xf32>
    %59 = arith.mulf %52, %58 : vector<8x64xf32>
    %60 = vector.extract_strided_slice %34 {offsets = [0, 0], sizes = [64, 128], strides = [1, 1]} : vector<128x128xf32> to vector<64x128xf32>
    %cst_35 = arith.constant dense<0.000000e+00> : vector<8x128xf32>
    %61 = tpu.matmul %59, %60, %cst_35 {dimension_numbers = #tpu.dot_dimension_numbers<[1], [0], [0], [1], [0, 0, 1, 1], [], []>} : vector<8x64xf32>, vector<64x128xf32>, vector<8x128xf32> -> vector<8x128xf32>
    %62 = arith.addf %40, %61 : vector<8x128xf32>
    %63 = vector.extract_strided_slice %39 {offsets = [0, 64], sizes = [8, 64], strides = [1, 1]} : vector<8x128xf32> to vector<8x64xf32>
    %64 = vector.extract_strided_slice %29 {offsets = [0, 64], sizes = [8, 64], strides = [1, 1]} : vector<8x128xf32> to vector<8x64xf32>
    %65 = vector.extract_strided_slice %30 {offsets = [0, 64], sizes = [8, 64], strides = [1, 1]} : vector<8x128xf32> to vector<8x64xf32>
    %cst_36 = arith.constant dense<0.000000e+00> : vector<8x8xf32>
    %66 = tpu.matmul %63, %64, %cst_36 {dimension_numbers = #tpu.dot_dimension_numbers<[1], [1], [0], [0], [0, 0, 1, 0], [], []>} : vector<8x64xf32>, vector<8x64xf32>, vector<8x8xf32> -> vector<8x8xf32>
    %cst_37 = arith.constant dense<0xFF800000> : vector<8xf32>
    %67 = vector.multi_reduction <maximumf>, %66, %cst_37 [1] : vector<8x8xf32> to vector<8xf32>
    %68 = vector.shape_cast %67 : vector<8xf32> to vector<8x1xf32>
    %69 = vector.broadcast %68 : vector<8x1xf32> to vector<8x8xf32>
    %70 = arith.subf %66, %69 : vector<8x8xf32>
    %71 = math.exp %70 : vector<8x8xf32>
    %cst_38 = arith.constant dense<0.000000e+00> : vector<8xf32>
    %72 = vector.multi_reduction <add>, %71, %cst_38 [1] : vector<8x8xf32> to vector<8xf32>
    %73 = vector.shape_cast %72 : vector<8xf32> to vector<8x1xf32>
    %cst_39 = arith.constant dense<0.000000e+00> : vector<8x64xf32>
    %74 = tpu.matmul %71, %65, %cst_39 {dimension_numbers = #tpu.dot_dimension_numbers<[1], [0], [0], [1], [0, 0, 1, 1], [], []>} : vector<8x8xf32>, vector<8x64xf32>, vector<8x64xf32> -> vector<8x64xf32>
    %75 = tpu.reciprocal %73 {approx = true} : vector<8x1xf32> -> vector<8x1xf32>
    %76 = arith.mulf %73, %75 : vector<8x1xf32>
    %cst_40 = arith.constant 2.000000e+00 : f32
    %77 = vector.broadcast %cst_40 : f32 to vector<8x1xf32>
    %78 = arith.subf %77, %76 : vector<8x1xf32>
    %79 = arith.mulf %75, %78 : vector<8x1xf32>
    %80 = vector.broadcast %79 : vector<8x1xf32> to vector<8x64xf32>
    %81 = arith.mulf %74, %80 : vector<8x64xf32>
    %82 = vector.extract_strided_slice %34 {offsets = [64, 0], sizes = [64, 128], strides = [1, 1]} : vector<128x128xf32> to vector<64x128xf32>
    %cst_41 = arith.constant dense<0.000000e+00> : vector<8x128xf32>
    %83 = tpu.matmul %81, %82, %cst_41 {dimension_numbers = #tpu.dot_dimension_numbers<[1], [0], [0], [1], [0, 0, 1, 1], [], []>} : vector<8x64xf32>, vector<64x128xf32>, vector<8x128xf32> -> vector<8x128xf32>
    %84 = arith.addf %62, %83 : vector<8x128xf32>
    %85 = vector.broadcast %36 : vector<1x128xf32> to vector<8x128xf32>
    %86 = arith.addf %84, %85 : vector<8x128xf32>
    %87 = arith.addf %8, %86 : vector<8x128xf32>
    %c0_42 = arith.constant 0 : index
    %c0_43 = arith.constant 0 : index
    %c0_44 = arith.constant 0 : index
    %88 = vector.load %arg12[%c0_42, %c0_43, %c0_44] : memref<1x1x128xf32, #tpu.memory_space<vmem>>, vector<1x1x128xf32>
    %89 = vector.shape_cast %88 : vector<1x1x128xf32> to vector<1x128xf32>
    %c0_45 = arith.constant 0 : index
    %c0_46 = arith.constant 0 : index
    %c0_47 = arith.constant 0 : index
    %90 = vector.load %arg13[%c0_45, %c0_46, %c0_47] : memref<1x1x128xf32, #tpu.memory_space<vmem>>, vector<1x1x128xf32>
    %91 = vector.shape_cast %90 : vector<1x1x128xf32> to vector<1x128xf32>
    %cst_48 = arith.constant dense<0.000000e+00> : vector<8xf32>
    %92 = vector.multi_reduction <add>, %87, %cst_48 [1] : vector<8x128xf32> to vector<8xf32>
    %93 = vector.shape_cast %92 : vector<8xf32> to vector<8x1xf32>
    %cst_49 = arith.constant 1.280000e+02 : f32
    %94 = vector.broadcast %cst_49 : f32 to vector<8x1xf32>
    %95 = arith.divf %93, %94 : vector<8x1xf32>
    %96 = vector.broadcast %95 : vector<8x1xf32> to vector<8x128xf32>
    %97 = arith.subf %87, %96 : vector<8x128xf32>
    %98 = arith.mulf %97, %97 : vector<8x128xf32>
    %cst_50 = arith.constant dense<0.000000e+00> : vector<8xf32>
    %99 = vector.multi_reduction <add>, %98, %cst_50 [1] : vector<8x128xf32> to vector<8xf32>
    %100 = vector.shape_cast %99 : vector<8xf32> to vector<8x1xf32>
    %cst_51 = arith.constant 1.280000e+02 : f32
    %101 = vector.broadcast %cst_51 : f32 to vector<8x1xf32>
    %102 = arith.divf %100, %101 : vector<8x1xf32>
    %cst_52 = arith.constant 9.99999974E-6 : f32
    %103 = vector.broadcast %cst_52 : f32 to vector<8x1xf32>
    %104 = arith.addf %102, %103 : vector<8x1xf32>
    %105 = math.rsqrt %104 : vector<8x1xf32>
    %106 = vector.broadcast %105 : vector<8x1xf32> to vector<8x128xf32>
    %107 = arith.mulf %97, %106 : vector<8x128xf32>
    %108 = vector.broadcast %89 : vector<1x128xf32> to vector<8x128xf32>
    %109 = arith.mulf %107, %108 : vector<8x128xf32>
    %110 = vector.broadcast %91 : vector<1x128xf32> to vector<8x128xf32>
    %111 = arith.addf %109, %110 : vector<8x128xf32>
    %c0_53 = arith.constant 0 : index
    %c0_54 = arith.constant 0 : index
    %c0_55 = arith.constant 0 : index
    %112 = vector.load %arg14[%c0_53, %c0_54, %c0_55] : memref<1x128x256xf32, #tpu.memory_space<vmem>>, vector<1x128x256xf32>
    %113 = vector.shape_cast %112 : vector<1x128x256xf32> to vector<128x256xf32>
    %cst_56 = arith.constant dense<0.000000e+00> : vector<8x256xf32>
    %114 = tpu.matmul %111, %113, %cst_56 {dimension_numbers = #tpu.dot_dimension_numbers<[1], [0], [0], [1], [0, 0, 1, 1], [], []>} : vector<8x128xf32>, vector<128x256xf32>, vector<8x256xf32> -> vector<8x256xf32>
    %c0_57 = arith.constant 0 : index
    %c0_58 = arith.constant 0 : index
    %c0_59 = arith.constant 0 : index
    %115 = vector.load %arg15[%c0_57, %c0_58, %c0_59] : memref<1x1x256xf32, #tpu.memory_space<vmem>>, vector<1x1x256xf32>
    %116 = vector.shape_cast %115 : vector<1x1x256xf32> to vector<1x256xf32>
    %117 = vector.broadcast %116 : vector<1x256xf32> to vector<8x256xf32>
    %118 = arith.addf %114, %117 : vector<8x256xf32>
    %cst_60 = arith.constant 5.000000e-01 : f32
    %119 = vector.broadcast %cst_60 : f32 to vector<8x256xf32>
    %120 = arith.mulf %119, %118 : vector<8x256xf32>
    %cst_61 = arith.constant 0.707106769 : f32
    %121 = vector.broadcast %cst_61 : f32 to vector<8x256xf32>
    %122 = arith.mulf %118, %121 : vector<8x256xf32>
    %123 = math.absf %122 : vector<8x256xf32>
    %cst_62 = arith.constant 0.327591091 : f32
    %124 = vector.broadcast %cst_62 : f32 to vector<8x256xf32>
    %125 = arith.mulf %124, %123 : vector<8x256xf32>
    %cst_63 = arith.constant 1.000000e+00 : f32
    %126 = vector.broadcast %cst_63 : f32 to vector<8x256xf32>
    %127 = arith.addf %126, %125 : vector<8x256xf32>
    %128 = tpu.reciprocal %127 {approx = true} : vector<8x256xf32> -> vector<8x256xf32>
    %129 = arith.mulf %127, %128 : vector<8x256xf32>
    %cst_64 = arith.constant 2.000000e+00 : f32
    %130 = vector.broadcast %cst_64 : f32 to vector<8x256xf32>
    %131 = arith.subf %130, %129 : vector<8x256xf32>
    %132 = arith.mulf %128, %131 : vector<8x256xf32>
    %cst_65 = arith.constant 1.06140542 : f32
    %133 = vector.broadcast %cst_65 : f32 to vector<8x256xf32>
    %134 = arith.mulf %133, %132 : vector<8x256xf32>
    %cst_66 = arith.constant -1.45315206 : f32
    %135 = vector.broadcast %cst_66 : f32 to vector<8x256xf32>
    %136 = arith.addf %134, %135 : vector<8x256xf32>
    %137 = arith.mulf %136, %132 : vector<8x256xf32>
    %cst_67 = arith.constant 1.42141378 : f32
    %138 = vector.broadcast %cst_67 : f32 to vector<8x256xf32>
    %139 = arith.addf %137, %138 : vector<8x256xf32>
    %140 = arith.mulf %139, %132 : vector<8x256xf32>
    %cst_68 = arith.constant -0.284496725 : f32
    %141 = vector.broadcast %cst_68 : f32 to vector<8x256xf32>
    %142 = arith.addf %140, %141 : vector<8x256xf32>
    %143 = arith.mulf %142, %132 : vector<8x256xf32>
    %cst_69 = arith.constant 0.254829586 : f32
    %144 = vector.broadcast %cst_69 : f32 to vector<8x256xf32>
    %145 = arith.addf %143, %144 : vector<8x256xf32>
    %146 = arith.mulf %145, %132 : vector<8x256xf32>
    %147 = arith.mulf %123, %123 : vector<8x256xf32>
    %cst_70 = arith.constant 0.000000e+00 : f32
    %148 = vector.broadcast %cst_70 : f32 to vector<8x256xf32>
    %149 = arith.subf %148, %147 : vector<8x256xf32>
    %150 = math.exp %149 : vector<8x256xf32>
    %151 = arith.mulf %146, %150 : vector<8x256xf32>
    %cst_71 = arith.constant 1.000000e+00 : f32
    %152 = vector.broadcast %cst_71 : f32 to vector<8x256xf32>
    %153 = arith.subf %152, %151 : vector<8x256xf32>
    %cst_72 = arith.constant 0.000000e+00 : f32
    %154 = vector.broadcast %cst_72 : f32 to vector<8x256xf32>
    %155 = arith.cmpf oge, %122, %154 : vector<8x256xf32>
    %cst_73 = arith.constant 0.000000e+00 : f32
    %156 = vector.broadcast %cst_73 : f32 to vector<8x256xf32>
    %157 = arith.subf %156, %153 : vector<8x256xf32>
    %158 = arith.select %155, %153, %157 : vector<8x256xi1>, vector<8x256xf32>
    %cst_74 = arith.constant 1.000000e+00 : f32
    %159 = vector.broadcast %cst_74 : f32 to vector<8x256xf32>
    %160 = arith.addf %159, %158 : vector<8x256xf32>
    %161 = arith.mulf %120, %160 : vector<8x256xf32>
    %c0_75 = arith.constant 0 : index
    %c0_76 = arith.constant 0 : index
    %c0_77 = arith.constant 0 : index
    %162 = vector.load %arg16[%c0_75, %c0_76, %c0_77] : memref<1x256x128xf32, #tpu.memory_space<vmem>>, vector<1x256x128xf32>
    %163 = vector.shape_cast %162 : vector<1x256x128xf32> to vector<256x128xf32>
    %cst_78 = arith.constant dense<0.000000e+00> : vector<8x128xf32>
    %164 = tpu.matmul %161, %163, %cst_78 {dimension_numbers = #tpu.dot_dimension_numbers<[1], [0], [0], [1], [0, 0, 1, 1], [], []>} : vector<8x256xf32>, vector<256x128xf32>, vector<8x128xf32> -> vector<8x128xf32>
    %165 = arith.addf %87, %164 : vector<8x128xf32>
    %c0_79 = arith.constant 0 : index
    %c0_80 = arith.constant 0 : index
    %c0_81 = arith.constant 0 : index
    %166 = vector.load %arg17[%c0_79, %c0_80, %c0_81] : memref<1x1x128xf32, #tpu.memory_space<vmem>>, vector<1x1x128xf32>
    %167 = vector.shape_cast %166 : vector<1x1x128xf32> to vector<1x128xf32>
    %168 = vector.broadcast %167 : vector<1x128xf32> to vector<8x128xf32>
    %169 = arith.addf %165, %168 : vector<8x128xf32>
    %c0_82 = arith.constant 0 : index
    %c0_83 = arith.constant 0 : index
    %c0_84 = arith.constant 0 : index
    %c0_85 = arith.constant 0 : index
    %170 = vector.load %arg18[%c0_82, %c0_83, %c0_84, %c0_85] : memref<1x1x8x128xf32, #tpu.memory_space<vmem>>, vector<1x1x8x128xf32>
    %171 = vector.shape_cast %170 : vector<1x1x8x128xf32> to vector<8x128xf32>
    %172 = vector.shape_cast %169 : vector<8x128xf32> to vector<1x1x8x128xf32>
    tpu.vector_store %arg18[%c0_82, %c0_83, %c0_84, %c0_85], %172 {strides = array<i32>} : memref<1x1x8x128xf32, #tpu.memory_space<vmem>>, vector<1x1x8x128xf32>,
    return
  }
  func.func @transform_0(%arg0: i32, %arg1: i32, %arg2: i32) -> (i32, i32, i32) {
    %c0_i32 = arith.constant 0 : i32
    %c0_i32_0 = arith.constant 0 : i32
    %c0_i32_1 = arith.constant 0 : i32
    return %arg0, %c0_i32, %c0_i32_0 : i32, i32, i32
  }
  func.func @transform_1(%arg0: i32, %arg1: i32, %arg2: i32) -> (i32, i32, i32) {
    %c0_i32 = arith.constant 0 : i32
    %c0_i32_0 = arith.constant 0 : i32
    %c0_i32_1 = arith.constant 0 : i32
    return %arg0, %c0_i32, %c0_i32_0 : i32, i32, i32
  }
  func.func @transform_2(%arg0: i32, %arg1: i32, %arg2: i32) -> (i32, i32, i32, i32) {
    %c0_i32 = arith.constant 0 : i32
    %c0_i32_0 = arith.constant 0 : i32
    return %arg0, %arg1, %arg2, %c0_i32 : i32, i32, i32, i32
  }
  func.func @transform_3(%arg0: i32, %arg1: i32, %arg2: i32) -> (i32, i32, i32, i32) {
    %c1_i32 = arith.constant 1 : i32
    %0 = arith.subi %c1_i32, %arg0 : i32
    %c0_i32 = arith.constant 0 : i32
    %c0_i32_0 = arith.constant 0 : i32
    %c0_i32_1 = arith.constant 0 : i32
    return %0, %arg1, %c0_i32, %c0_i32_0 : i32, i32, i32, i32
  }
  func.func @transform_4(%arg0: i32, %arg1: i32, %arg2: i32) -> (i32, i32, i32) {
    %c0_i32 = arith.constant 0 : i32
    %c0_i32_0 = arith.constant 0 : i32
    %c0_i32_1 = arith.constant 0 : i32
    return %arg0, %c0_i32, %c0_i32_0 : i32, i32, i32
  }
  func.func @transform_5(%arg0: i32, %arg1: i32, %arg2: i32) -> (i32, i32, i32) {
    %c0_i32 = arith.constant 0 : i32
    %c0_i32_0 = arith.constant 0 : i32
    %c0_i32_1 = arith.constant 0 : i32
    return %arg0, %c0_i32, %c0_i32_0 : i32, i32, i32
  }
  func.func @transform_6(%arg0: i32, %arg1: i32, %arg2: i32) -> (i32, i32, i32) {
    %c0_i32 = arith.constant 0 : i32
    %c0_i32_0 = arith.constant 0 : i32
    %c0_i32_1 = arith.constant 0 : i32
    return %arg0, %c0_i32, %c0_i32_0 : i32, i32, i32
  }
  func.func @transform_7(%arg0: i32, %arg1: i32, %arg2: i32) -> (i32, i32, i32) {
    %c0_i32 = arith.constant 0 : i32
    %c0_i32_0 = arith.constant 0 : i32
    %c0_i32_1 = arith.constant 0 : i32
    return %arg0, %c0_i32, %c0_i32_0 : i32, i32, i32
  }
  func.func @transform_8(%arg0: i32, %arg1: i32, %arg2: i32) -> (i32, i32, i32) {
    %c0_i32 = arith.constant 0 : i32
    %c0_i32_0 = arith.constant 0 : i32
    %c0_i32_1 = arith.constant 0 : i32
    return %arg0, %c0_i32, %c0_i32_0 : i32, i32, i32
  }
  func.func @transform_9(%arg0: i32, %arg1: i32, %arg2: i32) -> (i32, i32, i32) {
    %c0_i32 = arith.constant 0 : i32
    %c0_i32_0 = arith.constant 0 : i32
    %c0_i32_1 = arith.constant 0 : i32
    return %arg0, %c0_i32, %c0_i32_0 : i32, i32, i32
  }
  func.func @transform_10(%arg0: i32, %arg1: i32, %arg2: i32) -> (i32, i32, i32) {
    %c0_i32 = arith.constant 0 : i32
    %c0_i32_0 = arith.constant 0 : i32
    %c0_i32_1 = arith.constant 0 : i32
    return %arg0, %c0_i32, %c0_i32_0 : i32, i32, i32
  }
  func.func @transform_11(%arg0: i32, %arg1: i32, %arg2: i32) -> (i32, i32, i32) {
    %c0_i32 = arith.constant 0 : i32
    %c0_i32_0 = arith.constant 0 : i32
    %c0_i32_1 = arith.constant 0 : i32
    return %arg0, %c0_i32, %c0_i32_0 : i32, i32, i32
  }
  func.func @transform_12(%arg0: i32, %arg1: i32, %arg2: i32) -> (i32, i32, i32) {
    %c0_i32 = arith.constant 0 : i32
    %c0_i32_0 = arith.constant 0 : i32
    %c0_i32_1 = arith.constant 0 : i32
    return %arg0, %c0_i32, %c0_i32_0 : i32, i32, i32
  }
  func.func @transform_13(%arg0: i32, %arg1: i32, %arg2: i32) -> (i32, i32, i32) {
    %c0_i32 = arith.constant 0 : i32
    %c0_i32_0 = arith.constant 0 : i32
    %c0_i32_1 = arith.constant 0 : i32
    return %arg0, %c0_i32, %c0_i32_0 : i32, i32, i32
  }
  func.func @transform_14(%arg0: i32, %arg1: i32, %arg2: i32) -> (i32, i32, i32) {
    %c0_i32 = arith.constant 0 : i32
    %c0_i32_0 = arith.constant 0 : i32
    %c0_i32_1 = arith.constant 0 : i32
    return %arg0, %c0_i32, %c0_i32_0 : i32, i32, i32
  }
  func.func @transform_15(%arg0: i32, %arg1: i32, %arg2: i32) -> (i32, i32, i32, i32) {
    %c0_i32 = arith.constant 0 : i32
    %c0_i32_0 = arith.constant 0 : i32
    return %arg0, %arg1, %arg2, %c0_i32 : i32, i32, i32, i32
  }
}

</mosaic_0001>

<bundles_post_ra>
// kernel: dual_decoder_forward.4
= control target key start
LH: loop header
LB: loop body
LE: loop exit
PB: predicated region body
PF: predicated region fallthrough
CT: control target
= control target key end

     0   :  { %s3175_s0 = inlined_call_operand.hbm [shape: f32[2,1,128], index: 0, kind: input, shape index: {}]   ;;  %s3176_s1 = inlined_call_operand.hbm [shape: f32[2,1,128], index: 1, kind: input, shape index: {}]   ;;  %s3177_s2 = inlined_call_operand.vmem [shape: f32[2,2,8,128], index: 2, kind: input, shape index: {}, may-alias: {2,9}]   ;;  %s3178_s3 = inlined_call_operand.vmem [shape: f32[2,2,8,128], index: 3, kind: input, shape index: {}]   ;;  %s3179_s4 = inlined_call_operand.hbm [shape: f32[2,128,128], index: 4, kind: input, shape index: {}]   ;;  %s3180_s5 = inlined_call_operand.hbm [shape: f32[2,128,128], index: 5, kind: input, shape index: {}]   ;;  %s3181_s6 = inlined_call_operand.hbm [shape: f32[2,128,128], index: 6, kind: input, shape index: {}]   ;;  %s3182_s7 = inlined_call_operand.hbm [shape: f32[2,128,128], index: 7, kind: input, shape index: {}]   ;;  %s3183_s8 = inlined_call_operand.hbm [shape: f32[2,1,128], index: 8, kind: input, shape index: {}]   ;;  %s3184_s9 = inlined_call_operand.vmem [shape: f32[2,2,8,128], index: 9, kind: output, shape index: {}, may-alias: {2,9}]  }
   0x1   :  { %3198 = sst [smem:[#allocation25_spill]] %s3175_s0 }
   0x2   :  { %3199 = sst [smem:[#allocation26_spill]] %s3176_s1 }
   0x3   :  { %3200 = sst [smem:[#allocation27_spill]] %s3177_s2 }
   0x4   :  { %3201 = sst [smem:[#allocation28_spill]] %s3178_s3 }
   0x5   :  { %3202 = sst [smem:[#allocation29_spill]] %s3180_s5 }
   0x6   :  { %3203 = sst [smem:[#allocation30_spill]] %s3182_s7 }
   0x7   :  { %3204 = sst [smem:[#allocation31_spill]] %s3184_s9 }
   0x8   :  { %14 = vsyncpa [#allocation5], 0 }
   0x9   :  { %16 = vsyncpa [#allocation5 + $0x1], 0 }
   0xa   :  { %17 = vsyncpa [#allocation7], 0 }
   0xb   :  { %19 = vsyncpa [#allocation7 + $0x1], 0 }
   0xc   :  { %20 = vsyncpa [#allocation10], 0 }
   0xd   :  { %22 = vsyncpa [#allocation10 + $0x1], 0 }
   0xe   :  { %23 = vsyncpa [#allocation13], 0 }
   0xf   :  { %25 = vsyncpa [#allocation13 + $0x1], 0  ;;  %s2622_s30 = smov 0   ;;  %s2624_s10 = smov 0  }
  0x10   :  { %s2626_s11 = smov 0   ;;  %s2628_s12 = smov 0  }
  0x11   :  { %s2630_s13 = smov 0   ;;  %s2632_s14 = smov 0  }
  0x12   :  { %s2634_s15 = smov 0   ;;  %s2636_s16 = smov 0  }
  0x13 LB: > { %3205 = sst [smem:[#allocation19_spill]] %s2537_s11  ;;  %s3185_s17 = sadd.s32 4294967295, %s2557_s16   ;;  %s2557_s16 = sphi %s2636_s16, %s31_s16   ;;  %s2553_s15 = sphi %s2634_s15, %s3237_s15   ;;  %s2549_s14 = sphi %s2632_s14, %s3236_s14   ;;  %s2545_s13 = sphi %s2630_s13, %s3235_s13   ;;  %s2541_s12 = sphi %s2628_s12, %s3234_s12   ;;  %s2537_s11 = sphi %s2626_s11, %s3233_s11   ;;  %s2533_s10 = sphi %s2624_s10, %s3239_s10   ;;  %s2529_s30 = sphi %s2622_s30, %s3238_s30  }
  0x14   : > { %3206 = sst [smem:[#allocation20_spill]] %s2549_s14  ;;  %s46_s18 = sadd.s32 1, %s2549_s14 }
  0x15   : > { %3207 = sst [smem:[#allocation21_spill]] %s2553_s15  ;;  %p48_p0 = scmp.ge.s32.totalorder %s46_s18, 2 }
  0x16   : > { %s50_s19 = sadd.s32 1, %s2553_s15  ;;  %s57_s20 = sadd.s32 1, %s2537_s11 }
  0x17   : > { %p64_p1 = scmp.ne.s32.totalorder %s2537_s11, %s2533_s10  ;;  %s3241_s18 = smov (%p48_p0, %s46_s18), 0 }
  0x18   : > { %3208 = sst [smem:[#allocation22_spill]] %s3241_s18  ;;  %s3243_s19 = smov (!%p48_p0, %s50_s19), %s2553_s15 }
  0x19   : > { %p65_p2 = scmp.eq.s32.totalorder %s2557_s16, 0  ;;  %p70_p3 = scmp.ne.s32.totalorder %s2533_s10, %s2529_s30 }
  0x1a   : > { %p52_p4 = scmp.ge.s32.totalorder %s3243_s19, 2  ;;  %p71_p5 = scmp.eq.s32.totalorder %s3185_s17, 0 }
  0x1b   : > { %p66_p6 = por %p65_p2, %p64_p1  ;;  %p2186_p8 = scmp.lt.s32.totalorder %s2557_s16, 4 }
  0x1c   : > { %s3245_s19 = smov (%p52_p4, %s3243_s19), 0  ;;  %p2675_p7 = por %p71_p5, %p70_p3 }
  0x1d   : > { %3209 = sst [smem:[#allocation23_spill]] %s3245_s19  ;;  %s54_s22 = ssub.s32 %s2553_s15, %s3245_s19 }
  0x1e   : > { %s3210_s21 = scalar_select %p2675_p7, 1, 0 }
  0x1f   : > { %s2683_s23 = sand.u32 1, %s2537_s11   ;;  %p55_p9 = scmp.eq.s32.totalorder %s54_s22, 0 }
  0x20   : > { %s2686_s24 = sshll.u32 %s2553_s15, 4  ;;  %p2688_p10 = pnand %p2186_p8, %p66_p6 }
  0x21   : > { %s2693_s26 = sand.u32 1, %s2557_s16   ;;  %s3213_s1 = sld [smem:[#allocation26_spill]] }
  0x22   : > { %s3211_s25 = scalar_select %p2688_p10, 1, 0 }
  0x23   : > { %s2696_s27 = scalar_select %p55_p9, %s2537_s11, %s57_s20  }
  0x24   : > { %s358_s22 = scalar_lea.vmem [#allocation6], %s2683_s23  ;;  %p2712_p12 = pneg %p2688_p10 }
  0x25   : > { %3212 = sst [smem:[#allocation24_spill]] %s2696_s27  ;;  %s365_s17 = sshll.u32 %s358_s22, 4  ;;  %s2705_s17 = int_to_ptr.vmem [resolvable:$true] %s365_s17 }
  0x27   : > { %s2702_s30 = scalar_lea.hbm %s3213_s1, %s2686_s24  ;;  %s2274_s14 = scalar_lea.hbm %s3213_s1, 32 }
  0x28   : > { %s2269_s18 = scalar_lea.hbm %s2702_s30, 16  ;;  %p2275_p1 = scmp.lt.u32.totalorder %s2702_s30, %s3213_s1 }
  0x29   : > { %p2270_p11 = scmp.ne.s32.totalorder %s2702_s30, %s2269_s18  ;;  %p2276_p2 = scmp.lt.u32.totalorder %s2274_s14, %s2269_s18 }
  0x2a   : > { %p2278_p4 = scmp.lt.u32.totalorder %s2269_s18, %s2702_s30 }
  0x2b   : > { %p2272_p13 = pnand %p2712_p12, %p2270_p11  ;;  %p2277_p3 = por %p2276_p2, %p2275_p1 }
  0x2d   : > { %p2273_p0 = pneg %p2272_p13  ;;  %p2279_p5 = por %p2278_p4, %p2277_p3 }
  0x2f   : > { %p2280_p6 = pnand %p2279_p5, %p2273_p0 }
  0x31   : > { %2283 = shalt.err (!%p2280_p6)
}
  0x32   : > { %s2284_s19 = scalar_lea.vmem %s2705_s17, 16  ;;  %s2559_s28 = smov [#allocation6]  }
  0x33   : > { %p2285_p8 = scmp.ne.s32.totalorder %s2705_s17, %s2284_s19  ;;  %s2289_s29 = sshll.u32 %s2559_s28, 4  ;;  %s2290_s29 = int_to_ptr.vmem [resolvable:$false] %s2289_s29 }
  0x34   : > { %s2291_s27 = scalar_lea.vmem %s2290_s29, 32  ;;  %p2292_p13 = scmp.lt.s32.totalorder %s2705_s17, %s2290_s29 }
  0x35   : > { %p2287_p9 = pnand %p2285_p8, %p2712_p12  ;;  %p2293_p7 = scmp.lt.s32.totalorder %s2291_s27, %s2284_s19 }
  0x37   : > { %p2288_p11 = pneg %p2287_p9  ;;  %p2294_p1 = por %p2293_p7, %p2292_p13 }
  0x39   : > { %p2295_p2 = pnand %p2294_p1, %p2288_p11 }
  0x3b   : > { %2298 = shalt.err (!%p2295_p2)
}
  0x3c   : > { %s3215_s14 = scalar_lea.sflag [#allocation7], %s2693_s26  ;;  %p1786_p0 = scmp.ge.s32.totalorder %s2557_s16, 1 }
  0x3d   : > { %2170 = dma.hbm_to_vmem [thread:$0]  (!%p2688_p10), %s2702_s30, 16, %s2705_s17, %s3215_s14  }
  0x3e   : > { %p496_p3 = scmp.lt.s32.totalorder %s2557_s16, 5  ;;  %s2740_s18 = sshll.u32 %s2683_s23, 7 }
  0x3f   : > { %s2743_s19 = sshll.u32 %s2553_s15, 11  ;;  %s3217_s5 = sld [smem:[#allocation29_spill]] }
  0x40   : > { %p2745_p7 = pnand %p1786_p0, %p496_p3  ;;  %s422_s17 = scalar_lea.vmem [#allocation9], %s2740_s18 }
  0x41   : > { %s429_s30 = sshll.u32 %s422_s17, 4  ;;  %s3191_s14 = scalar_lea.sflag [#allocation10], %s2693_s26  ;;  %s2756_s30 = int_to_ptr.vmem [resolvable:$true] %s429_s30 }
  0x42   : > { %s3216_s22 = scalar_select %p2745_p7, 1, 0 }
  0x45   : > { %s2753_s27 = scalar_lea.hbm %s3217_s5, %s2743_s19  ;;  %s2304_s28 = scalar_lea.hbm %s3217_s5, 4096 }
  0x46   : > { %s2299_s1 = scalar_lea.hbm %s2753_s27, 2048  ;;  %p2305_p8 = scmp.lt.u32.totalorder %s2753_s27, %s3217_s5 }
  0x47   : > { %p2300_p4 = scmp.ne.s32.totalorder %s2753_s27, %s2299_s1  ;;  %p2306_p9 = scmp.lt.u32.totalorder %s2304_s28, %s2299_s1 }
  0x48   : > { %p2308_p13 = scmp.lt.u32.totalorder %s2299_s1, %s2753_s27 }
  0x49   : > { %p2302_p5 = pnand %p2300_p4, %p2712_p12  ;;  %p2307_p11 = por %p2306_p9, %p2305_p8 }
  0x4b   : > { %p2303_p6 = pneg %p2302_p5  ;;  %p2309_p1 = por %p2308_p13, %p2307_p11 }
  0x4d   : > { %p2310_p2 = pnand %p2309_p1, %p2303_p6 }
  0x4f   : > { %2313 = shalt.err (!%p2310_p2)
}
  0x50   : > { %s2314_s17 = scalar_lea.vmem %s2756_s30, 2048  ;;  %s2560_s11 = smov [#allocation9]  }
  0x51   : > { %p2315_p0 = scmp.ne.s32.totalorder %s2756_s30, %s2314_s17  ;;  %s2319_s15 = sshll.u32 %s2560_s11, 4  ;;  %s2320_s15 = int_to_ptr.vmem [resolvable:$false] %s2319_s15 }
  0x52   : > { %s2321_s9 = scalar_lea.vmem %s2320_s15, 4096  ;;  %p2322_p5 = scmp.lt.s32.totalorder %s2756_s30, %s2320_s15 }
  0x53   : > { %p2317_p3 = pnand %p2315_p0, %p2712_p12  ;;  %p2323_p7 = scmp.lt.s32.totalorder %s2321_s9, %s2314_s17 }
  0x55   : > { %p2318_p4 = pneg %p2317_p3  ;;  %p2324_p8 = por %p2323_p7, %p2322_p5 }
  0x57   : > { %p2325_p9 = pnand %p2324_p8, %p2318_p4 }
  0x59   : > { %2328 = shalt.err (!%p2325_p9)
}
  0x5a   : > { %s3193_s1 = smov 128   ;;  %s3195_s28 = smov 8  }
  0x5b   : > { %2176 = dma.hbm_to_vmem [thread:$0]  (!%p2688_p10), %s2753_s27, 2048, %s2756_s30, %s3191_s14, %s3193_s1, %s3193_s1, %s3195_s28  }
  0x5c   : > { %s3218_s7 = sld [smem:[#allocation30_spill]]  ;;  %s464_s15 = scalar_lea.vmem [#allocation12], %s2740_s18 }
  0x5d   : > { %s471_s9 = sshll.u32 %s464_s15, 4  ;;  %s3192_s5 = scalar_lea.sflag [#allocation13], %s2693_s26  ;;  %s2792_s9 = int_to_ptr.vmem [resolvable:$true] %s471_s9 }
  0x62   : > { %s2789_s11 = scalar_lea.hbm %s3218_s7, %s2743_s19  ;;  %s2334_s29 = scalar_lea.hbm %s3218_s7, 4096 }
  0x63   : > { %s2329_s2 = scalar_lea.hbm %s2789_s11, 2048  ;;  %p2335_p13 = scmp.lt.u32.totalorder %s2789_s11, %s3218_s7 }
  0x64   : > { %p2330_p7 = scmp.ne.s32.totalorder %s2789_s11, %s2329_s2  ;;  %p2336_p1 = scmp.lt.u32.totalorder %s2334_s29, %s2329_s2 }
  0x65   : > { %p2338_p0 = scmp.lt.u32.totalorder %s2329_s2, %s2789_s11 }
  0x66   : > { %p2332_p6 = pnand %p2330_p7, %p2712_p12  ;;  %p2337_p2 = por %p2336_p1, %p2335_p13 }
  0x68   : > { %p2333_p11 = pneg %p2332_p6  ;;  %p2339_p3 = por %p2338_p0, %p2337_p2 }
  0x6a   : > { %p2340_p4 = pnand %p2339_p3, %p2333_p11 }
  0x6c   : > { %2343 = shalt.err (!%p2340_p4)
}
  0x6d   : > { %s2344_s15 = scalar_lea.vmem %s2792_s9, 2048  ;;  %s2563_s27 = smov [#allocation12]  }
  0x6e   : > { %p2345_p5 = scmp.ne.s32.totalorder %s2792_s9, %s2344_s15  ;;  %s2349_s30 = sshll.u32 %s2563_s27, 4  ;;  %s2350_s30 = int_to_ptr.vmem [resolvable:$false] %s2349_s30 }
  0x6f   : > { %s2351_s14 = scalar_lea.vmem %s2350_s30, 4096  ;;  %p2352_p7 = scmp.lt.s32.totalorder %s2792_s9, %s2350_s30 }
  0x70   : > { %p2347_p8 = pnand %p2345_p5, %p2712_p12  ;;  %p2353_p6 = scmp.lt.s32.totalorder %s2351_s14, %s2344_s15 }
  0x72   : > { %p2348_p9 = pneg %p2347_p8  ;;  %p2354_p13 = por %p2353_p6, %p2352_p7 }
  0x74   : > { %p2355_p1 = pnand %p2354_p13, %p2348_p9 }
  0x76   : > { %2358 = shalt.err (!%p2355_p1)
}
  0x77   : > { %2182 = dma.hbm_to_vmem [thread:$0]  (!%p2688_p10), %s2789_s11, 2048, %s2792_s9, %s3192_s5, %s3193_s1, %s3193_s1, %s3195_s28  }
  0x78   : > { %s3219_s0 = sld [smem:[#allocation25_spill]]  ;;  %s341_s15 = scalar_lea.vmem [#allocation4], %s2683_s23 }
  0x79   : > { %s348_s27 = sshll.u32 %s341_s15, 4  ;;  %s2834_s7 = scalar_lea.hbm %s3179_s4, %s2743_s19  ;;  %s2828_s27 = int_to_ptr.vmem [resolvable:$true] %s348_s27 }
  0x7a   : > { %s339_s3 = scalar_lea.sflag [#allocation5], %s2683_s23 }
  0x7e   : > { %s2825_s17 = scalar_lea.hbm %s3219_s0, %s2686_s24  ;;  %s2364_s29 = scalar_lea.hbm %s3219_s0, 32 }
  0x7f   : > { %s2359_s11 = scalar_lea.hbm %s2825_s17, 16  ;;  %p2365_p3 = scmp.lt.u32.totalorder %s2825_s17, %s3219_s0 }
  0x80   : > { %p2360_p11 = scmp.ne.s32.totalorder %s2825_s17, %s2359_s11  ;;  %p2366_p4 = scmp.lt.u32.totalorder %s2364_s29, %s2359_s11 }
  0x81   : > { %p2368_p8 = scmp.lt.u32.totalorder %s2359_s11, %s2825_s17 }
  0x82   : > { %p2362_p2 = pnand %p2360_p11, %p2712_p12  ;;  %p2367_p5 = por %p2366_p4, %p2365_p3 }
  0x84   : > { %p2363_p0 = pneg %p2362_p2  ;;  %p2369_p9 = por %p2368_p8, %p2367_p5 }
  0x86   : > { %p2370_p7 = pnand %p2369_p9, %p2363_p0 }
  0x88   : > { %2373 = shalt.err (!%p2370_p7)
}
  0x89   : > { %s2374_s15 = scalar_lea.vmem %s2828_s27, 16  ;;  %s2564_s30 = smov [#allocation4]  }
  0x8a   : > { %p2375_p6 = scmp.ne.s32.totalorder %s2828_s27, %s2374_s15  ;;  %s2379_s14 = sshll.u32 %s2564_s30, 4  ;;  %s2380_s14 = int_to_ptr.vmem [resolvable:$false] %s2379_s14 }
  0x8b   : > { %s2381_s5 = scalar_lea.vmem %s2380_s14, 32  ;;  %p2382_p11 = scmp.lt.s32.totalorder %s2828_s27, %s2380_s14 }
  0x8c   : > { %p2377_p13 = pnand %p2375_p6, %p2712_p12  ;;  %p2383_p2 = scmp.lt.s32.totalorder %s2381_s5, %s2374_s15 }
  0x8e   : > { %p2378_p1 = pneg %p2377_p13  ;;  %p2384_p3 = por %p2383_p2, %p2382_p11 }
  0x90   : > { %p2385_p4 = pnand %p2384_p3, %p2378_p1 }
  0x92   : > { %2388 = shalt.err (!%p2385_p4)
}
  0x93   : > { %2167 = dma.hbm_to_vmem [thread:$0]  (!%p2688_p10), %s2825_s17, 16, %s2828_s27, %s339_s3  }
  0x94   : > { %s401_s1 = scalar_lea.vmem [#allocation8], %s2740_s18  ;;  %s2865_s29 = scalar_lea.hbm %s3181_s6, %s2743_s19 }
  0x95   : > { %s408_s11 = sshll.u32 %s401_s1, 4  ;;  %s2389_s15 = scalar_lea.hbm %s2834_s7, 2048  ;;  %s2859_s11 = int_to_ptr.vmem [resolvable:$true] %s408_s11 }
  0x96   : > { %p2390_p0 = scmp.ne.s32.totalorder %s2834_s7, %s2389_s15  ;;  %s2394_s5 = scalar_lea.hbm %s3179_s4, 4096 }
  0x97   : > { %p2395_p9 = scmp.lt.u32.totalorder %s2834_s7, %s3179_s4  ;;  %p2396_p7 = scmp.lt.u32.totalorder %s2394_s5, %s2389_s15 }
  0x98   : > { %p2392_p5 = pnand %p2390_p0, %p2712_p12  ;;  %p2398_p13 = scmp.lt.u32.totalorder %s2389_s15, %s2834_s7 }
  0x99   : > { %p2397_p6 = por %p2396_p7, %p2395_p9 }
  0x9a   : > { %p2393_p8 = pneg %p2392_p5 }
  0x9b   : > { %p2399_p1 = por %p2398_p13, %p2397_p6 }
  0x9d   : > { %p2400_p11 = pnand %p2399_p1, %p2393_p8 }
  0x9f   : > { %2403 = shalt.err (!%p2400_p11)
}
  0xa0   : > { %s2404_s19 = scalar_lea.vmem %s2859_s11, 2048  ;;  %s2565_s17 = smov [#allocation8]  }
  0xa1   : > { %p2405_p2 = scmp.ne.s32.totalorder %s2859_s11, %s2404_s19  ;;  %s2409_s27 = sshll.u32 %s2565_s17, 4  ;;  %s2410_s27 = int_to_ptr.vmem [resolvable:$false] %s2409_s27 }
  0xa2   : > { %s2411_s28 = scalar_lea.vmem %s2410_s27, 4096  ;;  %p2412_p0 = scmp.lt.s32.totalorder %s2859_s11, %s2410_s27 }
  0xa3   : > { %p2407_p3 = pnand %p2405_p2, %p2712_p12  ;;  %p2413_p5 = scmp.lt.s32.totalorder %s2411_s28, %s2404_s19 }
  0xa5   : > { %p2408_p4 = pneg %p2407_p3  ;;  %p2414_p9 = por %p2413_p5, %p2412_p0 }
  0xa7   : > { %p2415_p7 = pnand %p2414_p9, %p2408_p4 }
  0xa9   : > { %2418 = shalt.err (!%p2415_p7)
}
  0xaa   : > { %s3220_s1 = smov 8   ;;  %s3221_s9 = smov 128  }
  0xab   : > { %s3222_s2 = scalar_lea.sflag [#allocation7], %s2693_s26  ;;  %s443_s15 = scalar_lea.vmem [#allocation11], %s2740_s18 }
  0xac   : > { %2173 = dma.hbm_to_vmem [thread:$0]  (!%p2688_p10), %s2834_s7, 2048, %s2859_s11, %s3222_s2, %s3221_s9, %s3221_s9, %s3220_s1  }
  0xad   : > { %s450_s30 = sshll.u32 %s443_s15, 4  ;;  %s2900_s3 = scalar_lea.hbm %s3183_s8, %s2686_s24  ;;  %s2894_s30 = int_to_ptr.vmem [resolvable:$true] %s450_s30 }
  0xae   : > { %s2419_s19 = scalar_lea.hbm %s2865_s29, 2048  ;;  %s2424_s28 = scalar_lea.hbm %s3181_s6, 4096 }
  0xaf   : > { %p2420_p8 = scmp.ne.s32.totalorder %s2865_s29, %s2419_s19  ;;  %p2425_p1 = scmp.lt.u32.totalorder %s2865_s29, %s3181_s6 }
  0xb0   : > { %p2426_p11 = scmp.lt.u32.totalorder %s2424_s28, %s2419_s19  ;;  %p2428_p3 = scmp.lt.u32.totalorder %s2419_s19, %s2865_s29 }
  0xb1   : > { %p2422_p6 = pnand %p2420_p8, %p2712_p12 }
  0xb2   : > { %p2427_p2 = por %p2426_p11, %p2425_p1 }
  0xb3   : > { %p2423_p13 = pneg %p2422_p6 }
  0xb4   : > { %p2429_p4 = por %p2428_p3, %p2427_p2 }
  0xb6   : > { %p2430_p0 = pnand %p2429_p4, %p2423_p13 }
  0xb8   : > { %2433 = shalt.err (!%p2430_p0)
}
  0xb9   : > { %s2434_s24 = scalar_lea.vmem %s2894_s30, 2048  ;;  %s2566_s18 = smov [#allocation11]  }
  0xba   : > { %p2435_p5 = scmp.ne.s32.totalorder %s2894_s30, %s2434_s24  ;;  %s2439_s11 = sshll.u32 %s2566_s18, 4  ;;  %s2440_s11 = int_to_ptr.vmem [resolvable:$false] %s2439_s11 }
  0xbb   : > { %s2441_s0 = scalar_lea.vmem %s2440_s11, 4096  ;;  %p2442_p8 = scmp.lt.s32.totalorder %s2894_s30, %s2440_s11 }
  0xbc   : > { %p2437_p9 = pnand %p2435_p5, %p2712_p12  ;;  %p2443_p6 = scmp.lt.s32.totalorder %s2441_s0, %s2434_s24 }
  0xbe   : > { %p2438_p7 = pneg %p2437_p9  ;;  %p2444_p1 = por %p2443_p6, %p2442_p8 }
  0xc0   : > { %p2445_p11 = pnand %p2444_p1, %p2438_p7 }
  0xc2   : > { %2448 = shalt.err (!%p2445_p11)
}
  0xc3   : > { %s3223_s2 = scalar_lea.sflag [#allocation10], %s2693_s26  ;;  %s484_s15 = scalar_lea.vmem [#allocation14], %s2683_s23 }
  0xc4   : > { %2179 = dma.hbm_to_vmem [thread:$0]  (!%p2688_p10), %s2865_s29, 2048, %s2894_s30, %s3223_s2, %s3221_s9, %s3221_s9, %s3220_s1  }
  0xc5   : > { %s491_s14 = sshll.u32 %s484_s15, 4  ;;  %s2449_s5 = scalar_lea.hbm %s2900_s3, 16  ;;  %s492_s14 = int_to_ptr.vmem [resolvable:$true] %s491_s14 }
  0xc6   : > { %p2450_p13 = scmp.ne.s32.totalorder %s2900_s3, %s2449_s5  ;;  %s2454_s27 = scalar_lea.hbm %s3183_s8, 32 }
  0xc7   : > { %p2455_p4 = scmp.lt.u32.totalorder %s2900_s3, %s3183_s8  ;;  %p2456_p0 = scmp.lt.u32.totalorder %s2454_s27, %s2449_s5 }
  0xc8   : > { %p2452_p2 = pnand %p2450_p13, %p2712_p12  ;;  %p2458_p9 = scmp.lt.u32.totalorder %s2449_s5, %s2900_s3 }
  0xc9   : > { %p2457_p5 = por %p2456_p0, %p2455_p4 }
  0xca   : > { %p2453_p3 = pneg %p2452_p2 }
  0xcb   : > { %p2459_p7 = por %p2458_p9, %p2457_p5 }
  0xcd   : > { %p2460_p8 = pnand %p2459_p7, %p2453_p3 }
  0xcf   : > { %2463 = shalt.err (!%p2460_p8)
}
  0xd0   : > { %s2464_s23 = scalar_lea.vmem %s492_s14, 16  ;;  %s2567_s29 = smov [#allocation14]  }
  0xd1   : > { %p2465_p6 = scmp.ne.s32.totalorder %s492_s14, %s2464_s23  ;;  %s2469_s1 = sshll.u32 %s2567_s29, 4  ;;  %s2470_s1 = int_to_ptr.vmem [resolvable:$false] %s2469_s1 }
  0xd2   : > { %s2471_s9 = scalar_lea.vmem %s2470_s1, 32  ;;  %p2472_p13 = scmp.lt.s32.totalorder %s492_s14, %s2470_s1 }
  0xd3   : > { %p2467_p1 = pnand %p2465_p6, %p2712_p12  ;;  %p2473_p2 = scmp.lt.s32.totalorder %s2471_s9, %s2464_s23 }
  0xd5   : > { %p2468_p11 = pneg %p2467_p1  ;;  %p2474_p10 = por %p2473_p2, %p2472_p13 }
  0xd7   : > { %p2475_p0 = pnand %p2474_p10, %p2468_p11 }
  0xd9   : > { %2478 = shalt.err (!%p2475_p0)
}
  0xda   : > { %p3224_p4 = scmp.ne.s32.totalorder %s3211_s25, 0  ;;  %s3225_s30 = scalar_lea.sflag [#allocation13], %s2693_s26 }
  0xdb   : > { %p3226_p3 = scmp.ne.s32.totalorder %s3216_s22, 0 }
  0xdc   : > { %2185 = dma.hbm_to_vmem [thread:$0]  (!%p3224_p4), %s2900_s3, 16, %s492_s14, %s3225_s30  }
  0xdd   : > { %500 = sbr.rel (%p3226_p3) target bundleno = 1982 (0x7be), region = 56  ;;  %s2951_s20 = sand.u32 (!%p3226_p3), 1, %s2533_s10  }
  0xde   : > { %s503_s24 = scalar_lea.sflag (!%p3226_p3), [#allocation5], %s2951_s20  ;;  %s505_s18 = scalar_lea.vmem (!%p3226_p3), [#allocation4], %s2951_s20 }
  0xdf   : > { %p3227_p12 = scmp.ne.s32.totalorder (!%p3226_p3), %s3210_s21, 0 }
  0xe4   : > { %2512 = dma.done.wait (%p3227_p12), %s503_s24, 16  }
  0xe5   : > { %2514 = vsyncadd (%p3227_p12), %s503_s24, 4294967280  ;;  %s3228_s25 = sadd.s32 4294967295, %s2557_s16   ;;  %s513_s3 = scalar_lea.vmem [#allocation6], %s2951_s20 }
  0xe6   : > { %s510_s26 = sand.u32 1, %s3228_s25  }
  0xe7   : > { %s511_s22 = scalar_lea.sflag [#allocation7], %s510_s26 }
  0xe8   : > { %2516 = dma.done.wait (%p3227_p12), %s511_s22, 2064  }
  0xe9   : > { %2518 = vsyncadd (%p3227_p12), %s511_s22, 4294965232  ;;  %s1787_s11 = sshll.u32 %s2951_s20, 7  ;;  %s528_s2 = scalar_lea.sflag [#allocation10], %s510_s26 }
  0xea   : > { %s2967_s0 = scalar_lea.vmem [#allocation8], %s1787_s11  ;;  %s2969_s15 = scalar_lea.vmem [#allocation9], %s1787_s11 }
  0xeb   : > { %2520 = dma.done.wait (%p3227_p12), %s528_s2, 4096  }
  0xec   : > { %2522 = vsyncadd (%p3227_p12), %s528_s2, 4294963200  ;;  %s2975_s14 = scalar_lea.vmem [#allocation11], %s1787_s11  ;;  %s546_s5 = scalar_lea.sflag [#allocation13], %s510_s26 }
  0xed   : > { %s2977_s19 = scalar_lea.vmem [#allocation12], %s1787_s11 }
  0xee   : > { %2524 = dma.done.wait (%p3227_p12), %s546_s5, 2064  }
  0xef   : > { %2526 = vsyncadd (%p3227_p12), %s546_s5, 4294965232  ;;  %p644_p10 = scmp.lt.s32.totalorder %s2545_s13, 1  ;;  %p646_p5 = scmp.lt.s32.totalorder %s2541_s12, 1  ;;  %v707_v2 = vld [vmem:[%s2969_s15] sm:$0xff]  ;;  %v708_v3 = vld [vmem:[%s2969_s15 + $0x8] sm:$0xff]  ;;  %v2568_v5 = vmov 0.0|0.0  }
  0xf0   : > { %s3229_s23 = sld [smem:[#allocation28_spill]]  ;;  %s3230_s30 = sld [smem:[#allocation27_spill]]  ;;  %v794_v4 = vld [vmem:[%s2975_s14] sm:$0xff]  ;;  %2054 = vmatprep.subr.bf16.mxu0 %v2568_v5  ;;  %v2055_v6 = vpack.c.bf16 %v708_v3, %v707_v2  ;;  %2078 = vmatprep.subr.bf16.mxu1 %v2568_v5  ;;  %v795_v7 = vld [vmem:[%s2975_s14 + $0x8] sm:$0xff]  ;;  %v709_v8 = vld [vmem:[%s2969_s15 + $0x10] sm:$0xff]  ;;  %vm2569_vm0 = vmmov 0  }
  0xf1   : > { %s3247_s13 = smov (!%p644_p10, %s2545_s13), 1  ;;  %s3249_s12 = smov (!%p646_p5, %s2541_s12), 1  ;;  %v710_v9 = vld [vmem:[%s2969_s15 + $0x18] sm:$0xff]  ;;  %v2079_v10 = vpack.c.bf16 %v795_v7, %v794_v4  ;;  %v796_v11 = vld [vmem:[%s2975_s14 + $0x10] sm:$0xff]  ;;  %v711_v15 = vld [vmem:[%s2969_s15 + $0x20] sm:$0xff]  ;;  %v2570_v52 = vmov 0.0  }
  0xf2   : > { %s1791_s17 = sshll.u32 %s3247_s13, 1  ;;  %v797_v12 = vld [vmem:[%s2975_s14 + $0x18] sm:$0xff]  ;;  %2056 = vmatpush3.bf16.msra.mxu0 %v2055_v6  ;;  %v2058_v13 = vpack.c.bf16 %v710_v9, %v709_v8  ;;  %v712_v16 = vld [vmem:[%s2969_s15 + $0x28] sm:$0xff]  ;;  %v798_v17 = vld [vmem:[%s2975_s14 + $0x20] sm:$0xff]  ;;  %1923 = vmatprep.mubr.msk.f32.mxu0 %vm2569_vm0, %v2570_v52  ;;  %vm1014_vm1 = vcmask 523264   ;;  %vm1091_vm2 = vcmask 64512  }
  0xf3   : > { %s652_s27 = sadd.s32 %s1791_s17, %s3249_s12  ;;  %2080 = vmatpush3.bf16.msra.mxu1 %v2079_v10  ;;  %2057 = vmatprep.subr.bf16.mxu0 %v2568_v5  ;;  %v2082_v14 = vpack.c.bf16 %v797_v12, %v796_v11  ;;  %v799_v18 = vld [vmem:[%s2975_s14 + $0x28] sm:$0xff]  ;;  %v2061_v19 = vpack.c.bf16 %v712_v16, %v711_v15  ;;  %v713_v29 = vld [vmem:[%s2969_s15 + $0x30] sm:$0xff]  ;;  %v714_v30 = vld [vmem:[%s2969_s15 + $0x38] sm:$0xff]  ;;  %s2571_s12 = smov 64  }
  0xf4   : > { %s2987_s28 = sshll.u32 %s652_s27, 3  ;;  %2081 = vmatprep.subr.bf16.mxu1 %v2568_v5  ;;  %v2085_v20 = vpack.c.bf16 %v799_v18, %v798_v17  ;;  %v2064_v31 = vpack.c.bf16 %v714_v30, %v713_v29  ;;  %v800_v32 = vld [vmem:[%s2975_s14 + $0x30] sm:$0xff]  ;;  %v801_v33 = vld [vmem:[%s2975_s14 + $0x38] sm:$0xff]  ;;  %v715_v35 = vld [vmem:[%s2969_s15 + $0x40] sm:$0xff]  ;;  %1958 = vmatprep.mubr.msk.f32.mxu1 %vm2569_vm0, %v2570_v52  ;;  %s557_s13 = scalar_lea.vmem [#allocation14], %s2951_s20 }
  0xf5   : > { %v2088_v34 = vpack.c.bf16 %v801_v33, %v800_v32  ;;  %v716_v36 = vld [vmem:[%s2969_s15 + $0x48] sm:$0xff]  ;;  %v802_v38 = vld [vmem:[%s2975_s14 + $0x40] sm:$0xff]  ;;  %v717_v41 = vld [vmem:[%s2969_s15 + $0x50] sm:$0xff]  ;;  %s3231_s26 = sld [smem:[#allocation31_spill]] }
  0xf6   : > { %s662_s29 = scalar_lea.vmem %s3229_s23, %s2987_s28  ;;  %s654_s24 = scalar_lea.vmem %s3230_s30, %s2987_s28  ;;  %2059 = vmatpush3.bf16.msra.mxu0 %v2058_v13  ;;  %v2067_v37 = vpack.c.bf16 %v716_v36, %v715_v35  ;;  %v803_v39 = vld [vmem:[%s2975_s14 + $0x48] sm:$0xff]  ;;  %v718_v42 = vld [vmem:[%s2969_s15 + $0x58] sm:$0xff]  ;;  %v804_v44 = vld [vmem:[%s2975_s14 + $0x50] sm:$0xff] }
  0xf7   : > { %v680_v0 = vld [vmem:[%s662_s29] sm:$0xff]  ;;  %2083 = vmatpush3.bf16.msra.mxu1 %v2082_v14  ;;  %2060 = vmatprep.subr.bf16.mxu0 %v2568_v5  ;;  %v2091_v40 = vpack.c.bf16 %v803_v39, %v802_v38  ;;  %v2070_v43 = vpack.c.bf16 %v718_v42, %v717_v41  ;;  %v720_v48 = vld [vmem:[%s2969_s15 + $0x68] sm:$0xff]  ;;  %v721_v54 = vld [vmem:[%s2969_s15 + $0x70] sm:$0xff] }
  0xf8   : > { %681 = vadd.xlane.f32.xlu0 %v680_v0  ;;  %v2997_v1 = vld [vmem:[%s654_s24] sm:$0xff]  ;;  %2084 = vmatprep.subr.bf16.mxu1 %v2568_v5  ;;  %v807_v51 = vld [vmem:[%s2975_s14 + $0x68] sm:$0xff]  ;;  %v808_v56 = vld [vmem:[%s2975_s14 + $0x70] sm:$0xff] }
  0xf9   : > { %v805_v45 = vld [vmem:[%s2975_s14 + $0x58] sm:$0xff]  ;;  %v719_v47 = vld [vmem:[%s2969_s15 + $0x60] sm:$0xff]  ;;  %v911_v4 = vld [vmem:[%s2967_s0 + $0x8] sm:$0xff] }
  0xfa   : > { %2062 = vmatpush3.bf16.msra.mxu0 %v2061_v19  ;;  %v2094_v46 = vpack.c.bf16 %v805_v45, %v804_v44  ;;  %v806_v49 = vld [vmem:[%s2975_s14 + $0x60] sm:$0xff]  ;;  %v2073_v50 = vpack.c.bf16 %v720_v48, %v719_v47  ;;  %v722_v55 = vld [vmem:[%s2969_s15 + $0x78] sm:$0xff]  ;;  %v912_v11 = vld [vmem:[%s2967_s0 + $0x10] sm:$0xff] }
  0xfb   : > { %2086 = vmatpush3.bf16.msra.mxu1 %v2085_v20  ;;  %2063 = vmatprep.subr.bf16.mxu0 %v2568_v5  ;;  %v2097_v53 = vpack.c.bf16 %v807_v51, %v806_v49  ;;  %v809_v57 = vld [vmem:[%s2975_s14 + $0x78] sm:$0xff]  ;;  %v2076_v58 = vpack.c.bf16 %v722_v55, %v721_v54  ;;  %v910_v3 = vld [vmem:[%s2967_s0] sm:$0xff]  ;;  %v915_v16 = vld [vmem:[%s2967_s0 + $0x28] sm:$0xff]  ;;  %s673_s22 = scalar_lea.vmem %s3231_s26, %s2987_s28 }
  0xfc   : > { %882 = vadd.xlane.f32.xlu0 %v2997_v1  ;;  %2087 = vmatprep.subr.bf16.mxu1 %v2568_v5  ;;  %v2100_v59 = vpack.c.bf16 %v809_v57, %v808_v56  ;;  %v1813_v6 = vld [vmem:[%s513_s3] ss:$0 sm:$0xff]  ;;  %v2103_v8 = vpack.c.bf16 %v911_v4, %v910_v3  ;;  %v914_v15 = vld [vmem:[%s2967_s0 + $0x20] sm:$0xff]  ;;  %v916_v19 = vld [vmem:[%s2967_s0 + $0x30] sm:$0xff] }
  0xfd   : > { %v913_v12 = vld [vmem:[%s2967_s0 + $0x18] sm:$0xff]  ;;  %v2109_v18 = vpack.c.bf16 %v915_v16, %v914_v15  ;;  %v922_v29 = vld [vmem:[%s2967_s0 + $0x60] sm:$0xff]  ;;  %v923_v30 = vld [vmem:[%s2967_s0 + $0x68] sm:$0xff] }
  0xfe   : > { %2065 = vmatpush3.bf16.msra.mxu0 %v2064_v31  ;;  %v2106_v14 = vpack.c.bf16 %v913_v12, %v912_v11  ;;  %v917_v20 = vld [vmem:[%s2967_s0 + $0x38] sm:$0xff]  ;;  %v2121_v32 = vpack.c.bf16 %v923_v30, %v922_v29  ;;  %v926_v57 = vld [vmem:[%s2977_s19] sm:$0xff]  ;;  %v932_v3 = vld [vmem:[%s2977_s19 + $0x30] sm:$0xff] }
  0xff   : > { %2089 = vmatpush3.bf16.msra.mxu1 %v2088_v34  ;;  %2066 = vmatprep.subr.bf16.mxu0 %v2568_v5  ;;  %v924_v34 = vld [vmem:[%s2967_s0 + $0x70] sm:$0xff]  ;;  %v925_v35 = vld [vmem:[%s2967_s0 + $0x78] sm:$0xff]  ;;  %v938_v30 = vld [vmem:[%s2977_s19 + $0x60] sm:$0xff] }
 0x100   : > { %2090 = vmatprep.subr.bf16.mxu1 %v2568_v5  ;;  %v2124_v36 = vpack.c.bf16 %v925_v35, %v924_v34  ;;  %v933_v4 = vld [vmem:[%s2977_s19 + $0x38] sm:$0xff]  ;;  %v940_v34 = vld [vmem:[%s2977_s19 + $0x70] sm:$0xff] }
 0x101   : > { %v941_v35 = vld [vmem:[%s2977_s19 + $0x78] sm:$0xff] }
 0x102   : > { %2068 = vmatpush3.bf16.msra.mxu0 %v2067_v37 }
 0x103   : > { %2092 = vmatpush3.bf16.msra.mxu1 %v2091_v40  ;;  %2069 = vmatprep.subr.bf16.mxu0 %v2568_v5 }
 0x104   : > { %2093 = vmatprep.subr.bf16.mxu1 %v2568_v5 }
 0x106   : > { %2071 = vmatpush3.bf16.msra.mxu0 %v2070_v43 }
 0x107   : > { %2095 = vmatpush3.bf16.msra.mxu1 %v2094_v46  ;;  %2072 = vmatprep.subr.bf16.mxu0 %v2568_v5 }
 0x108   : > { %2096 = vmatprep.subr.bf16.mxu1 %v2568_v5 }
 0x10a   : > { %2074 = vmatpush3.bf16.msra.mxu0 %v2073_v50 }
 0x10b   : > { %2098 = vmatpush3.bf16.msra.mxu1 %v2097_v53  ;;  %2075 = vmatprep.subr.bf16.mxu0 %v2568_v5 }
 0x10c   : > { %2099 = vmatprep.subr.bf16.mxu1 %v2568_v5 }
 0x10e   : > { %2077 = vmatpush3.bf16.msra.mxu0 %v2076_v58  ;;  %v927_v58 = vld [vmem:[%s2977_s19 + $0x8] sm:$0xff] }
 0x10f   : > { %2101 = vmatpush3.bf16.msra.mxu1 %v2100_v59  ;;  %2102 = vmatprep.subr.bf16.mxu0 %v2568_v5  ;;  %v928_v59 = vld [vmem:[%s2977_s19 + $0x10] sm:$0xff] }
 0x110   : > { %1996 = vmatprep.subr.mxu1 %v2570_v52 }
 0x185   : > { %v682_v21 = vpop.xlane.xlu0 %681 }
 0x186   : > { %v684_v22 = vmul.f32 0.0078125, %v682_v21  ;;  %v2112_v21 = vpack.c.bf16 %v917_v20, %v916_v19 }
 0x188   : > { %v3020_v23 = vsub.f32 %v680_v0, %v684_v22  ;;  %v1812_v0 = vld [vmem:[%s505_s18] ss:$0 sm:$0xff]  ;;  %v918_v22 = vld [vmem:[%s2967_s0 + $0x40] sm:$0xff] }
 0x189   : > { %v883_v24 = vpop.xlane.xlu0 %882 }
 0x18a   : > { %v885_v25 = vmul.f32 0.0078125, %v883_v24  ;;  %v686_v26 = vmul.f32 %v3020_v23, %v3020_v23 }
 0x18c   : > { %v3025_v27 = vsub.f32 %v2997_v1, %v885_v25  ;;  %687 = vadd.xlane.f32.xlu1 %v686_v26  ;;  %v920_v25 = vld [vmem:[%s2967_s0 + $0x50] sm:$0xff]  ;;  %v921_v26 = vld [vmem:[%s2967_s0 + $0x58] sm:$0xff] }
 0x18e   : > { %v887_v28 = vmul.f32 %v3025_v27, %v3025_v27 }
 0x190   : > { %888 = vadd.xlane.f32.xlu1 %v887_v28  ;;  %v2118_v28 = vpack.c.bf16 %v921_v26, %v920_v25  ;;  %v936_v25 = vld [vmem:[%s2977_s19 + $0x50] sm:$0xff] }
 0x219   : > { %v688_v60 = vpop.xlane.xlu1 %687 }
 0x21a   : > { %v689_v61 = vmul.f32 0.0078125, %v688_v60  ;;  %v2139_v60 = vpack.c.bf16 %v927_v58, %v926_v57 }
 0x21c   : > { %v690_v62 = vadd.f32 1e-05, %v689_v61  ;;  %v929_v61 = vld [vmem:[%s2977_s19 + $0x18] sm:$0xff] }
 0x21d   : > { %v889_v9 = vpop.xlane.xlu1 %888 }
 0x21e   : > { %2257 = vrsqrt.f32 %v690_v62  ;;  %v890_v13 = vmul.f32 0.0078125, %v889_v9  ;;  %v2142_v62 = vpack.c.bf16 %v929_v61, %v928_v59 }
 0x220   : > { %v891_v17 = vadd.f32 1e-05, %v890_v13 }
 0x222   : > { %2259 = vrsqrt.f32 %v891_v17 }
 0x228   : > { %v2258_v63 = vpop.eup %2257 }
 0x229   : > { %v692_v2 = vmul.f32 %v2258_v63, %v3020_v23  ;;  %v919_v23 = vld [vmem:[%s2967_s0 + $0x48] sm:$0xff]  ;;  %v930_v63 = vld [vmem:[%s2977_s19 + $0x20] sm:$0xff] }
 0x22a   : > { %v2115_v24 = vpack.c.bf16 %v919_v23, %v918_v22  ;;  %v934_v23 = vld [vmem:[%s2977_s19 + $0x40] sm:$0xff] }
 0x22b   : > { %v699_v7 = vmul.f32 %v1812_v0, %v692_v2 }
 0x22c   : > { %v2260_v31 = vpop.eup %2259 }
 0x22d   : > { %v706_v10 = vadd.f32 %v1813_v6, %v699_v7  ;;  %v893_v33 = vmul.f32 %v2260_v31, %v3025_v27  ;;  %v939_v31 = vld [vmem:[%s2977_s19 + $0x68] sm:$0xff] }
 0x22f   : > { %1924 = vmatmul.mubr.f32.vlgmr.msra.gmra.mrb[0].mxu0 %v706_v10  ;;  %1959 = vmatmul.mubr.f32.vlgmr.msra.gmra.mrb[0].mxu1 %v706_v10  ;;  %v900_v37 = vmul.f32 %v1812_v0, %v893_v33  ;;  %v931_v0 = vld [vmem:[%s2977_s19 + $0x28] sm:$0xff] }
 0x230   : > { %2104 = vmatpush3.bf16.msra.mxu0 %v2103_v8  ;;  %1993 = vmatprep.mubr.msk.f32.mxu0 %vm2569_vm0, %v2570_v52  ;;  %v2145_v2 = vpack.c.bf16 %v931_v0, %v930_v63 }
 0x231   : > { %2105 = vmatprep.subr.bf16.mxu0 %v2568_v5  ;;  %1998 = vmatprep.mubr.msk.f32.mxu1 %vm2569_vm0, %v2570_v52  ;;  %v907_v38 = vadd.f32 %v1813_v6, %v900_v37  ;;  %v2148_v6 = vpack.c.bf16 %v933_v4, %v932_v3 }
 0x234   : > { %2107 = vmatpush3.bf16.msra.mxu0 %v2106_v14 }
 0x235   : > { %2108 = vmatprep.subr.bf16.mxu0 %v2568_v5 }
 0x238   : > { %2110 = vmatpush3.bf16.msra.mxu0 %v2109_v18 }
 0x239   : > { %2111 = vmatprep.subr.bf16.mxu0 %v2568_v5 }
 0x23c   : > { %2113 = vmatpush3.bf16.msra.mxu0 %v2112_v21 }
 0x23d   : > { %2114 = vmatprep.subr.bf16.mxu0 %v2568_v5 }
 0x240   : > { %2116 = vmatpush3.bf16.msra.mxu0 %v2115_v24  ;;  %v935_v24 = vld [vmem:[%s2977_s19 + $0x48] sm:$0xff] }
 0x241   : > { %2117 = vmatprep.subr.bf16.mxu0 %v2568_v5  ;;  %v2127_v26 = vpack.c.bf16 %v935_v24, %v934_v23 }
 0x244   : > { %2119 = vmatpush3.bf16.msra.mxu0 %v2118_v28  ;;  %v937_v28 = vld [vmem:[%s2977_s19 + $0x58] sm:$0xff] }
 0x245   : > { %2120 = vmatprep.subr.bf16.mxu0 %v2568_v5  ;;  %v2130_v29 = vpack.c.bf16 %v937_v28, %v936_v25 }
 0x248   : > { %2122 = vmatpush3.bf16.msra.mxu0 %v2121_v32  ;;  %v2133_v32 = vpack.c.bf16 %v939_v31, %v938_v30 }
 0x249   : > { %2123 = vmatprep.subr.bf16.mxu0 %v2568_v5 }
 0x24c   : > { %2125 = vmatpush3.bf16.msra.mxu0 %v2124_v36  ;;  %v2136_v36 = vpack.c.bf16 %v941_v35, %v940_v34 }
 0x24d   : > { %2138 = vmatprep.subr.bf16.mxu0 %v2568_v5 }
 0x24f   : > { %1994 = vmatmul.mubr.f32.vlgmr.msra.gmra.mrb[2].mxu0 %v907_v38 }
 0x250   : > { %2051 = vmatprep.mubr.msk.f32.mxu0 %vm2569_vm0, %v2570_v52  ;;  %2140 = vmatpush3.bf16.msra.mxu0 %v2139_v60 }
 0x251   : > { %2141 = vmatprep.subr.bf16.mxu0 %v2568_v5 }
 0x254   : > { %2143 = vmatpush3.bf16.msra.mxu0 %v2142_v62 }
 0x255   : > { %2144 = vmatprep.subr.bf16.mxu0 %v2568_v5 }
 0x258   : > { %2146 = vmatpush3.bf16.msra.mxu0 %v2145_v2 }
 0x259   : > { %2147 = vmatprep.subr.bf16.mxu0 %v2568_v5 }
 0x25c   : > { %2149 = vmatpush3.bf16.msra.mxu0 %v2148_v6 }
 0x302   : > { %v789_v39 = vpop.f32.mrb[0].mxu0  ;;  %v876_v27 = vpop.f32.mrb[0].mxu1 }
 0x303   : > { %v1960_v40 = vpop.f32.mrb[1].mxu1  ;;  %1181 = vrot.lane.b32.xlu1 %v789_v39, %s2571_s12  ;;  %v1925_v41 = vpop.f32.mrb[1].mxu0  ;;  %1997 = vmatpush3.xpose.msk.msra.mxu1 %vm1014_vm1, %v789_v39 }
 0x304   : > { %2001 = vmatprep.subr.mxu1 %v2570_v52 }
 0x322   : > { %v1009_v42 = vpop.f32.mrb[2].mxu0 }
 0x323   : > { %v1013_v43 = vmul.f32 0.088388346, %v1009_v42  ;;  %v1995_v44 = vpop.f32.mrb[3].mxu0 }
 0x325   : > { %1999 = vmatmul.mubr.msk.f32.vlgmr.msra.gmra.mrb[2].mxu1 %vm1014_vm1, %v1013_v43 }
 0x326   : > { %2002 = vmatpush3.msra.mxu1 %v876_v27  ;;  %2003 = vmatprep.mubr.msk.f32.mxu1 %vm2569_vm0, %v2570_v52 }
 0x327   : > { %2006 = vmatprep.subr.mxu1 %v2570_v52 }
 0x375   : > { %v1182_v54 = vpop.permute.xlu1 %1181 }
 0x3f8   : > { %v1087_v45 = vpop.f32.mrb[2].mxu1 }
 0x3f9   : > { %v2000_v46 = vpop.f32.mrb[3].mxu1  ;;  %v1092_v47 = vsel %vm1091_vm2, %v1087_v45, -inf }
 0x3fa   : > { %1093 = vmax.xlane.f32.xlu0 %v1092_v47 }
 0x410   : > { %1179 = vrot.lane.b32.xlu0 %v1013_v43, %s2571_s12 }
 0x414   : > { %1267 = vrot.lane.b32.xlu0 %v876_v27, %s2571_s12 }
 0x487   : > { %v1094_v48 = vpop.xlane.xlu0 %1093 }
 0x488   : > { %v1095_v49 = vsub.f32 %v1087_v45, %v1094_v48 }
 0x48a   : > { %v1096_v50 = vmul.f32 1.442695, %v1095_v49 }
 0x48b   : > { %v1180_v51 = vpop.permute.xlu0 %1179 }
 0x48c   : > { %2261 = vpow2.f32 %v1096_v50 }
 0x48f   : > { %v1268_v56 = vpop.permute.xlu0 %1267 }
 0x496   : > { %v2262_v53 = vpop.eup %2261 }
 0x497   : > { %2004 = vmatmul.mubr.msk.f32.vlgmr.msra.gmra.mrb[4].mxu1 %vm1091_vm2, %v2262_v53  ;;  %v1098_v55 = vsel %vm1091_vm2, %v2262_v53, 0.0 }
 0x498   : > { %2007 = vmatpush3.xpose.msk.msra.mxu1 %vm1014_vm1, %v1182_v54  ;;  %1099 = vadd.xlane.f32.xlu0 %v1098_v55 }
 0x499   : > { %2008 = vmatprep.mubr.msk.f32.mxu1 %vm2569_vm0, %v2570_v52  ;;  %2011 = vmatprep.subr.mxu1 %v2570_v52 }
 0x49b   : > { %2009 = vmatmul.mubr.msk.f32.vlgmr.msra.gmra.mrb[6].mxu1 %vm1014_vm1, %v1180_v51 }
 0x49c   : > { %2012 = vmatpush3.msra.mxu1 %v1268_v56  ;;  %2013 = vmatprep.mubr.msk.f32.mxu1 %vm2569_vm0, %v2570_v52 }
 0x49d   : > { %2126 = vmatprep.subr.bf16.mxu1 %v2568_v5 }
 0x525   : > { %v1100_v7 = vpop.xlane.xlu0 %1099 }
 0x526   : > { %2263 = vrcp.f32 %v1100_v7 }
 0x530   : > { %v2264_v8 = vpop.eup %2263 }
 0x531   : > { %v1175_v9 = vmul.f32 %v2264_v8, %v1100_v7 }
 0x533   : > { %v1176_v10 = vsub.f32 2.0, %v1175_v9 }
 0x535   : > { %v1177_v11 = vmul.f32 %v2264_v8, %v1176_v10 }
 0x56a   : > { %v1170_v12 = vpop.f32.mrb[4].mxu1 }
 0x56b   : > { %v1178_v13 = vmul.f32 %v1177_v11, %v1170_v12  ;;  %v2005_v14 = vpop.f32.mrb[5].mxu1 }
 0x56d   : > { %2052 = vmatmul.mubr.msk.f32.vlgmr.msra.gmra.mrb[4].mxu0 %vm1014_vm1, %v1178_v13 }
 0x56e   : > { %v1253_v15 = vpop.f32.mrb[6].mxu1 }
 0x56f   : > { %v2010_v16 = vpop.f32.mrb[7].mxu1  ;;  %v1257_v17 = vsel %vm1091_vm2, %v1253_v15, -inf }
 0x570   : > { %1258 = vmax.xlane.f32.xlu1 %v1257_v17 }
 0x5fd   : > { %v1259_v18 = vpop.xlane.xlu1 %1258 }
 0x5fe   : > { %v1260_v19 = vsub.f32 %v1253_v15, %v1259_v18 }
 0x600   : > { %v1261_v20 = vmul.f32 1.442695, %v1260_v19 }
 0x602   : > { %2265 = vpow2.f32 %v1261_v20 }
 0x60c   : > { %v2266_v21 = vpop.eup %2265 }
 0x60d   : > { %2014 = vmatmul.mubr.msk.f32.vlgmr.msra.gmra.mrb[8].mxu1 %vm1091_vm2, %v2266_v21  ;;  %v1263_v22 = vsel %vm1091_vm2, %v2266_v21, 0.0 }
 0x60e   : > { %1264 = vadd.xlane.f32.xlu1 %v1263_v22  ;;  %2032 = vmatprep.mubr.msk.f32.mxu1 %vm2569_vm0, %v2570_v52 }
 0x60f   : > { %2128 = vmatpush3.bf16.msra.mxu1 %v2127_v26 }
 0x610   : > { %2129 = vmatprep.subr.bf16.mxu1 %v2568_v5 }
 0x613   : > { %2131 = vmatpush3.bf16.msra.mxu1 %v2130_v29 }
 0x614   : > { %2132 = vmatprep.subr.bf16.mxu1 %v2568_v5 }
 0x617   : > { %2134 = vmatpush3.bf16.msra.mxu1 %v2133_v32 }
 0x618   : > { %2135 = vmatprep.subr.bf16.mxu1 %v2568_v5  ;;  %v1805_v5 = vld [vmem:[%s557_s13] ss:$0 sm:$0xff] }
 0x61b   : > { %2137 = vmatpush3.bf16.msra.mxu1 %v2136_v36 }
 0x640   : > { %v1490_v52 = vpop.f32.mrb[4].mxu0 }
 0x641   : > { %v2053_v33 = vpop.f32.mrb[5].mxu0 }
 0x69b   : > { %v1265_v37 = vpop.xlane.xlu1 %1264 }
 0x69c   : > { %2267 = vrcp.f32 %v1265_v37 }
 0x6a6   : > { %v2268_v38 = vpop.eup %2267 }
 0x6a7   : > { %v1344_v39 = vmul.f32 %v2268_v38, %v1265_v37 }
 0x6a9   : > { %v1345_v27 = vsub.f32 2.0, %v1344_v39 }
 0x6ab   : > { %v1346_v40 = vmul.f32 %v2268_v38, %v1345_v27 }
 0x6e0   : > { %v1339_v41 = vpop.f32.mrb[8].mxu1 }
 0x6e1   : > { %v1347_v42 = vmul.f32 %v1346_v40, %v1339_v41  ;;  %v2015_v43 = vpop.f32.mrb[9].mxu1 }
 0x6e3   : > { %2033 = vmatmul.mubr.msk.f32.vlgmr.msra.gmra.mrb[10].mxu1 %vm1014_vm1, %v1347_v42 }
 0x7b6   : > { %v1417_v44 = vpop.f32.mrb[10].mxu1 }
 0x7b7   : > { %v1491_v45 = vadd.f32 %v1490_v52, %v1417_v44  ;;  %v2034_v46 = vpop.f32.mrb[11].mxu1 }
 0x7b9   : > { %v1500_v47 = vadd.f32 %v1805_v5, %v1491_v45 }
 0x7bb   : > { %v1501_v48 = vadd.f32 %v1500_v47, %v2997_v1 }
 0x7bd   : > { %1502 = vst [vmem:[%s673_s22] sm:$0xff] %v1501_v48 }
 0x7be PF: > { %s31_s16 = sadd.s32 1, %s2557_s16   ;;  %s3232_s3 = sld [smem:[#allocation19_spill]] }
 0x7bf   : > { %p28_p9 = scmp.ge.s32.totalorder %s31_s16, 6   ;;  %s3233_s11 = sld [smem:[#allocation24_spill]] }
 0x7c0   : > { %s3234_s12 = sld [smem:[#allocation20_spill]]  ;;  %s3235_s13 = sld [smem:[#allocation21_spill]] }
 0x7c1   : > { %s3236_s14 = sld [smem:[#allocation22_spill]]  ;;  %s3237_s15 = sld [smem:[#allocation23_spill]] }
 0x7c2   : > { %s3238_s30 = smov %s2533_s10  ;;  %30 = sbr.rel (!%p28_p9) target bundleno = 19 (0x13), region = 178 }
 0x7c4   : > { %s3239_s10 = smov %s3232_s3 }
 0x7c9   :  { %1536 = vsyncpa [#allocation5], 1 }
 0x7ca   :  { %1538 = vsyncpa [#allocation5 + $0x1], 1 }
 0x7cb   :  { %1539 = vsyncpa [#allocation7], 1 }
 0x7cc   :  { %1541 = vsyncpa [#allocation7 + $0x1], 1 }
 0x7cd   :  { %1542 = vsyncpa [#allocation10], 1 }
 0x7ce   :  { %1544 = vsyncpa [#allocation10 + $0x1], 1 }
 0x7cf   :  { %1545 = vsyncpa [#allocation13], 1 }
 0x7d0   :  { %1547 = vsyncpa [#allocation13 + $0x1], 1 }

// kernel: dual_decoder_forward.5
= control target key start
LH: loop header
LB: loop body
LE: loop exit
PB: predicated region body
PF: predicated region fallthrough
CT: control target
= control target key end

     0   :  { %s3681_s0 = inlined_call_operand.vmem [shape: f32[2,1,128], index: 0, kind: input, shape index: {}]   ;;  %s3682_s1 = inlined_call_operand.vmem [shape: f32[2,1,128], index: 1, kind: input, shape index: {}]   ;;  %s3683_s2 = inlined_call_operand.vmem [shape: f32[2,2,8,128], index: 2, kind: input, shape index: {}, may-alias: {2,3}]   ;;  %s3684_s3 = inlined_call_operand.vmem [shape: f32[2,2,8,128], index: 3, kind: input, shape index: {}, may-alias: {2,3}]   ;;  %s3685_s4 = inlined_call_operand.vmem [shape: f32[2,128,128], index: 4, kind: input, shape index: {}]   ;;  %s3686_s5 = inlined_call_operand.hbm [shape: f32[2,128,128], index: 5, kind: input, shape index: {}]   ;;  %s3687_s6 = inlined_call_operand.hbm [shape: f32[2,128,128], index: 6, kind: input, shape index: {}]   ;;  %s3688_s7 = inlined_call_operand.hbm [shape: f32[2,128,128], index: 7, kind: input, shape index: {}]   ;;  %s3689_s8 = inlined_call_operand.vmem [shape: f32[2,1,128], index: 8, kind: input, shape index: {}]   ;;  %s3690_s9 = inlined_call_operand.vmem [shape: f32[2,1,128], index: 9, kind: input, shape index: {}]   ;;  %s3691_s10 = inlined_call_operand.vmem [shape: f32[2,1,128], index: 10, kind: input, shape index: {}]   ;;  %s3692_s11 = inlined_call_operand.vmem [shape: f32[2,128,256], index: 11, kind: input, shape index: {}]   ;;  %s3693_s12 = inlined_call_operand.vmem [shape: f32[2,1,256], index: 12, kind: input, shape index: {}]   ;;  %s3694_s13 = inlined_call_operand.vmem [shape: f32[2,256,128], index: 13, kind: input, shape index: {}]   ;;  %s3695_s14 = inlined_call_operand.vmem [shape: f32[2,1,128], index: 14, kind: input, shape index: {}]   ;;  %s3696_s15 = inlined_call_operand.vmem [shape: f32[2,2,8,128], index: 15, kind: output, shape index: {}]  }
   0x1   :  { %3707 = sst [smem:[#allocation16_spill]] %s3686_s5 }
   0x2   :  { %3708 = sst [smem:[#allocation17_spill]] %s3687_s6 }
   0x3   :  { %3709 = sst [smem:[#allocation18_spill]] %s3690_s9 }
   0x4   :  { %3710 = sst [smem:[#allocation19_spill]] %s3691_s10 }
   0x5   :  { %3711 = sst [smem:[#allocation20_spill]] %s3692_s11 }
   0x6   :  { %3712 = sst [smem:[#allocation21_spill]] %s3693_s12 }
   0x7   :  { %3713 = sst [smem:[#allocation22_spill]] %s3694_s13 }
   0x8   :  { %3714 = sst [smem:[#allocation23_spill]] %s3695_s14 }
   0x9   :  { %3715 = sst [smem:[#allocation24_spill]] %s3696_s15 }
   0xa   :  { %20 = vsyncpa [#allocation5], 0 }
   0xb   :  { %22 = vsyncpa [#allocation5 + $0x1], 0 }
   0xc   :  { %23 = vsyncpa [#allocation7], 0 }
   0xd   :  { %25 = vsyncpa [#allocation7 + $0x1], 0  ;;  %s3144_s18 = smov 0   ;;  %s3146_s19 = smov 0  }
   0xe   :  { %s3148_s20 = smov 0   ;;  %s3150_s21 = smov 0  }
   0xf   :  { %s3152_s22 = smov 0   ;;  %s3154_s23 = smov 0  }
  0x10   :  { %s3156_s24 = smov 0   ;;  %s3158_s25 = smov 0  }
  0x11 LB: > { %3716 = sst [smem:[#allocation11_spill]] %s3045_s23  ;;  %s3697_s26 = sadd.s32 4294967295, %s3053_s25   ;;  %s3053_s25 = sphi %s3158_s25, %s31_s25   ;;  %s3049_s24 = sphi %s3156_s24, %s3745_s24   ;;  %s3045_s23 = sphi %s3154_s23, %s3744_s23   ;;  %s3041_s22 = sphi %s3152_s22, %s3743_s22   ;;  %s3037_s21 = sphi %s3150_s21, %s3742_s21   ;;  %s3033_s20 = sphi %s3148_s20, %s3748_s20   ;;  %s3029_s19 = sphi %s3146_s19, %s3747_s19   ;;  %s3025_s18 = sphi %s3144_s18, %s3746_s18  }
  0x12   : > { %3717 = sst [smem:[#allocation12_spill]] %s3049_s24  ;;  %s46_s27 = sadd.s32 1, %s3045_s23 }
  0x13   : > { %p48_p0 = scmp.ge.s32.totalorder %s46_s27, 2  ;;  %s50_s28 = sadd.s32 1, %s3049_s24 }
  0x14   : > { %s195_s29 = sadd.s32 1, %s3033_s20  ;;  %p202_p1 = scmp.ne.s32.totalorder %s3033_s20, %s3029_s19 }
  0x15   : > { %s3750_s27 = smov (%p48_p0, %s46_s27), 0  ;;  %s3752_s28 = smov (!%p48_p0, %s50_s28), %s3049_s24 }
  0x16   : > { %3718 = sst [smem:[#allocation13_spill]] %s3750_s27  ;;  %p203_p2 = scmp.eq.s32.totalorder %s3053_s25, 0 }
  0x17   : > { %p208_p3 = scmp.ne.s32.totalorder %s3029_s19, %s3025_s18  ;;  %p52_p4 = scmp.ge.s32.totalorder %s3752_s28, 2 }
  0x18   : > { %p209_p5 = scmp.eq.s32.totalorder %s3697_s26, 0  ;;  %p204_p6 = por %p203_p2, %p202_p1 }
  0x19   : > { %s3754_s28 = smov (%p52_p4, %s3752_s28), 0  ;;  %p2800_p8 = scmp.lt.s32.totalorder %s3053_s25, 4 }
  0x1a   : > { %3719 = sst [smem:[#allocation14_spill]] %s3754_s28  ;;  %p3197_p7 = por %p209_p5, %p208_p3 }
  0x1b   : > { %s192_s16 = ssub.s32 %s3049_s24, %s3754_s28  ;;  %s3700_s17 = sand.u32 1, %s3033_s20  }
  0x1c   : > { %s3720_s30 = scalar_select %p3197_p7, 1, 0 }
  0x1d   : > { %p193_p9 = scmp.eq.s32.totalorder %s192_s16, 0  ;;  %s3207_s27 = sshll.u32 %s3700_s17, 7 }
  0x1e   : > { %s3210_s18 = sshll.u32 %s3049_s24, 11  ;;  %p3212_p10 = pnand %p2800_p8, %p204_p6 }
  0x1f   : > { %s3217_s23 = scalar_select %p193_p9, %s3033_s20, %s195_s29  }
  0x20   : > { %s564_s15 = sand.u32 1, %s3053_s25   ;;  %s3723_s6 = sld [smem:[#allocation17_spill]] }
  0x21   : > { %3722 = sst [smem:[#allocation15_spill]] %s3217_s23  ;;  %s568_s16 = scalar_lea.vmem [#allocation6], %s3207_s27 }
  0x22   : > { %s575_s17 = sshll.u32 %s568_s16, 4  ;;  %s3230_s24 = scalar_lea.sflag [#allocation7], %s564_s15  ;;  %s3227_s17 = int_to_ptr.vmem [resolvable:$true] %s575_s17 }
  0x23   : > { %p3236_p13 = pneg %p3212_p10 }
  0x26   : > { %s3224_s28 = scalar_lea.hbm %s3723_s6, %s3210_s18  ;;  %s2898_s16 = scalar_lea.hbm %s3723_s6, 4096 }
  0x27   : > { %s2893_s13 = scalar_lea.hbm %s3224_s28, 2048  ;;  %p2899_p2 = scmp.lt.u32.totalorder %s3224_s28, %s3723_s6 }
  0x28   : > { %p2894_p12 = scmp.ne.s32.totalorder %s3224_s28, %s2893_s13  ;;  %p2900_p3 = scmp.lt.u32.totalorder %s2898_s16, %s2893_s13 }
  0x29   : > { %p2902_p5 = scmp.lt.u32.totalorder %s2893_s13, %s3224_s28 }
  0x2a   : > { %p2896_p0 = pnand %p3236_p13, %p2894_p12  ;;  %p2901_p4 = por %p2900_p3, %p2899_p2 }
  0x2c   : > { %p2897_p1 = pneg %p2896_p0  ;;  %p2903_p6 = por %p2902_p5, %p2901_p4 }
  0x2e   : > { %p2904_p8 = pnand %p2903_p6, %p2897_p1 }
  0x30   : > { %2907 = shalt.err (!%p2904_p8)
}
  0x31   : > { %s2908_s15 = scalar_lea.vmem %s3227_s17, 2048  ;;  %s3055_s12 = smov [#allocation6]  }
  0x32   : > { %p2909_p9 = scmp.ne.s32.totalorder %s3227_s17, %s2908_s15  ;;  %s2913_s14 = sshll.u32 %s3055_s12, 4  ;;  %s2914_s14 = int_to_ptr.vmem [resolvable:$false] %s2913_s14 }
  0x33   : > { %s2915_s10 = scalar_lea.vmem %s2914_s14, 4096  ;;  %p2916_p11 = scmp.lt.s32.totalorder %s3227_s17, %s2914_s14 }
  0x34   : > { %p2911_p12 = pnand %p2909_p9, %p3236_p13  ;;  %p2917_p7 = scmp.lt.s32.totalorder %s2915_s10, %s2908_s15 }
  0x36   : > { %p2912_p0 = pneg %p2911_p12  ;;  %p2918_p2 = por %p2917_p7, %p2916_p11 }
  0x38   : > { %p2919_p3 = pnand %p2918_p2, %p2912_p0 }
  0x3a   : > { %2922 = shalt.err (!%p2919_p3)
}
  0x3b   : > { %s3703_s13 = smov 128   ;;  %s3705_s23 = smov 8  }
  0x3c   : > { %2796 = dma.hbm_to_vmem [thread:$0]  (!%p3212_p10), %s3224_s28, 2048, %s3227_s17, %s3230_s24, %s3703_s13, %s3703_s13, %s3705_s23  }
  0x3d   : > { %p651_p7 = scmp.lt.s32.totalorder %s3053_s25, 5  ;;  %p3725_p11 = scmp.ge.s32.totalorder %s3053_s25, 1 }
  0x3e   : > { %s3727_s5 = sld [smem:[#allocation16_spill]]  ;;  %s547_s10 = scalar_lea.vmem [#allocation4], %s3207_s27 }
  0x3f   : > { %p3266_p1 = pnand %p3725_p11, %p651_p7  ;;  %s554_s6 = sshll.u32 %s547_s10, 4  ;;  %s3277_s6 = int_to_ptr.vmem [resolvable:$true] %s554_s6 }
  0x40   : > { %s3728_s28 = sand.u32 1, %s3033_s20  }
  0x41   : > { %s3726_s16 = scalar_select %p3266_p1, 1, 0 }
  0x42   : > { %s3281_s17 = scalar_lea.sflag [#allocation5], %s3728_s28 }
  0x44   : > { %s3274_s14 = scalar_lea.hbm %s3727_s5, %s3210_s18  ;;  %s2928_s12 = scalar_lea.hbm %s3727_s5, 4096 }
  0x45   : > { %s2923_s13 = scalar_lea.hbm %s3274_s14, 2048  ;;  %p2929_p8 = scmp.lt.u32.totalorder %s3274_s14, %s3727_s5 }
  0x46   : > { %p2924_p4 = scmp.ne.s32.totalorder %s3274_s14, %s2923_s13  ;;  %p2930_p9 = scmp.lt.u32.totalorder %s2928_s12, %s2923_s13 }
  0x47   : > { %p2932_p0 = scmp.lt.u32.totalorder %s2923_s13, %s3274_s14 }
  0x48   : > { %p2926_p5 = pnand %p2924_p4, %p3236_p13  ;;  %p2931_p12 = por %p2930_p9, %p2929_p8 }
  0x4a   : > { %p2927_p6 = pneg %p2926_p5  ;;  %p2933_p2 = por %p2932_p0, %p2931_p12 }
  0x4c   : > { %p2934_p3 = pnand %p2933_p2, %p2927_p6 }
  0x4e   : > { %2937 = shalt.err (!%p2934_p3)
}
  0x4f   : > { %s2938_s10 = scalar_lea.vmem %s3277_s6, 2048  ;;  %s3058_s23 = smov [#allocation4]  }
  0x50   : > { %p2939_p7 = scmp.ne.s32.totalorder %s3277_s6, %s2938_s10  ;;  %s2943_s28 = sshll.u32 %s3058_s23, 4  ;;  %s2944_s28 = int_to_ptr.vmem [resolvable:$false] %s2943_s28 }
  0x51   : > { %s2945_s9 = scalar_lea.vmem %s2944_s28, 4096  ;;  %p2946_p5 = scmp.lt.s32.totalorder %s3277_s6, %s2944_s28 }
  0x52   : > { %p2941_p11 = pnand %p2939_p7, %p3236_p13  ;;  %p2947_p1 = scmp.lt.s32.totalorder %s2945_s9, %s2938_s10 }
  0x54   : > { %p2942_p4 = pneg %p2941_p11  ;;  %p2948_p8 = por %p2947_p1, %p2946_p5 }
  0x56   : > { %p2949_p9 = pnand %p2948_p8, %p2942_p4 }
  0x58   : > { %2952 = shalt.err (!%p2949_p9)
}
  0x59   : > { %s3729_s11 = smov 8   ;;  %s3730_s13 = smov 128  }
  0x5a   : > { %2793 = dma.hbm_to_vmem [thread:$0]  (!%p3212_p10), %s3274_s14, 2048, %s3277_s6, %s3281_s17, %s3730_s13, %s3730_s13, %s3729_s11  }
  0x5b   : > { %s3312_s23 = scalar_lea.hbm %s3688_s7, %s3210_s18  ;;  %s589_s10 = scalar_lea.vmem [#allocation8], %s3207_s27 }
  0x5c   : > { %s596_s28 = sshll.u32 %s589_s10, 4  ;;  %s2953_s9 = scalar_lea.hbm %s3312_s23, 2048  ;;  %s3315_s28 = int_to_ptr.vmem [resolvable:$true] %s596_s28 }
  0x5d   : > { %p2954_p1 = scmp.ne.s32.totalorder %s3312_s23, %s2953_s9  ;;  %s2958_s14 = scalar_lea.hbm %s3688_s7, 4096 }
  0x5e   : > { %p2959_p0 = scmp.lt.u32.totalorder %s3312_s23, %s3688_s7  ;;  %p2960_p2 = scmp.lt.u32.totalorder %s2958_s14, %s2953_s9 }
  0x5f   : > { %p2956_p6 = pnand %p2954_p1, %p3236_p13  ;;  %p2962_p7 = scmp.lt.u32.totalorder %s2953_s9, %s3312_s23 }
  0x60   : > { %p2961_p3 = por %p2960_p2, %p2959_p0 }
  0x61   : > { %p2957_p12 = pneg %p2956_p6 }
  0x62   : > { %p2963_p11 = por %p2962_p7, %p2961_p3 }
  0x64   : > { %p2964_p4 = pnand %p2963_p11, %p2957_p12 }
  0x66   : > { %2967 = shalt.err (!%p2964_p4)
}
  0x67   : > { %s2968_s27 = scalar_lea.vmem %s3315_s28, 2048  ;;  %s3059_s5 = smov [#allocation8]  }
  0x68   : > { %p2969_p5 = scmp.ne.s32.totalorder %s3315_s28, %s2968_s27  ;;  %s2973_s15 = sshll.u32 %s3059_s5, 4  ;;  %s2974_s15 = int_to_ptr.vmem [resolvable:$false] %s2973_s15 }
  0x69   : > { %s2975_s12 = scalar_lea.vmem %s2974_s15, 4096  ;;  %p2976_p1 = scmp.lt.s32.totalorder %s3315_s28, %s2974_s15 }
  0x6a   : > { %p2971_p8 = pnand %p2969_p5, %p3236_p13  ;;  %p2977_p6 = scmp.lt.s32.totalorder %s2975_s12, %s2968_s27 }
  0x6c   : > { %p2972_p9 = pneg %p2971_p8  ;;  %p2978_p0 = por %p2977_p6, %p2976_p1 }
  0x6e   : > { %p2979_p2 = pnand %p2978_p0, %p2972_p9 }
  0x70   : > { %2982 = shalt.err (!%p2979_p2)
}
  0x71   : > { %2799 = dma.hbm_to_vmem [thread:$0]  (!%p3212_p10), %s3312_s23, 2048, %s3315_s28, %s3230_s24, %s3730_s13, %s3730_s13, %s3729_s11  }
  0x72   : > { %p3731_p13 = scmp.ne.s32.totalorder %s3726_s16, 0 }
  0x73   : > { %s657_s29 = sand.u32 (!%p3731_p13), 1, %s3029_s19   ;;  %p3732_p12 = scmp.ne.s32.totalorder (!%p3731_p13), %s3720_s30, 0 }
  0x74   : > { %655 = sbr.rel (%p3731_p13) target bundleno = 2671 (0xa6f), region = 80  ;;  %s3345_s10 = sshll.u32 (!%p3731_p13), %s657_s29, 7 }
  0x75   : > { %s658_s9 = scalar_lea.sflag (!%p3731_p13), [#allocation5], %s657_s29  ;;  %s3348_s6 = scalar_lea.vmem (!%p3731_p13), [#allocation4], %s3345_s10 }
  0x7b   : > { %3016 = dma.done.wait (%p3732_p12), %s658_s9, 2048  }
  0x7c   : > { %3018 = vsyncadd (%p3732_p12), %s658_s9, 4294965248  ;;  %s3733_s26 = sadd.s32 4294967295, %s3053_s25   ;;  %s3357_s11 = scalar_lea.vmem [#allocation6], %s3345_s10 }
  0x7d   : > { %s666_s24 = sand.u32 1, %s3733_s26  }
  0x7e   : > { %s667_s16 = scalar_lea.sflag [#allocation7], %s666_s24 }
  0x7f   : > { %3020 = dma.done.wait (%p3732_p12), %s667_s16, 4096  }
  0x80   : > { %3022 = vsyncadd (%p3732_p12), %s667_s16, 4294963200  ;;  %p807_p10 = scmp.lt.s32.totalorder %s3037_s21, 1  ;;  %s816_s13 = ssub.s32 1, %s3041_s22  ;;  %v901_v2 = vld [vmem:[%s3348_s6] sm:$0xff]  ;;  %v902_v3 = vld [vmem:[%s3348_s6 + $0x8] sm:$0xff]  ;;  %v3060_v5 = vmov 0.0|0.0  }
  0x81   : > { %p817_p3 = scmp.lt.s32.totalorder %s816_s13, 1  ;;  %p799_p7 = scmp.lt.s32.totalorder %s3041_s22, 1  ;;  %v988_v4 = vld [vmem:[%s3357_s11] sm:$0xff]  ;;  %2624 = vmatprep.subr.bf16.mxu0 %v3060_v5  ;;  %v2625_v6 = vpack.c.bf16 %v902_v3, %v901_v2  ;;  %2648 = vmatprep.subr.bf16.mxu1 %v3060_v5  ;;  %v989_v7 = vld [vmem:[%s3357_s11 + $0x8] sm:$0xff]  ;;  %v903_v8 = vld [vmem:[%s3348_s6 + $0x10] sm:$0xff]  ;;  %vm3061_vm0 = vmmov 0  }
  0x82   : > { %s3756_s21 = smov (!%p807_p10, %s3037_s21), 1  ;;  %v904_v9 = vld [vmem:[%s3348_s6 + $0x18] sm:$0xff]  ;;  %v2649_v10 = vpack.c.bf16 %v989_v7, %v988_v4  ;;  %v990_v11 = vld [vmem:[%s3357_s11 + $0x10] sm:$0xff]  ;;  %v905_v15 = vld [vmem:[%s3348_s6 + $0x20] sm:$0xff]  ;;  %v3062_v52 = vmov 0.0   ;;  %vm1208_vm1 = vcmask 523264  }
  0x83   : > { %s3758_s13 = smov (!%p817_p3, %s816_s13), 1  ;;  %s3760_s22 = smov (!%p799_p7, %s3041_s22), 1  ;;  %v991_v12 = vld [vmem:[%s3357_s11 + $0x18] sm:$0xff]  ;;  %2626 = vmatpush3.bf16.msra.mxu0 %v2625_v6  ;;  %v2628_v13 = vpack.c.bf16 %v904_v9, %v903_v8  ;;  %v906_v16 = vld [vmem:[%s3348_s6 + $0x28] sm:$0xff]  ;;  %v992_v17 = vld [vmem:[%s3357_s11 + $0x20] sm:$0xff]  ;;  %2493 = vmatprep.mubr.msk.f32.mxu0 %vm3061_vm0, %v3062_v52  ;;  %vm1285_vm2 = vcmask 64512  }
  0x84   : > { %s2316_s30 = sshll.u32 %s3758_s13, 1  ;;  %s2314_s28 = sshll.u32 %s3760_s22, 1  ;;  %2650 = vmatpush3.bf16.msra.mxu1 %v2649_v10  ;;  %2627 = vmatprep.subr.bf16.mxu0 %v3060_v5  ;;  %v2652_v14 = vpack.c.bf16 %v991_v12, %v990_v11  ;;  %v993_v18 = vld [vmem:[%s3357_s11 + $0x28] sm:$0xff]  ;;  %v2631_v19 = vpack.c.bf16 %v906_v16, %v905_v15  ;;  %v907_v29 = vld [vmem:[%s3348_s6 + $0x30] sm:$0xff]  ;;  %v908_v30 = vld [vmem:[%s3348_s6 + $0x38] sm:$0xff] }
  0x85   : > { %s822_s23 = sadd.s32 %s2316_s30, %s3756_s21  ;;  %s3373_s17 = sadd.s32 %s2314_s28, %s3756_s21  ;;  %2651 = vmatprep.subr.bf16.mxu1 %v3060_v5  ;;  %v2655_v20 = vpack.c.bf16 %v993_v18, %v992_v17  ;;  %v2634_v31 = vpack.c.bf16 %v908_v30, %v907_v29  ;;  %v994_v32 = vld [vmem:[%s3357_s11 + $0x30] sm:$0xff]  ;;  %v995_v33 = vld [vmem:[%s3357_s11 + $0x38] sm:$0xff]  ;;  %v909_v35 = vld [vmem:[%s3348_s6 + $0x40] sm:$0xff]  ;;  %2528 = vmatprep.mubr.msk.f32.mxu1 %vm3061_vm0, %v3062_v52 }
  0x86   : > { %s2317_s14 = sshll.u32 %s822_s23, 3  ;;  %s2315_s15 = sshll.u32 %s3373_s17, 3  ;;  %v2658_v34 = vpack.c.bf16 %v995_v33, %v994_v32  ;;  %v910_v36 = vld [vmem:[%s3348_s6 + $0x48] sm:$0xff]  ;;  %v996_v38 = vld [vmem:[%s3357_s11 + $0x40] sm:$0xff]  ;;  %v911_v41 = vld [vmem:[%s3348_s6 + $0x50] sm:$0xff] }
  0x87   : > { %s824_s5 = scalar_lea.vmem %s3684_s3, %s2317_s14  ;;  %s815_s9 = scalar_lea.vmem %s3683_s2, %s2315_s15  ;;  %2629 = vmatpush3.bf16.msra.mxu0 %v2628_v13  ;;  %v2637_v37 = vpack.c.bf16 %v910_v36, %v909_v35  ;;  %v997_v39 = vld [vmem:[%s3357_s11 + $0x48] sm:$0xff]  ;;  %v912_v42 = vld [vmem:[%s3348_s6 + $0x58] sm:$0xff]  ;;  %v998_v44 = vld [vmem:[%s3357_s11 + $0x50] sm:$0xff] }
  0x88   : > { %v874_v0 = vld [vmem:[%s824_s5] sm:$0xff]  ;;  %2653 = vmatpush3.bf16.msra.mxu1 %v2652_v14  ;;  %2630 = vmatprep.subr.bf16.mxu0 %v3060_v5  ;;  %v2661_v40 = vpack.c.bf16 %v997_v39, %v996_v38  ;;  %v2640_v43 = vpack.c.bf16 %v912_v42, %v911_v41  ;;  %v999_v45 = vld [vmem:[%s3357_s11 + $0x58] sm:$0xff]  ;;  %v914_v48 = vld [vmem:[%s3348_s6 + $0x68] sm:$0xff]  ;;  %s2344_s21 = sshll.u32 %s3760_s22, 7  ;;  %s801_s24 = scalar_lea.vmem %s3681_s0, %s3760_s22 }
  0x89   : > { %875 = vadd.xlane.f32.xlu0 %v874_v0  ;;  %v3384_v1 = vld [vmem:[%s815_s9] sm:$0xff]  ;;  %2654 = vmatprep.subr.bf16.mxu1 %v3060_v5  ;;  %v2664_v46 = vpack.c.bf16 %v999_v45, %v998_v44  ;;  %v1001_v51 = vld [vmem:[%s3357_s11 + $0x68] sm:$0xff]  ;;  %v915_v54 = vld [vmem:[%s3348_s6 + $0x70] sm:$0xff]  ;;  %s3458_s13 = scalar_lea.vmem %s3685_s4, %s2344_s21  ;;  %s804_s14 = scalar_lea.vmem %s3682_s1, %s3760_s22 }
  0x8a   : > { %v913_v47 = vld [vmem:[%s3348_s6 + $0x60] sm:$0xff]  ;;  %v916_v55 = vld [vmem:[%s3348_s6 + $0x78] sm:$0xff]  ;;  %v1002_v56 = vld [vmem:[%s3357_s11 + $0x70] sm:$0xff]  ;;  %s3063_s18 = smov 64   ;;  %s3514_s27 = scalar_lea.vmem [#allocation8], %s3345_s10 }
  0x8b   : > { %2632 = vmatpush3.bf16.msra.mxu0 %v2631_v19  ;;  %v1000_v49 = vld [vmem:[%s3357_s11 + $0x60] sm:$0xff]  ;;  %v2643_v50 = vpack.c.bf16 %v914_v48, %v913_v47  ;;  %v1003_v57 = vld [vmem:[%s3357_s11 + $0x78] sm:$0xff]  ;;  %v2646_v58 = vpack.c.bf16 %v916_v55, %v915_v54  ;;  %v1105_v4 = vld [vmem:[%s3458_s13 + $0x8] sm:$0xff]  ;;  %s833_s12 = scalar_lea.vmem %s3689_s8, %s3760_s22  ;;  %s2345_s29 = sshll.u32 %s3760_s22, 8 }
  0x8c   : > { %2656 = vmatpush3.bf16.msra.mxu1 %v2655_v20  ;;  %2633 = vmatprep.subr.bf16.mxu0 %v3060_v5  ;;  %v2667_v53 = vpack.c.bf16 %v1001_v51, %v1000_v49  ;;  %v2670_v59 = vpack.c.bf16 %v1003_v57, %v1002_v56  ;;  %v1104_v3 = vld [vmem:[%s3458_s13] sm:$0xff]  ;;  %v1106_v11 = vld [vmem:[%s3458_s13 + $0x10] sm:$0xff]  ;;  %v1107_v12 = vld [vmem:[%s3458_s13 + $0x18] sm:$0xff]  ;;  %s3734_s6 = sld [smem:[#allocation20_spill]]  ;;  %s3735_s11 = sld [smem:[#allocation18_spill]] }
  0x8d   : > { %1076 = vadd.xlane.f32.xlu0 %v3384_v1  ;;  %2657 = vmatprep.subr.bf16.mxu1 %v3060_v5  ;;  %v2348_v6 = vld [vmem:[%s804_s14] ss:$0 sm:$0xff]  ;;  %v2673_v8 = vpack.c.bf16 %v1105_v4, %v1104_v3  ;;  %v2676_v14 = vpack.c.bf16 %v1107_v12, %v1106_v11  ;;  %v1109_v16 = vld [vmem:[%s3458_s13 + $0x28] sm:$0xff]  ;;  %v1110_v19 = vld [vmem:[%s3458_s13 + $0x30] sm:$0xff]  ;;  %s3736_s14 = sld [smem:[#allocation19_spill]]  ;;  %s3737_s5 = sld [smem:[#allocation22_spill]] }
  0x8e   : > { %v1108_v15 = vld [vmem:[%s3458_s13 + $0x20] sm:$0xff]  ;;  %v1111_v20 = vld [vmem:[%s3458_s13 + $0x38] sm:$0xff]  ;;  %v1117_v30 = vld [vmem:[%s3458_s13 + $0x68] sm:$0xff]  ;;  %s3738_s21 = sld [smem:[#allocation21_spill]]  ;;  %s3740_s30 = sld [smem:[#allocation24_spill]] }
  0x8f   : > { %2635 = vmatpush3.bf16.msra.mxu0 %v2634_v31  ;;  %v2679_v18 = vpack.c.bf16 %v1109_v16, %v1108_v15  ;;  %v1116_v29 = vld [vmem:[%s3458_s13 + $0x60] sm:$0xff]  ;;  %v1119_v35 = vld [vmem:[%s3458_s13 + $0x78] sm:$0xff]  ;;  %v1126_v3 = vld [vmem:[%s3514_s27 + $0x30] sm:$0xff] }
  0x90   : > { %2659 = vmatpush3.bf16.msra.mxu1 %v2658_v34  ;;  %2636 = vmatprep.subr.bf16.mxu0 %v3060_v5  ;;  %v2691_v32 = vpack.c.bf16 %v1117_v30, %v1116_v29  ;;  %v1118_v34 = vld [vmem:[%s3458_s13 + $0x70] sm:$0xff]  ;;  %v1120_v57 = vld [vmem:[%s3514_s27] sm:$0xff]  ;;  %v1127_v4 = vld [vmem:[%s3514_s27 + $0x38] sm:$0xff] }
  0x91   : > { %2660 = vmatprep.subr.bf16.mxu1 %v3060_v5  ;;  %v2694_v36 = vpack.c.bf16 %v1119_v35, %v1118_v34  ;;  %v1132_v30 = vld [vmem:[%s3514_s27 + $0x60] sm:$0xff]  ;;  %v1134_v35 = vld [vmem:[%s3514_s27 + $0x70] sm:$0xff] }
  0x92   : > { %s3560_s26 = scalar_lea.vmem %s3734_s6, %s2345_s29 }
  0x93   : > { %2638 = vmatpush3.bf16.msra.mxu0 %v2637_v37 }
  0x94   : > { %2662 = vmatpush3.bf16.msra.mxu1 %v2661_v40  ;;  %2639 = vmatprep.subr.bf16.mxu0 %v3060_v5  ;;  %s848_s6 = scalar_lea.vmem %s3738_s21, %s2314_s28  ;;  %s867_s23 = scalar_lea.vmem %s3740_s30, %s2315_s15 }
  0x95   : > { %2663 = vmatprep.subr.bf16.mxu1 %v3060_v5 }
  0x97   : > { %2641 = vmatpush3.bf16.msra.mxu0 %v2640_v43 }
  0x98   : > { %2665 = vmatpush3.bf16.msra.mxu1 %v2664_v46  ;;  %2642 = vmatprep.subr.bf16.mxu0 %v3060_v5 }
  0x99   : > { %2666 = vmatprep.subr.bf16.mxu1 %v3060_v5 }
  0x9b   : > { %2644 = vmatpush3.bf16.msra.mxu0 %v2643_v50 }
  0x9c   : > { %2668 = vmatpush3.bf16.msra.mxu1 %v2667_v53  ;;  %2645 = vmatprep.subr.bf16.mxu0 %v3060_v5 }
  0x9d   : > { %2669 = vmatprep.subr.bf16.mxu1 %v3060_v5 }
  0x9f   : > { %2647 = vmatpush3.bf16.msra.mxu0 %v2646_v58  ;;  %v1121_v58 = vld [vmem:[%s3514_s27 + $0x8] sm:$0xff] }
  0xa0   : > { %2671 = vmatpush3.bf16.msra.mxu1 %v2670_v59  ;;  %2672 = vmatprep.subr.bf16.mxu0 %v3060_v5  ;;  %v1122_v59 = vld [vmem:[%s3514_s27 + $0x10] sm:$0xff] }
  0xa1   : > { %2566 = vmatprep.subr.mxu1 %v3062_v52 }
 0x116   : > { %v876_v21 = vpop.xlane.xlu0 %875 }
 0x117   : > { %v878_v22 = vmul.f32 0.0078125, %v876_v21  ;;  %v2682_v21 = vpack.c.bf16 %v1111_v20, %v1110_v19 }
 0x119   : > { %v3407_v23 = vsub.f32 %v874_v0, %v878_v22  ;;  %v2347_v0 = vld [vmem:[%s801_s24] ss:$0 sm:$0xff]  ;;  %s3739_s24 = sld [smem:[#allocation23_spill]] }
 0x11a   : > { %v1077_v24 = vpop.xlane.xlu0 %1076  ;;  %v1112_v22 = vld [vmem:[%s3458_s13 + $0x40] sm:$0xff] }
 0x11b   : > { %v1079_v25 = vmul.f32 0.0078125, %v1077_v24  ;;  %v880_v26 = vmul.f32 %v3407_v23, %v3407_v23 }
 0x11d   : > { %v3412_v27 = vsub.f32 %v3384_v1, %v1079_v25  ;;  %881 = vadd.xlane.f32.xlu1 %v880_v26  ;;  %v1114_v25 = vld [vmem:[%s3458_s13 + $0x50] sm:$0xff]  ;;  %v1115_v26 = vld [vmem:[%s3458_s13 + $0x58] sm:$0xff] }
 0x11f   : > { %v1081_v28 = vmul.f32 %v3412_v27, %v3412_v27  ;;  %s856_s16 = scalar_lea.vmem %s3739_s24, %s3760_s22 }
 0x121   : > { %1082 = vadd.xlane.f32.xlu1 %v1081_v28  ;;  %v2688_v28 = vpack.c.bf16 %v1115_v26, %v1114_v25  ;;  %v1130_v25 = vld [vmem:[%s3514_s27 + $0x50] sm:$0xff] }
 0x1aa   : > { %v882_v60 = vpop.xlane.xlu1 %881 }
 0x1ab   : > { %v883_v61 = vmul.f32 0.0078125, %v882_v60  ;;  %v2709_v60 = vpack.c.bf16 %v1121_v58, %v1120_v57  ;;  %v1727_v58 = vld [vmem:[%s3560_s26 + $0x20] sm:$0xff] }
 0x1ad   : > { %v884_v62 = vadd.f32 1e-05, %v883_v61  ;;  %v1123_v61 = vld [vmem:[%s3514_s27 + $0x18] sm:$0xff] }
 0x1ae   : > { %v1083_v9 = vpop.xlane.xlu1 %1082 }
 0x1af   : > { %2871 = vrsqrt.f32 %v884_v62  ;;  %v1084_v13 = vmul.f32 0.0078125, %v1083_v9  ;;  %v2712_v62 = vpack.c.bf16 %v1123_v61, %v1122_v59  ;;  %v1729_v59 = vld [vmem:[%s3560_s26 + $0x30] sm:$0xff]  ;;  %v1734_v61 = vld [vmem:[%s3560_s26 + $0x58] sm:$0xff] }
 0x1b1   : > { %v1085_v17 = vadd.f32 1e-05, %v1084_v13 }
 0x1b3   : > { %2873 = vrsqrt.f32 %v1085_v17 }
 0x1b9   : > { %v2872_v63 = vpop.eup %2871 }
 0x1ba   : > { %v886_v2 = vmul.f32 %v2872_v63, %v3407_v23  ;;  %v1113_v23 = vld [vmem:[%s3458_s13 + $0x48] sm:$0xff]  ;;  %v1124_v63 = vld [vmem:[%s3514_s27 + $0x20] sm:$0xff]  ;;  %s836_s13 = scalar_lea.vmem %s3735_s11, %s3760_s22 }
 0x1bb   : > { %v2685_v24 = vpack.c.bf16 %v1113_v23, %v1112_v22  ;;  %v1128_v23 = vld [vmem:[%s3514_s27 + $0x40] sm:$0xff] }
 0x1bc   : > { %v893_v7 = vmul.f32 %v2347_v0, %v886_v2 }
 0x1bd   : > { %v2874_v31 = vpop.eup %2873 }
 0x1be   : > { %v900_v10 = vadd.f32 %v2348_v6, %v893_v7  ;;  %v1087_v33 = vmul.f32 %v2874_v31, %v3412_v27  ;;  %v1133_v31 = vld [vmem:[%s3514_s27 + $0x68] sm:$0xff] }
 0x1c0   : > { %2494 = vmatmul.mubr.f32.vlgmr.msra.gmra.mrb[0].mxu0 %v900_v10  ;;  %2529 = vmatmul.mubr.f32.vlgmr.msra.gmra.mrb[0].mxu1 %v900_v10  ;;  %v1094_v37 = vmul.f32 %v2347_v0, %v1087_v33  ;;  %v1125_v0 = vld [vmem:[%s3514_s27 + $0x28] sm:$0xff] }
 0x1c1   : > { %2674 = vmatpush3.bf16.msra.mxu0 %v2673_v8  ;;  %2563 = vmatprep.mubr.msk.f32.mxu0 %vm3061_vm0, %v3062_v52  ;;  %v2715_v2 = vpack.c.bf16 %v1125_v0, %v1124_v63  ;;  %v1731_v0 = vld [vmem:[%s3560_s26 + $0x40] sm:$0xff] }
 0x1c2   : > { %2675 = vmatprep.subr.bf16.mxu0 %v3060_v5  ;;  %2568 = vmatprep.mubr.msk.f32.mxu1 %vm3061_vm0, %v3062_v52  ;;  %v1101_v38 = vadd.f32 %v2348_v6, %v1094_v37  ;;  %v2718_v6 = vpack.c.bf16 %v1127_v4, %v1126_v3 }
 0x1c5   : > { %2677 = vmatpush3.bf16.msra.mxu0 %v2676_v14 }
 0x1c6   : > { %2678 = vmatprep.subr.bf16.mxu0 %v3060_v5 }
 0x1c9   : > { %2680 = vmatpush3.bf16.msra.mxu0 %v2679_v18 }
 0x1ca   : > { %2681 = vmatprep.subr.bf16.mxu0 %v3060_v5 }
 0x1cd   : > { %2683 = vmatpush3.bf16.msra.mxu0 %v2682_v21 }
 0x1ce   : > { %2684 = vmatprep.subr.bf16.mxu0 %v3060_v5 }
 0x1d1   : > { %2686 = vmatpush3.bf16.msra.mxu0 %v2685_v24  ;;  %v1129_v24 = vld [vmem:[%s3514_s27 + $0x48] sm:$0xff] }
 0x1d2   : > { %2687 = vmatprep.subr.bf16.mxu0 %v3060_v5  ;;  %v2697_v26 = vpack.c.bf16 %v1129_v24, %v1128_v23  ;;  %v1743_v23 = vld [vmem:[%s3560_s26 + $0xa0] sm:$0xff]  ;;  %v1745_v24 = vld [vmem:[%s3560_s26 + $0xb0] sm:$0xff] }
 0x1d5   : > { %2689 = vmatpush3.bf16.msra.mxu0 %v2688_v28  ;;  %v1131_v28 = vld [vmem:[%s3514_s27 + $0x58] sm:$0xff] }
 0x1d6   : > { %2690 = vmatprep.subr.bf16.mxu0 %v3060_v5  ;;  %v2700_v29 = vpack.c.bf16 %v1131_v28, %v1130_v25  ;;  %v1750_v28 = vld [vmem:[%s3560_s26 + $0xd8] sm:$0xff] }
 0x1d9   : > { %2692 = vmatpush3.bf16.msra.mxu0 %v2691_v32  ;;  %v2703_v32 = vpack.c.bf16 %v1133_v31, %v1132_v30  ;;  %v1747_v31 = vld [vmem:[%s3560_s26 + $0xc0] sm:$0xff] }
 0x1da   : > { %2693 = vmatprep.subr.bf16.mxu0 %v3060_v5 }
 0x1dd   : > { %2695 = vmatpush3.bf16.msra.mxu0 %v2694_v36  ;;  %v1135_v36 = vld [vmem:[%s3514_s27 + $0x78] sm:$0xff] }
 0x1de   : > { %2708 = vmatprep.subr.bf16.mxu0 %v3060_v5  ;;  %v2706_v37 = vpack.c.bf16 %v1135_v36, %v1134_v35 }
 0x1e0   : > { %2564 = vmatmul.mubr.f32.vlgmr.msra.gmra.mrb[2].mxu0 %v1101_v38 }
 0x1e1   : > { %2621 = vmatprep.mubr.msk.f32.mxu0 %vm3061_vm0, %v3062_v52  ;;  %2710 = vmatpush3.bf16.msra.mxu0 %v2709_v60  ;;  %v1732_v60 = vld [vmem:[%s3560_s26 + $0x48] sm:$0xff] }
 0x1e2   : > { %2711 = vmatprep.subr.bf16.mxu0 %v3060_v5  ;;  %v2728_v63 = vpack.c.bf16 %v1734_v61, %v1732_v60 }
 0x1e5   : > { %2713 = vmatpush3.bf16.msra.mxu0 %v2712_v62  ;;  %v2726_v62 = vpack.c.bf16 %v1729_v59, %v1727_v58 }
 0x1e6   : > { %2714 = vmatprep.subr.bf16.mxu0 %v3060_v5 }
 0x1e9   : > { %2716 = vmatpush3.bf16.msra.mxu0 %v2715_v2  ;;  %v1733_v2 = vld [vmem:[%s3560_s26 + $0x50] sm:$0xff] }
 0x1ea   : > { %2717 = vmatprep.subr.bf16.mxu0 %v3060_v5  ;;  %v2730_v3 = vpack.c.bf16 %v1733_v2, %v1731_v0 }
 0x1ed   : > { %2719 = vmatpush3.bf16.msra.mxu0 %v2718_v6 }
 0x293   : > { %v983_v39 = vpop.f32.mrb[0].mxu0  ;;  %v1070_v27 = vpop.f32.mrb[0].mxu1 }
 0x294   : > { %v2530_v40 = vpop.f32.mrb[1].mxu1  ;;  %1375 = vrot.lane.b32.xlu1 %v983_v39, %s3063_s18  ;;  %v2495_v41 = vpop.f32.mrb[1].mxu0  ;;  %2567 = vmatpush3.xpose.msk.msra.mxu1 %vm1208_vm1, %v983_v39 }
 0x295   : > { %2571 = vmatprep.subr.mxu1 %v3062_v52 }
 0x2b3   : > { %v1203_v42 = vpop.f32.mrb[2].mxu0 }
 0x2b4   : > { %v1207_v43 = vmul.f32 0.088388346, %v1203_v42  ;;  %v2565_v44 = vpop.f32.mrb[3].mxu0 }
 0x2b6   : > { %2569 = vmatmul.mubr.msk.f32.vlgmr.msra.gmra.mrb[2].mxu1 %vm1208_vm1, %v1207_v43 }
 0x2b7   : > { %2572 = vmatpush3.msra.mxu1 %v1070_v27  ;;  %2573 = vmatprep.mubr.msk.f32.mxu1 %vm3061_vm0, %v3062_v52 }
 0x2b8   : > { %2576 = vmatprep.subr.mxu1 %v3062_v52 }
 0x306   : > { %v1376_v54 = vpop.permute.xlu1 %1375 }
 0x389   : > { %v1281_v45 = vpop.f32.mrb[2].mxu1 }
 0x38a   : > { %v2570_v46 = vpop.f32.mrb[3].mxu1  ;;  %v1286_v47 = vsel %vm1285_vm2, %v1281_v45, -inf }
 0x38b   : > { %1287 = vmax.xlane.f32.xlu0 %v1286_v47 }
 0x3a1   : > { %1373 = vrot.lane.b32.xlu0 %v1207_v43, %s3063_s18 }
 0x3a5   : > { %1461 = vrot.lane.b32.xlu0 %v1070_v27, %s3063_s18  ;;  %s839_s18 = scalar_lea.vmem %s3736_s14, %s3760_s22 }
 0x418   : > { %v1288_v48 = vpop.xlane.xlu0 %1287 }
 0x419   : > { %v1289_v49 = vsub.f32 %v1281_v45, %v1288_v48 }
 0x41b   : > { %v1290_v50 = vmul.f32 1.442695, %v1289_v49 }
 0x41c   : > { %v1374_v51 = vpop.permute.xlu0 %1373 }
 0x41d   : > { %2875 = vpow2.f32 %v1290_v50  ;;  %v1723_v50 = vld [vmem:[%s3560_s26] sm:$0xff] }
 0x420   : > { %v1462_v56 = vpop.permute.xlu0 %1461 }
 0x427   : > { %v2876_v53 = vpop.eup %2875 }
 0x428   : > { %2574 = vmatmul.mubr.msk.f32.vlgmr.msra.gmra.mrb[4].mxu1 %vm1285_vm2, %v2876_v53  ;;  %v1292_v55 = vsel %vm1285_vm2, %v2876_v53, 0.0  ;;  %v1725_v53 = vld [vmem:[%s3560_s26 + $0x10] sm:$0xff] }
 0x429   : > { %2577 = vmatpush3.xpose.msk.msra.mxu1 %vm1208_vm1, %v1376_v54  ;;  %1293 = vadd.xlane.f32.xlu0 %v1292_v55  ;;  %v1728_v54 = vld [vmem:[%s3560_s26 + $0x28] sm:$0xff]  ;;  %v1730_v55 = vld [vmem:[%s3560_s26 + $0x38] sm:$0xff] }
 0x42a   : > { %2578 = vmatprep.mubr.msk.f32.mxu1 %vm3061_vm0, %v3062_v52  ;;  %2581 = vmatprep.subr.mxu1 %v3062_v52  ;;  %v2724_v57 = vpack.c.bf16 %v1730_v55, %v1728_v54 }
 0x42c   : > { %2579 = vmatmul.mubr.msk.f32.vlgmr.msra.gmra.mrb[6].mxu1 %vm1208_vm1, %v1374_v51 }
 0x42d   : > { %2582 = vmatpush3.msra.mxu1 %v1462_v56  ;;  %2583 = vmatprep.mubr.msk.f32.mxu1 %vm3061_vm0, %v3062_v52  ;;  %v2722_v56 = vpack.c.bf16 %v1725_v53, %v1723_v50 }
 0x42e   : > { %2696 = vmatprep.subr.bf16.mxu1 %v3060_v5 }
 0x4b6   : > { %v1294_v7 = vpop.xlane.xlu0 %1293 }
 0x4b7   : > { %2877 = vrcp.f32 %v1294_v7 }
 0x4c1   : > { %v2878_v8 = vpop.eup %2877 }
 0x4c2   : > { %v1369_v9 = vmul.f32 %v2878_v8, %v1294_v7 }
 0x4c4   : > { %v1370_v10 = vsub.f32 2.0, %v1369_v9  ;;  %v1736_v9 = vld [vmem:[%s3560_s26 + $0x68] sm:$0xff] }
 0x4c6   : > { %v1371_v11 = vmul.f32 %v2878_v8, %v1370_v10  ;;  %v1738_v10 = vld [vmem:[%s3560_s26 + $0x78] sm:$0xff] }
 0x4fb   : > { %v1364_v12 = vpop.f32.mrb[4].mxu1 }
 0x4fc   : > { %v1372_v13 = vmul.f32 %v1371_v11, %v1364_v12  ;;  %v2575_v14 = vpop.f32.mrb[5].mxu1  ;;  %v2732_v11 = vpack.c.bf16 %v1738_v10, %v1736_v9  ;;  %v1735_v12 = vld [vmem:[%s3560_s26 + $0x60] sm:$0xff] }
 0x4fe   : > { %2622 = vmatmul.mubr.msk.f32.vlgmr.msra.gmra.mrb[4].mxu0 %vm1208_vm1, %v1372_v13  ;;  %v1737_v13 = vld [vmem:[%s3560_s26 + $0x70] sm:$0xff] }
 0x4ff   : > { %v1447_v15 = vpop.f32.mrb[6].mxu1  ;;  %v2734_v14 = vpack.c.bf16 %v1737_v13, %v1735_v12 }
 0x500   : > { %v2580_v16 = vpop.f32.mrb[7].mxu1  ;;  %v1451_v17 = vsel %vm1285_vm2, %v1447_v15, -inf }
 0x501   : > { %1452 = vmax.xlane.f32.xlu1 %v1451_v17  ;;  %v1742_v16 = vld [vmem:[%s3560_s26 + $0x98] sm:$0xff] }
 0x58e   : > { %v1453_v18 = vpop.xlane.xlu1 %1452 }
 0x58f   : > { %v1454_v19 = vsub.f32 %v1447_v15, %v1453_v18  ;;  %v1740_v15 = vld [vmem:[%s3560_s26 + $0x88] sm:$0xff]  ;;  %v1739_v18 = vld [vmem:[%s3560_s26 + $0x80] sm:$0xff] }
 0x590   : > { %v2736_v17 = vpack.c.bf16 %v1742_v16, %v1740_v15 }
 0x591   : > { %v1455_v20 = vmul.f32 1.442695, %v1454_v19  ;;  %v1741_v19 = vld [vmem:[%s3560_s26 + $0x90] sm:$0xff] }
 0x593   : > { %2879 = vpow2.f32 %v1455_v20  ;;  %v1744_v20 = vld [vmem:[%s3560_s26 + $0xa8] sm:$0xff] }
 0x59d   : > { %v2880_v21 = vpop.eup %2879 }
 0x59e   : > { %2584 = vmatmul.mubr.msk.f32.vlgmr.msra.gmra.mrb[8].mxu1 %vm1285_vm2, %v2880_v21  ;;  %v1457_v22 = vsel %vm1285_vm2, %v2880_v21, 0.0  ;;  %v2738_v21 = vpack.c.bf16 %v1741_v19, %v1739_v18 }
 0x59f   : > { %1458 = vadd.xlane.f32.xlu1 %v1457_v22  ;;  %2602 = vmatprep.mubr.msk.f32.mxu1 %vm3061_vm0, %v3062_v52  ;;  %v1746_v22 = vld [vmem:[%s3560_s26 + $0xb8] sm:$0xff] }
 0x5a0   : > { %2698 = vmatpush3.bf16.msra.mxu1 %v2697_v26  ;;  %v2740_v25 = vpack.c.bf16 %v1746_v22, %v1744_v20  ;;  %v1748_v26 = vld [vmem:[%s3560_s26 + $0xc8] sm:$0xff] }
 0x5a1   : > { %2699 = vmatprep.subr.bf16.mxu1 %v3060_v5  ;;  %v2744_v30 = vpack.c.bf16 %v1750_v28, %v1748_v26 }
 0x5a4   : > { %2701 = vmatpush3.bf16.msra.mxu1 %v2700_v29  ;;  %v2742_v29 = vpack.c.bf16 %v1745_v24, %v1743_v23 }
 0x5a5   : > { %2702 = vmatprep.subr.bf16.mxu1 %v3060_v5 }
 0x5a8   : > { %2704 = vmatpush3.bf16.msra.mxu1 %v2703_v32  ;;  %v1749_v32 = vld [vmem:[%s3560_s26 + $0xd0] sm:$0xff] }
 0x5a9   : > { %2705 = vmatprep.subr.bf16.mxu1 %v3060_v5  ;;  %v2335_v5 = vld [vmem:[%s833_s12] ss:$0 sm:$0xff]  ;;  %v2746_v35 = vpack.c.bf16 %v1749_v32, %v1747_v31  ;;  %s3608_s12 = scalar_lea.vmem %s3737_s5, %s2345_s29 }
 0x5aa   : > { %v1897_v50 = vld [vmem:[%s3608_s12 + $0x8] sm:$0xff]  ;;  %v1914_v53 = vld [vmem:[%s3608_s12 + $0x90] sm:$0xff]  ;;  %v1915_v54 = vld [vmem:[%s3608_s12 + $0x98] sm:$0xff] }
 0x5ab   : > { %v2756_v55 = vpack.c.bf16 %v1915_v54, %v1914_v53  ;;  %v1916_v59 = vld [vmem:[%s3608_s12 + $0xa0] sm:$0xff]  ;;  %v1917_v60 = vld [vmem:[%s3608_s12 + $0xa8] sm:$0xff]  ;;  %v1918_v2 = vld [vmem:[%s3608_s12 + $0xb0] sm:$0xff] }
 0x5ac   : > { %2707 = vmatpush3.bf16.msra.mxu1 %v2706_v37  ;;  %v1751_v37 = vld [vmem:[%s3560_s26 + $0xe0] sm:$0xff]  ;;  %v2760_v61 = vpack.c.bf16 %v1917_v60, %v1916_v59  ;;  %v1921_v10 = vld [vmem:[%s3608_s12 + $0xc8] sm:$0xff]  ;;  %v1922_v15 = vld [vmem:[%s3608_s12 + $0xd0] sm:$0xff] }
 0x5ad   : > { %v1920_v9 = vld [vmem:[%s3608_s12 + $0xc0] sm:$0xff]  ;;  %v1905_v13 = vld [vmem:[%s3608_s12 + $0x48] sm:$0xff]  ;;  %v1923_v16 = vld [vmem:[%s3608_s12 + $0xd8] sm:$0xff] }
 0x5ae   : > { %v1904_v12 = vld [vmem:[%s3608_s12 + $0x40] sm:$0xff]  ;;  %v1906_v18 = vld [vmem:[%s3608_s12 + $0x50] sm:$0xff]  ;;  %v1907_v19 = vld [vmem:[%s3608_s12 + $0x58] sm:$0xff] }
 0x5af   : > { %v2774_v20 = vpack.c.bf16 %v1907_v19, %v1906_v18  ;;  %v1925_v22 = vld [vmem:[%s3608_s12 + $0xe8] sm:$0xff]  ;;  %v1908_v24 = vld [vmem:[%s3608_s12 + $0x60] sm:$0xff]  ;;  %v1926_v28 = vld [vmem:[%s3608_s12 + $0xf0] sm:$0xff] }
 0x5b0   : > { %v1910_v31 = vld [vmem:[%s3608_s12 + $0x70] sm:$0xff]  ;;  %v1911_v32 = vld [vmem:[%s3608_s12 + $0x78] sm:$0xff] }
 0x5d1   : > { %v1684_v33 = vpop.f32.mrb[4].mxu0 }
 0x5d2   : > { %v2623_v34 = vpop.f32.mrb[5].mxu0 }
 0x5d3   : > { %v1754_v34 = vld [vmem:[%s3560_s26 + $0xf8] sm:$0xff] }
 0x62c   : > { %v1459_v38 = vpop.xlane.xlu1 %1458 }
 0x62d   : > { %2881 = vrcp.f32 %v1459_v38 }
 0x637   : > { %v2882_v39 = vpop.eup %2881 }
 0x638   : > { %v1538_v27 = vmul.f32 %v2882_v39, %v1459_v38  ;;  %v1753_v38 = vld [vmem:[%s3560_s26 + $0xf0] sm:$0xff] }
 0x63a   : > { %v1539_v40 = vsub.f32 2.0, %v1538_v27 }
 0x63c   : > { %v1540_v41 = vmul.f32 %v2882_v39, %v1539_v40  ;;  %v2750_v39 = vpack.c.bf16 %v1753_v38, %v1751_v37  ;;  %v1755_v37 = vld [vmem:[%s848_s6] sm:$0x3] }
 0x671   : > { %v1533_v42 = vpop.f32.mrb[8].mxu1 }
 0x672   : > { %v1541_v43 = vmul.f32 %v1540_v41, %v1533_v42  ;;  %v2585_v44 = vpop.f32.mrb[9].mxu1 }
 0x674   : > { %2603 = vmatmul.mubr.msk.f32.vlgmr.msra.gmra.mrb[10].mxu1 %vm1208_vm1, %v1541_v43  ;;  %v2336_v43 = vld [vmem:[%s836_s13] ss:$0 sm:$0xff] }
 0x675   : > { %1831 = vmatprep.mubr.f32.mxu1 %v3062_v52  ;;  %v1726_v52 = vld [vmem:[%s3560_s26 + $0x18] sm:$0xff] }
 0x747   : > { %v1611_v45 = vpop.f32.mrb[10].mxu1 }
 0x748   : > { %v1685_v46 = vadd.f32 %v1684_v33, %v1611_v45  ;;  %v2604_v47 = vpop.f32.mrb[11].mxu1  ;;  %v1752_v33 = vld [vmem:[%s3560_s26 + $0xe8] sm:$0xff] }
 0x749   : > { %v2748_v36 = vpack.c.bf16 %v1754_v34, %v1752_v33  ;;  %v1912_v47 = vld [vmem:[%s3608_s12 + $0x80] sm:$0xff]  ;;  %v2782_v33 = vpack.c.bf16 %v1911_v32, %v1910_v31  ;;  %v888_v34 = vlaneseq }
 0x74a   : > { %v1694_v48 = vadd.f32 %v2335_v5, %v1685_v46  ;;  %v2337_v5 = vld [vmem:[%s839_s18] ss:$0 sm:$0xff] }
 0x74c   : > { %v3551_v49 = vadd.f32 %v1694_v48, %v3384_v1  ;;  %v1724_v1 = vld [vmem:[%s3560_s26 + $0x8] sm:$0xff] }
 0x74d   : > { %v2720_v51 = vpack.c.bf16 %v1726_v52, %v1724_v1  ;;  %v1913_v48 = vld [vmem:[%s3608_s12 + $0x88] sm:$0xff]  ;;  %v1896_v52 = vld [vmem:[%s3608_s12] sm:$0xff] }
 0x74e   : > { %1698 = vadd.xlane.f32.xlu1 %v3551_v49  ;;  %v2752_v1 = vpack.c.bf16 %v1913_v48, %v1912_v47 }
 0x74f   : > { %2721 = vmatprep.subr.bf16.mxu1 %v2720_v51  ;;  %v2754_v51 = vpack.c.bf16 %v1897_v50, %v1896_v52 }
 0x750   : > { %2723 = vmatpush1.bf16.msra.mxu1 %v2722_v56  ;;  %2753 = vmatprep.subr.bf16.mxu0 %v2752_v1  ;;  %v1898_v56 = vld [vmem:[%s3608_s12 + $0x10] sm:$0xff] }
 0x751   : > { %2725 = vmatprep.subr.bf16.mxu1 %v2724_v57  ;;  %2755 = vmatpush3.bf16.msra.mxu0 %v2754_v51  ;;  %v1899_v57 = vld [vmem:[%s3608_s12 + $0x18] sm:$0xff] }
 0x752   : > { %v2758_v58 = vpack.c.bf16 %v1899_v57, %v1898_v56  ;;  %2757 = vmatprep.subr.bf16.mxu0 %v2756_v55 }
 0x754   : > { %2727 = vmatpush1.bf16.msra.mxu1 %v2726_v62  ;;  %v1900_v62 = vld [vmem:[%s3608_s12 + $0x20] sm:$0xff] }
 0x755   : > { %2729 = vmatprep.subr.bf16.mxu1 %v2728_v63  ;;  %2759 = vmatpush3.bf16.msra.mxu0 %v2758_v58  ;;  %v1901_v63 = vld [vmem:[%s3608_s12 + $0x28] sm:$0xff] }
 0x756   : > { %v2762_v0 = vpack.c.bf16 %v1901_v63, %v1900_v62  ;;  %2761 = vmatprep.subr.bf16.mxu0 %v2760_v61 }
 0x758   : > { %2731 = vmatpush1.bf16.msra.mxu1 %v2730_v3  ;;  %v1919_v3 = vld [vmem:[%s3608_s12 + $0xb8] sm:$0xff] }
 0x759   : > { %2733 = vmatprep.subr.bf16.mxu1 %v2732_v11  ;;  %2763 = vmatpush3.bf16.msra.mxu0 %v2762_v0  ;;  %v2768_v11 = vpack.c.bf16 %v1921_v10, %v1920_v9 }
 0x75c   : > { %2735 = vmatpush1.bf16.msra.mxu1 %v2734_v14  ;;  %v2770_v14 = vpack.c.bf16 %v1905_v13, %v1904_v12 }
 0x75d   : > { %2737 = vmatprep.subr.bf16.mxu1 %v2736_v17  ;;  %v2772_v17 = vpack.c.bf16 %v1923_v16, %v1922_v15 }
 0x760   : > { %2739 = vmatpush1.bf16.msra.mxu1 %v2738_v21  ;;  %v1924_v21 = vld [vmem:[%s3608_s12 + $0xe0] sm:$0xff] }
 0x761   : > { %2741 = vmatprep.subr.bf16.mxu1 %v2740_v25  ;;  %v2776_v23 = vpack.c.bf16 %v1925_v22, %v1924_v21  ;;  %v1909_v25 = vld [vmem:[%s3608_s12 + $0x68] sm:$0xff] }
 0x762   : > { %v2778_v26 = vpack.c.bf16 %v1909_v25, %v1908_v24 }
 0x764   : > { %2743 = vmatpush1.bf16.msra.mxu1 %v2742_v29  ;;  %v1927_v29 = vld [vmem:[%s3608_s12 + $0xf8] sm:$0xff] }
 0x765   : > { %2745 = vmatprep.subr.bf16.mxu1 %v2744_v30  ;;  %v2780_v30 = vpack.c.bf16 %v1927_v29, %v1926_v28 }
 0x768   : > { %2747 = vmatpush1.bf16.msra.mxu1 %v2746_v35  ;;  %v889_v35 = vshrl.u32 %v888_v34, 7 }
 0x769   : > { %2749 = vmatprep.subr.bf16.mxu1 %v2748_v36 }
 0x76a   : > { %v890_v36 = vsub.s32 0, %v889_v35  ;;  %v1763_v38 = vsub.s32 1, %v889_v35 }
 0x76c   : > { %2751 = vmatpush1.bf16.msra.mxu1 %v2750_v39  ;;  %v1760_v39 = vrot.slane %v1755_v37, %v890_v36 }
 0x7db   : > { %v1699_v4 = vpop.xlane.xlu1 %1698 }
 0x7dc   : > { %v1700_v6 = vmul.f32 0.0078125, %v1699_v4  ;;  %v2764_v4 = vpack.c.bf16 %v1919_v3, %v1918_v2 }
 0x7de   : > { %v1701_v7 = vsub.f32 %v3551_v49, %v1700_v6  ;;  %v1902_v6 = vld [vmem:[%s3608_s12 + $0x30] sm:$0xff]  ;;  %2765 = vmatprep.subr.bf16.mxu0 %v2764_v4 }
 0x7e0   : > { %v1702_v8 = vmul.f32 %v1701_v7, %v1701_v7 }
 0x7e2   : > { %1703 = vadd.xlane.f32.xlu0 %v1702_v8 }
 0x86f   : > { %v1704_v27 = vpop.xlane.xlu0 %1703 }
 0x870   : > { %v1705_v40 = vmul.f32 0.0078125, %v1704_v27  ;;  %v1764_v27 = vrot.slane %v1755_v37, %v1763_v38 }
 0x872   : > { %v1706_v41 = vadd.f32 1e-05, %v1705_v40 }
 0x874   : > { %2883 = vrsqrt.f32 %v1706_v41 }
 0x87e   : > { %v2884_v42 = vpop.eup %2883 }
 0x87f   : > { %v1708_v44 = vmul.f32 %v2884_v42, %v1701_v7  ;;  %v1903_v7 = vld [vmem:[%s3608_s12 + $0x38] sm:$0xff] }
 0x880   : > { %v2766_v8 = vpack.c.bf16 %v1903_v7, %v1902_v6 }
 0x881   : > { %v1715_v45 = vmul.f32 %v2336_v43, %v1708_v44 }
 0x882   : > { %2767 = vmatpush3.bf16.msra.mxu0 %v2766_v8 }
 0x883   : > { %v1722_v46 = vadd.f32 %v2337_v5, %v1715_v45  ;;  %2769 = vmatprep.subr.bf16.mxu0 %v2768_v11 }
 0x885   : > { %1832 = vmatmul.mubr.f32.vlgmr.msra.gmra.mrb[12].mxu1 %v1722_v46 }
 0x886   : > { %2771 = vmatpush3.bf16.msra.mxu0 %v2770_v14 }
 0x887   : > { %2773 = vmatprep.subr.bf16.mxu0 %v2772_v17 }
 0x88a   : > { %2775 = vmatpush3.bf16.msra.mxu0 %v2774_v20 }
 0x88b   : > { %2777 = vmatprep.subr.bf16.mxu0 %v2776_v23 }
 0x88e   : > { %2779 = vmatpush3.bf16.msra.mxu0 %v2778_v26 }
 0x88f   : > { %2781 = vmatprep.subr.bf16.mxu0 %v2780_v30 }
 0x892   : > { %2783 = vmatpush3.bf16.msra.mxu0 %v2782_v33 }
 0x958   : > { %v1833_v40 = vpop.f32.mrb[12].mxu1 }
 0x959   : > { %v1834_v41 = vadd.f32 %v1833_v40, %v1760_v39  ;;  %v1835_v42 = vpop.f32.mrb[13].mxu1  ;;  %v2338_v40 = vld [vmem:[%s856_s16] ss:$0 sm:$0xff] }
 0x95a   : > { %v1836_v43 = vadd.f32 %v1835_v42, %v1764_v27 }
 0x95b   : > { %v1840_v44 = vmul.f32 0.70710677, %v1834_v41  ;;  %v1838_v35 = vmul.f32 0.5, %v1834_v41 }
 0x95c   : > { %v1841_v5 = vmul.f32 0.70710677, %v1836_v43  ;;  %v1839_v33 = vmul.f32 0.5, %v1836_v43 }
 0x95d   : > { %v1842_v45 = vand.u32 2147483647, %v1840_v44  ;;  %vm1886_vm3 = vcmp.ge.f32.partialorder %v1840_v44, 0.0 }
 0x95e   : > { %v1843_v46 = vand.u32 2147483647, %v1841_v5  ;;  %vm1887_vm4 = vcmp.ge.f32.partialorder %v1841_v5, 0.0 }
 0x95f   : > { %v1844_v47 = vmul.f32 0.3275911, %v1842_v45  ;;  %v1874_v54 = vmul.f32 %v1842_v45, %v1842_v45 }
 0x960   : > { %v1845_v48 = vmul.f32 0.3275911, %v1843_v46  ;;  %v1875_v57 = vmul.f32 %v1843_v46, %v1843_v46 }
 0x961   : > { %v1846_v1 = vadd.f32 1.0, %v1844_v47  ;;  %v1876_v60 = vsub.f32 0.0, %v1874_v54 }
 0x962   : > { %v1847_v52 = vadd.f32 1.0, %v1845_v48  ;;  %v1877_v63 = vsub.f32 0.0, %v1875_v57 }
 0x963   : > { %2885 = vrcp.f32 %v1846_v1  ;;  %v1878_v3 = vmul.f32 1.442695, %v1876_v60 }
 0x964   : > { %2887 = vrcp.f32 %v1847_v52  ;;  %v1880_v7 = vmul.f32 1.442695, %v1877_v63 }
 0x965   : > { %2889 = vpow2.f32 %v1878_v3 }
 0x966   : > { %2891 = vpow2.f32 %v1880_v7 }
 0x96d   : > { %v2886_v50 = vpop.eup %2885 }
 0x96e   : > { %v2888_v51 = vpop.eup %2887  ;;  %v1850_v53 = vmul.f32 %v2886_v50, %v1846_v1 }
 0x96f   : > { %v1851_v55 = vmul.f32 %v2888_v51, %v1847_v52  ;;  %v2890_v20 = vpop.eup %2889 }
 0x970   : > { %v1852_v56 = vsub.f32 2.0, %v1850_v53  ;;  %v2892_v22 = vpop.eup %2891 }
 0x971   : > { %v1853_v58 = vsub.f32 2.0, %v1851_v55 }
 0x972   : > { %v1854_v59 = vmul.f32 %v2886_v50, %v1852_v56 }
 0x973   : > { %v1855_v61 = vmul.f32 %v2888_v51, %v1853_v58 }
 0x974   : > { %v1856_v62 = vmul.f32 1.0614054, %v1854_v59 }
 0x975   : > { %v1857_v0 = vmul.f32 1.0614054, %v1855_v61 }
 0x976   : > { %v1858_v2 = vadd.f32 -1.4531521, %v1856_v62 }
 0x977   : > { %v1859_v4 = vadd.f32 -1.4531521, %v1857_v0 }
 0x978   : > { %v1860_v6 = vmul.f32 %v1858_v2, %v1854_v59 }
 0x979   : > { %v1861_v8 = vmul.f32 %v1859_v4, %v1855_v61 }
 0x97a   : > { %v1862_v9 = vadd.f32 1.4214138, %v1860_v6 }
 0x97b   : > { %v1863_v10 = vadd.f32 1.4214138, %v1861_v8 }
 0x97c   : > { %v1864_v11 = vmul.f32 %v1862_v9, %v1854_v59 }
 0x97d   : > { %v1865_v12 = vmul.f32 %v1863_v10, %v1855_v61 }
 0x97e   : > { %v1866_v13 = vadd.f32 -0.28449672, %v1864_v11 }
 0x97f   : > { %v1867_v14 = vadd.f32 -0.28449672, %v1865_v12 }
 0x980   : > { %v1868_v15 = vmul.f32 %v1866_v13, %v1854_v59 }
 0x981   : > { %v1869_v16 = vmul.f32 %v1867_v14, %v1855_v61 }
 0x982   : > { %v1870_v17 = vadd.f32 0.2548296, %v1868_v15 }
 0x983   : > { %v1871_v18 = vadd.f32 0.2548296, %v1869_v16 }
 0x984   : > { %v1872_v19 = vmul.f32 %v1870_v17, %v1854_v59 }
 0x985   : > { %v1873_v21 = vmul.f32 %v1871_v18, %v1855_v61 }
 0x986   : > { %v1882_v23 = vmul.f32 %v2890_v20, %v1872_v19 }
 0x987   : > { %v1883_v24 = vmul.f32 %v2892_v22, %v1873_v21 }
 0x988   : > { %v1884_v25 = vsub.f32 1.0, %v1882_v23 }
 0x989   : > { %v1885_v26 = vsub.f32 1.0, %v1883_v24 }
 0x98a   : > { %v1888_v28 = vsub.f32 0.0, %v1884_v25 }
 0x98b   : > { %v1889_v29 = vsub.f32 0.0, %v1885_v26 }
 0x98c   : > { %v1890_v30 = vsel %vm1886_vm3, %v1884_v25, %v1888_v28 }
 0x98d   : > { %v1892_v31 = vadd.f32 1.0, %v1890_v30  ;;  %v1891_v32 = vsel %vm1887_vm4, %v1885_v26, %v1889_v29 }
 0x98e   : > { %v1893_v34 = vadd.f32 1.0, %v1891_v32 }
 0x98f   : > { %v1894_v37 = vmul.f32 %v1892_v31, %v1838_v35 }
 0x990   : > { %v1895_v36 = vmul.f32 %v1893_v34, %v1839_v33 }
 0x992   : > { %1992 = vmatprep.mubr.f32.mxu0 %v1895_v36 }
 0x993   : > { %1993 = vmatmul.mubr.f32.vlgmr.msra.gmra.mrb[6].mxu0 %v1894_v37 }
 0xa66   : > { %v2458_v38 = vpop.f32.mrb[6].mxu0 }
 0xa67   : > { %v2459_v39 = vpop.f32.mrb[7].mxu0 }
 0xa68   : > { %v2460_v27 = vadd.f32 %v2459_v39, %v2458_v38 }
 0xa6a   : > { %v1998_v42 = vadd.f32 %v2460_v27, %v3551_v49 }
 0xa6c   : > { %v2006_v41 = vadd.f32 %v2338_v40, %v1998_v42 }
 0xa6e   : > { %2007 = vst [vmem:[%s867_s23] sm:$0xff] %v2006_v41 }
 0xa6f PF: > { %s31_s25 = sadd.s32 1, %s3053_s25   ;;  %s3741_s14 = sld [smem:[#allocation15_spill]] }
 0xa70   : > { %p28_p11 = scmp.ge.s32.totalorder %s31_s25, 6   ;;  %s3742_s21 = sld [smem:[#allocation11_spill]] }
 0xa71   : > { %s3743_s22 = sld [smem:[#allocation12_spill]]  ;;  %s3744_s23 = sld [smem:[#allocation13_spill]] }
 0xa72   : > { %s3745_s24 = sld [smem:[#allocation14_spill]]  ;;  %s3746_s18 = smov %s3029_s19 }
 0xa73   : > { %s3747_s19 = smov %s3033_s20  ;;  %30 = sbr.rel (!%p28_p11) target bundleno = 17 (0x11), region = 184 }
 0xa75   : > { %s3748_s20 = smov %s3741_s14 }
 0xa7a   :  { %2041 = vsyncpa [#allocation5], 1 }
 0xa7b   :  { %2043 = vsyncpa [#allocation5 + $0x1], 1 }
 0xa7c   :  { %2044 = vsyncpa [#allocation7], 1 }
 0xa7d   :  { %2046 = vsyncpa [#allocation7 + $0x1], 1 }

// kernel: dual_decoder_forward.6
= control target key start
LH: loop header
LB: loop body
LE: loop exit
PB: predicated region body
PF: predicated region fallthrough
CT: control target
= control target key end

     0   :  { %s2089_s30 = smov 0   ;;  %s2091_s10 = smov 0   ;;  %s2335_s0 = inlined_call_operand.vmem [shape: f32[2,1,128], index: 0, kind: input, shape index: {}]   ;;  %s2336_s1 = inlined_call_operand.vmem [shape: f32[2,1,128], index: 1, kind: input, shape index: {}]   ;;  %s2337_s2 = inlined_call_operand.vmem [shape: f32[2,2,8,128], index: 2, kind: input, shape index: {}, may-alias: {2,9}]   ;;  %s2338_s3 = inlined_call_operand.vmem [shape: f32[2,2,8,128], index: 3, kind: input, shape index: {}]   ;;  %s2339_s4 = inlined_call_operand.vmem [shape: f32[2,128,128], index: 4, kind: input, shape index: {}]   ;;  %s2340_s5 = inlined_call_operand.vmem [shape: f32[2,128,128], index: 5, kind: input, shape index: {}]   ;;  %s2341_s6 = inlined_call_operand.vmem [shape: f32[2,128,128], index: 6, kind: input, shape index: {}]   ;;  %s2342_s7 = inlined_call_operand.vmem [shape: f32[2,128,128], index: 7, kind: input, shape index: {}]   ;;  %s2343_s8 = inlined_call_operand.vmem [shape: f32[2,1,128], index: 8, kind: input, shape index: {}]   ;;  %s2344_s9 = inlined_call_operand.vmem [shape: f32[2,2,8,128], index: 9, kind: output, shape index: {}, may-alias: {2,9}]  }
   0x1   :  { %s2093_s11 = smov 0   ;;  %s2095_s12 = smov 0  }
   0x2   :  { %s2097_s13 = smov 0  }
   0x3 LB: > { %s34_s14 = sadd.s32 1, %s2025_s11  ;;  %s38_s15 = sadd.s32 1, %s2029_s12  ;;  %s2033_s13 = sphi %s2097_s13, %s19_s13   ;;  %s2029_s12 = sphi %s2095_s12, %s2348_s12   ;;  %s2025_s11 = sphi %s2093_s11, %s2347_s11   ;;  %s2021_s10 = sphi %s2091_s10, %s2346_s10   ;;  %s2017_s30 = sphi %s2089_s30, %s2345_s30  }
   0x4   : > { %p36_p0 = scmp.ge.s32.totalorder %s34_s14, 2  ;;  %p1571_p1 = scmp.ge.s32.totalorder %s2033_s13, 1 }
   0x5   : > { %p399_p2 = scmp.lt.s32.totalorder %s2033_s13, 5 }
   0x6   : > { %s2350_s14 = smov (%p36_p0, %s34_s14), 0  ;;  %s2352_s15 = smov (!%p36_p0, %s38_s15), %s2029_s12 }
   0x7   : > { %p400_p3 = pnand %p1571_p1, %p399_p2  ;;  %p40_p4 = scmp.ge.s32.totalorder %s2352_s15, 2 }
   0x8   : > { %p484_p5 = scmp.lt.s32.totalorder (!%p400_p3), %s2021_s10, 1  ;;  %p492_p6 = scmp.lt.s32.totalorder (!%p400_p3), %s2017_s30, 1  ;;  %v2035_v5 = vmov (!%p400_p3), 0.0|0.0   ;;  %vm2036_vm0 = vmmov (!%p400_p3), 0   ;;  %v2037_v52 = vmov (!%p400_p3), 0.0   ;;  %vm883_vm1 = vcmask (!%p400_p3), 523264  }
   0x9   : > { %s2354_s15 = smov (%p40_p4, %s2352_s15), 0  ;;  %403 = sbr.rel (%p400_p3) target bundleno = 1756 (0x6dc), region = 56 }
   0xa   : > { %1843 = vmatprep.subr.bf16.mxu0 (!%p400_p3), %v2035_v5  ;;  %1867 = vmatprep.subr.bf16.mxu1 (!%p400_p3), %v2035_v5  ;;  %vm960_vm2 = vcmask (!%p400_p3), 64512  }
   0xb   : > { %1712 = vmatprep.mubr.msk.f32.mxu0 (!%p400_p3), %vm2036_vm0, %v2037_v52  ;;  %1747 = vmatprep.mubr.msk.f32.mxu1 (!%p400_p3), %vm2036_vm0, %v2037_v52 }
  0x10   : > { %s2356_s10 = smov (!%p484_p5, %s2021_s10), 1  ;;  %s2358_s30 = smov (!%p492_p6, %s2017_s30), 1 }
  0x11   : > { %s1572_s16 = sshll.u32 %s2356_s10, 1  ;;  %s2136_s25 = sshll.u32 %s2356_s10, 7 }
  0x12   : > { %s498_s17 = sadd.s32 %s1572_s16, %s2358_s30  ;;  %s2142_s28 = scalar_lea.vmem %s2340_s5, %s2136_s25 }
  0x13   : > { %s2122_s18 = sshll.u32 %s498_s17, 3  ;;  %s2148_s16 = scalar_lea.vmem %s2341_s6, %s2136_s25  ;;  %v576_v2 = vld [vmem:[%s2142_s28] sm:$0xff]  ;;  %v577_v3 = vld [vmem:[%s2142_s28 + $0x8] sm:$0xff]  ;;  %v578_v8 = vld [vmem:[%s2142_s28 + $0x10] sm:$0xff] }
  0x14   : > { %s508_s21 = scalar_lea.vmem %s2338_s3, %s2122_s18  ;;  %s500_s24 = scalar_lea.vmem %s2337_s2, %s2122_s18  ;;  %v663_v4 = vld [vmem:[%s2148_s16] sm:$0xff]  ;;  %v1844_v6 = vpack.c.bf16 %v577_v3, %v576_v2  ;;  %v664_v7 = vld [vmem:[%s2148_s16 + $0x8] sm:$0xff]  ;;  %v579_v9 = vld [vmem:[%s2142_s28 + $0x18] sm:$0xff] }
  0x15   : > { %v549_v0 = vld [vmem:[%s508_s21] sm:$0xff]  ;;  %v1868_v10 = vpack.c.bf16 %v664_v7, %v663_v4  ;;  %v665_v11 = vld [vmem:[%s2148_s16 + $0x10] sm:$0xff]  ;;  %v666_v12 = vld [vmem:[%s2148_s16 + $0x18] sm:$0xff]  ;;  %v1847_v13 = vpack.c.bf16 %v579_v9, %v578_v8  ;;  %s486_s20 = scalar_lea.vmem %s2335_s0, %s2356_s10  ;;  %s2221_s23 = scalar_lea.vmem %s2339_s4, %s2136_s25 }
  0x16   : > { %550 = vadd.xlane.f32.xlu0 %v549_v0  ;;  %v2132_v1 = vld [vmem:[%s500_s24] sm:$0xff]  ;;  %1845 = vmatpush3.bf16.msra.mxu0 %v1844_v6  ;;  %v1871_v14 = vpack.c.bf16 %v666_v12, %v665_v11  ;;  %v581_v16 = vld [vmem:[%s2142_s28 + $0x28] sm:$0xff]  ;;  %v582_v29 = vld [vmem:[%s2142_s28 + $0x30] sm:$0xff]  ;;  %s489_s27 = scalar_lea.vmem %s2336_s1, %s2356_s10  ;;  %s531_s19 = scalar_lea.vmem %s2343_s8, %s2356_s10 }
  0x17   : > { %1869 = vmatpush3.bf16.msra.mxu1 %v1868_v10  ;;  %1846 = vmatprep.subr.bf16.mxu0 %v2035_v5  ;;  %v580_v15 = vld [vmem:[%s2142_s28 + $0x20] sm:$0xff]  ;;  %v668_v18 = vld [vmem:[%s2148_s16 + $0x28] sm:$0xff]  ;;  %v583_v30 = vld [vmem:[%s2142_s28 + $0x38] sm:$0xff]  ;;  %s542_s22 = scalar_lea.vmem %s2344_s9, %s2122_s18 }
  0x18   : > { %1870 = vmatprep.subr.bf16.mxu1 %v2035_v5  ;;  %v667_v17 = vld [vmem:[%s2148_s16 + $0x20] sm:$0xff]  ;;  %v1850_v19 = vpack.c.bf16 %v581_v16, %v580_v15  ;;  %v1853_v31 = vpack.c.bf16 %v583_v30, %v582_v29  ;;  %v669_v32 = vld [vmem:[%s2148_s16 + $0x30] sm:$0xff]  ;;  %v670_v33 = vld [vmem:[%s2148_s16 + $0x38] sm:$0xff] }
  0x19   : > { %v1874_v20 = vpack.c.bf16 %v668_v18, %v667_v17  ;;  %v1877_v34 = vpack.c.bf16 %v670_v33, %v669_v32  ;;  %v584_v35 = vld [vmem:[%s2142_s28 + $0x40] sm:$0xff]  ;;  %v585_v36 = vld [vmem:[%s2142_s28 + $0x48] sm:$0xff]  ;;  %v586_v41 = vld [vmem:[%s2142_s28 + $0x50] sm:$0xff] }
  0x1a   : > { %751 = vadd.xlane.f32.xlu0 %v2132_v1  ;;  %1848 = vmatpush3.bf16.msra.mxu0 %v1847_v13  ;;  %v1856_v37 = vpack.c.bf16 %v585_v36, %v584_v35  ;;  %v671_v38 = vld [vmem:[%s2148_s16 + $0x40] sm:$0xff]  ;;  %v672_v39 = vld [vmem:[%s2148_s16 + $0x48] sm:$0xff]  ;;  %v587_v42 = vld [vmem:[%s2142_s28 + $0x58] sm:$0xff] }
  0x1b   : > { %1872 = vmatpush3.bf16.msra.mxu1 %v1871_v14  ;;  %1849 = vmatprep.subr.bf16.mxu0 %v2035_v5  ;;  %v1880_v40 = vpack.c.bf16 %v672_v39, %v671_v38  ;;  %v1859_v43 = vpack.c.bf16 %v587_v42, %v586_v41  ;;  %v673_v44 = vld [vmem:[%s2148_s16 + $0x50] sm:$0xff]  ;;  %v674_v45 = vld [vmem:[%s2148_s16 + $0x58] sm:$0xff]  ;;  %v588_v47 = vld [vmem:[%s2142_s28 + $0x60] sm:$0xff] }
  0x1c   : > { %1873 = vmatprep.subr.bf16.mxu1 %v2035_v5  ;;  %v1883_v46 = vpack.c.bf16 %v674_v45, %v673_v44  ;;  %v589_v48 = vld [vmem:[%s2142_s28 + $0x68] sm:$0xff]  ;;  %v675_v49 = vld [vmem:[%s2148_s16 + $0x60] sm:$0xff]  ;;  %v590_v54 = vld [vmem:[%s2142_s28 + $0x70] sm:$0xff] }
  0x1d   : > { %v1862_v50 = vpack.c.bf16 %v589_v48, %v588_v47  ;;  %v676_v51 = vld [vmem:[%s2148_s16 + $0x68] sm:$0xff]  ;;  %v591_v55 = vld [vmem:[%s2142_s28 + $0x78] sm:$0xff]  ;;  %v677_v56 = vld [vmem:[%s2148_s16 + $0x70] sm:$0xff]  ;;  %s2038_s28 = smov 64  }
  0x1e   : > { %1851 = vmatpush3.bf16.msra.mxu0 %v1850_v19  ;;  %v1886_v53 = vpack.c.bf16 %v676_v51, %v675_v49  ;;  %v678_v57 = vld [vmem:[%s2148_s16 + $0x78] sm:$0xff]  ;;  %v1865_v58 = vpack.c.bf16 %v591_v55, %v590_v54  ;;  %v779_v3 = vld [vmem:[%s2221_s23] sm:$0xff]  ;;  %v780_v4 = vld [vmem:[%s2221_s23 + $0x8] sm:$0xff]  ;;  %s2280_s16 = scalar_lea.vmem %s2342_s7, %s2136_s25 }
  0x1f   : > { %1875 = vmatpush3.bf16.msra.mxu1 %v1874_v20  ;;  %1852 = vmatprep.subr.bf16.mxu0 %v2035_v5  ;;  %v1889_v59 = vpack.c.bf16 %v678_v57, %v677_v56  ;;  %v1602_v6 = vld [vmem:[%s489_s27] ss:$0 sm:$0xff]  ;;  %v1892_v8 = vpack.c.bf16 %v780_v4, %v779_v3  ;;  %v781_v11 = vld [vmem:[%s2221_s23 + $0x10] sm:$0xff]  ;;  %v782_v12 = vld [vmem:[%s2221_s23 + $0x18] sm:$0xff] }
  0x20   : > { %1876 = vmatprep.subr.bf16.mxu1 %v2035_v5  ;;  %v1895_v14 = vpack.c.bf16 %v782_v12, %v781_v11  ;;  %v783_v15 = vld [vmem:[%s2221_s23 + $0x20] sm:$0xff]  ;;  %v784_v16 = vld [vmem:[%s2221_s23 + $0x28] sm:$0xff]  ;;  %v785_v19 = vld [vmem:[%s2221_s23 + $0x30] sm:$0xff] }
  0x21   : > { %v1898_v18 = vpack.c.bf16 %v784_v16, %v783_v15  ;;  %v786_v20 = vld [vmem:[%s2221_s23 + $0x38] sm:$0xff]  ;;  %v791_v29 = vld [vmem:[%s2221_s23 + $0x60] sm:$0xff]  ;;  %v792_v30 = vld [vmem:[%s2221_s23 + $0x68] sm:$0xff] }
  0x22   : > { %1854 = vmatpush3.bf16.msra.mxu0 %v1853_v31  ;;  %v1910_v32 = vpack.c.bf16 %v792_v30, %v791_v29  ;;  %v794_v35 = vld [vmem:[%s2221_s23 + $0x78] sm:$0xff]  ;;  %v795_v57 = vld [vmem:[%s2280_s16] sm:$0xff]  ;;  %v801_v3 = vld [vmem:[%s2280_s16 + $0x30] sm:$0xff] }
  0x23   : > { %1878 = vmatpush3.bf16.msra.mxu1 %v1877_v34  ;;  %1855 = vmatprep.subr.bf16.mxu0 %v2035_v5  ;;  %v793_v34 = vld [vmem:[%s2221_s23 + $0x70] sm:$0xff]  ;;  %v802_v4 = vld [vmem:[%s2280_s16 + $0x38] sm:$0xff]  ;;  %v807_v30 = vld [vmem:[%s2280_s16 + $0x60] sm:$0xff] }
  0x24   : > { %1879 = vmatprep.subr.bf16.mxu1 %v2035_v5  ;;  %v1913_v36 = vpack.c.bf16 %v794_v35, %v793_v34  ;;  %v809_v34 = vld [vmem:[%s2280_s16 + $0x70] sm:$0xff]  ;;  %v810_v35 = vld [vmem:[%s2280_s16 + $0x78] sm:$0xff] }
  0x26   : > { %1857 = vmatpush3.bf16.msra.mxu0 %v1856_v37 }
  0x27   : > { %1881 = vmatpush3.bf16.msra.mxu1 %v1880_v40  ;;  %1858 = vmatprep.subr.bf16.mxu0 %v2035_v5 }
  0x28   : > { %1882 = vmatprep.subr.bf16.mxu1 %v2035_v5 }
  0x2a   : > { %1860 = vmatpush3.bf16.msra.mxu0 %v1859_v43 }
  0x2b   : > { %1884 = vmatpush3.bf16.msra.mxu1 %v1883_v46  ;;  %1861 = vmatprep.subr.bf16.mxu0 %v2035_v5 }
  0x2c   : > { %1885 = vmatprep.subr.bf16.mxu1 %v2035_v5 }
  0x2e   : > { %1863 = vmatpush3.bf16.msra.mxu0 %v1862_v50 }
  0x2f   : > { %1887 = vmatpush3.bf16.msra.mxu1 %v1886_v53  ;;  %1864 = vmatprep.subr.bf16.mxu0 %v2035_v5 }
  0x30   : > { %1888 = vmatprep.subr.bf16.mxu1 %v2035_v5 }
  0x32   : > { %1866 = vmatpush3.bf16.msra.mxu0 %v1865_v58  ;;  %v796_v58 = vld [vmem:[%s2280_s16 + $0x8] sm:$0xff] }
  0x33   : > { %1890 = vmatpush3.bf16.msra.mxu1 %v1889_v59  ;;  %1891 = vmatprep.subr.bf16.mxu0 %v2035_v5  ;;  %v797_v59 = vld [vmem:[%s2280_s16 + $0x10] sm:$0xff] }
  0x34   : > { %1785 = vmatprep.subr.mxu1 %v2037_v52 }
  0xa3   : > { %v551_v21 = vpop.xlane.xlu0 %550 }
  0xa4   : > { %v553_v22 = vmul.f32 0.0078125, %v551_v21  ;;  %v1901_v21 = vpack.c.bf16 %v786_v20, %v785_v19 }
  0xa6   : > { %v2170_v23 = vsub.f32 %v549_v0, %v553_v22  ;;  %v1601_v0 = vld [vmem:[%s486_s20] ss:$0 sm:$0xff] }
  0xa7   : > { %v752_v24 = vpop.xlane.xlu0 %751  ;;  %v787_v22 = vld [vmem:[%s2221_s23 + $0x40] sm:$0xff] }
  0xa8   : > { %v754_v25 = vmul.f32 0.0078125, %v752_v24  ;;  %v555_v26 = vmul.f32 %v2170_v23, %v2170_v23 }
  0xaa   : > { %v2175_v27 = vsub.f32 %v2132_v1, %v754_v25  ;;  %556 = vadd.xlane.f32.xlu1 %v555_v26  ;;  %v789_v25 = vld [vmem:[%s2221_s23 + $0x50] sm:$0xff]  ;;  %v790_v26 = vld [vmem:[%s2221_s23 + $0x58] sm:$0xff] }
  0xac   : > { %v756_v28 = vmul.f32 %v2175_v27, %v2175_v27 }
  0xae   : > { %757 = vadd.xlane.f32.xlu1 %v756_v28  ;;  %v1907_v28 = vpack.c.bf16 %v790_v26, %v789_v25  ;;  %v805_v25 = vld [vmem:[%s2280_s16 + $0x50] sm:$0xff] }
 0x137   : > { %v557_v60 = vpop.xlane.xlu1 %556 }
 0x138   : > { %v558_v61 = vmul.f32 0.0078125, %v557_v60  ;;  %v1928_v60 = vpack.c.bf16 %v796_v58, %v795_v57 }
 0x13a   : > { %v559_v62 = vadd.f32 1e-05, %v558_v61  ;;  %v798_v61 = vld [vmem:[%s2280_s16 + $0x18] sm:$0xff] }
 0x13b   : > { %v758_v9 = vpop.xlane.xlu1 %757 }
 0x13c   : > { %1983 = vrsqrt.f32 %v559_v62  ;;  %v759_v13 = vmul.f32 0.0078125, %v758_v9  ;;  %v1931_v62 = vpack.c.bf16 %v798_v61, %v797_v59 }
 0x13e   : > { %v760_v17 = vadd.f32 1e-05, %v759_v13 }
 0x140   : > { %1985 = vrsqrt.f32 %v760_v17 }
 0x146   : > { %v1984_v63 = vpop.eup %1983 }
 0x147   : > { %v561_v2 = vmul.f32 %v1984_v63, %v2170_v23  ;;  %v788_v23 = vld [vmem:[%s2221_s23 + $0x48] sm:$0xff]  ;;  %v799_v63 = vld [vmem:[%s2280_s16 + $0x20] sm:$0xff] }
 0x148   : > { %v1904_v24 = vpack.c.bf16 %v788_v23, %v787_v22  ;;  %v803_v23 = vld [vmem:[%s2280_s16 + $0x40] sm:$0xff] }
 0x149   : > { %v568_v7 = vmul.f32 %v1601_v0, %v561_v2 }
 0x14a   : > { %v1986_v31 = vpop.eup %1985 }
 0x14b   : > { %v575_v10 = vadd.f32 %v1602_v6, %v568_v7  ;;  %v762_v33 = vmul.f32 %v1986_v31, %v2175_v27  ;;  %v808_v31 = vld [vmem:[%s2280_s16 + $0x68] sm:$0xff] }
 0x14d   : > { %1713 = vmatmul.mubr.f32.vlgmr.msra.gmra.mrb[0].mxu0 %v575_v10  ;;  %1748 = vmatmul.mubr.f32.vlgmr.msra.gmra.mrb[0].mxu1 %v575_v10  ;;  %v769_v37 = vmul.f32 %v1601_v0, %v762_v33  ;;  %v800_v0 = vld [vmem:[%s2280_s16 + $0x28] sm:$0xff] }
 0x14e   : > { %1893 = vmatpush3.bf16.msra.mxu0 %v1892_v8  ;;  %1782 = vmatprep.mubr.msk.f32.mxu0 %vm2036_vm0, %v2037_v52  ;;  %v1934_v2 = vpack.c.bf16 %v800_v0, %v799_v63 }
 0x14f   : > { %1894 = vmatprep.subr.bf16.mxu0 %v2035_v5  ;;  %1787 = vmatprep.mubr.msk.f32.mxu1 %vm2036_vm0, %v2037_v52  ;;  %v776_v38 = vadd.f32 %v1602_v6, %v769_v37  ;;  %v1937_v6 = vpack.c.bf16 %v802_v4, %v801_v3 }
 0x152   : > { %1896 = vmatpush3.bf16.msra.mxu0 %v1895_v14 }
 0x153   : > { %1897 = vmatprep.subr.bf16.mxu0 %v2035_v5 }
 0x156   : > { %1899 = vmatpush3.bf16.msra.mxu0 %v1898_v18 }
 0x157   : > { %1900 = vmatprep.subr.bf16.mxu0 %v2035_v5 }
 0x15a   : > { %1902 = vmatpush3.bf16.msra.mxu0 %v1901_v21 }
 0x15b   : > { %1903 = vmatprep.subr.bf16.mxu0 %v2035_v5 }
 0x15e   : > { %1905 = vmatpush3.bf16.msra.mxu0 %v1904_v24  ;;  %v804_v24 = vld [vmem:[%s2280_s16 + $0x48] sm:$0xff] }
 0x15f   : > { %1906 = vmatprep.subr.bf16.mxu0 %v2035_v5  ;;  %v1916_v26 = vpack.c.bf16 %v804_v24, %v803_v23 }
 0x162   : > { %1908 = vmatpush3.bf16.msra.mxu0 %v1907_v28  ;;  %v806_v28 = vld [vmem:[%s2280_s16 + $0x58] sm:$0xff] }
 0x163   : > { %1909 = vmatprep.subr.bf16.mxu0 %v2035_v5  ;;  %v1919_v29 = vpack.c.bf16 %v806_v28, %v805_v25 }
 0x166   : > { %1911 = vmatpush3.bf16.msra.mxu0 %v1910_v32  ;;  %v1922_v32 = vpack.c.bf16 %v808_v31, %v807_v30 }
 0x167   : > { %1912 = vmatprep.subr.bf16.mxu0 %v2035_v5 }
 0x16a   : > { %1914 = vmatpush3.bf16.msra.mxu0 %v1913_v36  ;;  %v1925_v36 = vpack.c.bf16 %v810_v35, %v809_v34 }
 0x16b   : > { %1927 = vmatprep.subr.bf16.mxu0 %v2035_v5 }
 0x16d   : > { %1783 = vmatmul.mubr.f32.vlgmr.msra.gmra.mrb[2].mxu0 %v776_v38 }
 0x16e   : > { %1840 = vmatprep.mubr.msk.f32.mxu0 %vm2036_vm0, %v2037_v52  ;;  %1929 = vmatpush3.bf16.msra.mxu0 %v1928_v60 }
 0x16f   : > { %1930 = vmatprep.subr.bf16.mxu0 %v2035_v5 }
 0x172   : > { %1932 = vmatpush3.bf16.msra.mxu0 %v1931_v62 }
 0x173   : > { %1933 = vmatprep.subr.bf16.mxu0 %v2035_v5 }
 0x176   : > { %1935 = vmatpush3.bf16.msra.mxu0 %v1934_v2 }
 0x177   : > { %1936 = vmatprep.subr.bf16.mxu0 %v2035_v5 }
 0x17a   : > { %1938 = vmatpush3.bf16.msra.mxu0 %v1937_v6 }
 0x220   : > { %v658_v39 = vpop.f32.mrb[0].mxu0  ;;  %v745_v27 = vpop.f32.mrb[0].mxu1 }
 0x221   : > { %v1749_v40 = vpop.f32.mrb[1].mxu1  ;;  %1050 = vrot.lane.b32.xlu1 %v658_v39, %s2038_s28  ;;  %v1714_v41 = vpop.f32.mrb[1].mxu0  ;;  %1786 = vmatpush3.xpose.msk.msra.mxu1 %vm883_vm1, %v658_v39 }
 0x222   : > { %1790 = vmatprep.subr.mxu1 %v2037_v52 }
 0x240   : > { %v878_v42 = vpop.f32.mrb[2].mxu0 }
 0x241   : > { %v882_v43 = vmul.f32 0.088388346, %v878_v42  ;;  %v1784_v44 = vpop.f32.mrb[3].mxu0 }
 0x243   : > { %1788 = vmatmul.mubr.msk.f32.vlgmr.msra.gmra.mrb[2].mxu1 %vm883_vm1, %v882_v43 }
 0x244   : > { %1791 = vmatpush3.msra.mxu1 %v745_v27  ;;  %1792 = vmatprep.mubr.msk.f32.mxu1 %vm2036_vm0, %v2037_v52 }
 0x245   : > { %1795 = vmatprep.subr.mxu1 %v2037_v52 }
 0x293   : > { %v1051_v54 = vpop.permute.xlu1 %1050 }
 0x316   : > { %v956_v45 = vpop.f32.mrb[2].mxu1 }
 0x317   : > { %v1789_v46 = vpop.f32.mrb[3].mxu1  ;;  %v961_v47 = vsel %vm960_vm2, %v956_v45, -inf }
 0x318   : > { %962 = vmax.xlane.f32.xlu0 %v961_v47 }
 0x32e   : > { %1048 = vrot.lane.b32.xlu0 %v882_v43, %s2038_s28 }
 0x332   : > { %1136 = vrot.lane.b32.xlu0 %v745_v27, %s2038_s28 }
 0x3a5   : > { %v963_v48 = vpop.xlane.xlu0 %962 }
 0x3a6   : > { %v964_v49 = vsub.f32 %v956_v45, %v963_v48 }
 0x3a8   : > { %v965_v50 = vmul.f32 1.442695, %v964_v49 }
 0x3a9   : > { %v1049_v51 = vpop.permute.xlu0 %1048 }
 0x3aa   : > { %1987 = vpow2.f32 %v965_v50 }
 0x3ad   : > { %v1137_v56 = vpop.permute.xlu0 %1136 }
 0x3b4   : > { %v1988_v53 = vpop.eup %1987 }
 0x3b5   : > { %1793 = vmatmul.mubr.msk.f32.vlgmr.msra.gmra.mrb[4].mxu1 %vm960_vm2, %v1988_v53  ;;  %v967_v55 = vsel %vm960_vm2, %v1988_v53, 0.0 }
 0x3b6   : > { %1796 = vmatpush3.xpose.msk.msra.mxu1 %vm883_vm1, %v1051_v54  ;;  %968 = vadd.xlane.f32.xlu0 %v967_v55 }
 0x3b7   : > { %1797 = vmatprep.mubr.msk.f32.mxu1 %vm2036_vm0, %v2037_v52  ;;  %1800 = vmatprep.subr.mxu1 %v2037_v52 }
 0x3b9   : > { %1798 = vmatmul.mubr.msk.f32.vlgmr.msra.gmra.mrb[6].mxu1 %vm883_vm1, %v1049_v51 }
 0x3ba   : > { %1801 = vmatpush3.msra.mxu1 %v1137_v56  ;;  %1802 = vmatprep.mubr.msk.f32.mxu1 %vm2036_vm0, %v2037_v52 }
 0x3bb   : > { %1915 = vmatprep.subr.bf16.mxu1 %v2035_v5 }
 0x443   : > { %v969_v7 = vpop.xlane.xlu0 %968 }
 0x444   : > { %1989 = vrcp.f32 %v969_v7 }
 0x44e   : > { %v1990_v8 = vpop.eup %1989 }
 0x44f   : > { %v1044_v9 = vmul.f32 %v1990_v8, %v969_v7 }
 0x451   : > { %v1045_v10 = vsub.f32 2.0, %v1044_v9 }
 0x453   : > { %v1046_v11 = vmul.f32 %v1990_v8, %v1045_v10 }
 0x488   : > { %v1039_v12 = vpop.f32.mrb[4].mxu1 }
 0x489   : > { %v1047_v13 = vmul.f32 %v1046_v11, %v1039_v12  ;;  %v1794_v14 = vpop.f32.mrb[5].mxu1 }
 0x48b   : > { %1841 = vmatmul.mubr.msk.f32.vlgmr.msra.gmra.mrb[4].mxu0 %vm883_vm1, %v1047_v13 }
 0x48c   : > { %v1122_v15 = vpop.f32.mrb[6].mxu1 }
 0x48d   : > { %v1799_v16 = vpop.f32.mrb[7].mxu1  ;;  %v1126_v17 = vsel %vm960_vm2, %v1122_v15, -inf }
 0x48e   : > { %1127 = vmax.xlane.f32.xlu1 %v1126_v17 }
 0x51b   : > { %v1128_v18 = vpop.xlane.xlu1 %1127 }
 0x51c   : > { %v1129_v19 = vsub.f32 %v1122_v15, %v1128_v18 }
 0x51e   : > { %v1130_v20 = vmul.f32 1.442695, %v1129_v19 }
 0x520   : > { %1991 = vpow2.f32 %v1130_v20 }
 0x52a   : > { %v1992_v21 = vpop.eup %1991 }
 0x52b   : > { %1803 = vmatmul.mubr.msk.f32.vlgmr.msra.gmra.mrb[8].mxu1 %vm960_vm2, %v1992_v21  ;;  %v1132_v22 = vsel %vm960_vm2, %v1992_v21, 0.0 }
 0x52c   : > { %1133 = vadd.xlane.f32.xlu1 %v1132_v22  ;;  %1821 = vmatprep.mubr.msk.f32.mxu1 %vm2036_vm0, %v2037_v52 }
 0x52d   : > { %1917 = vmatpush3.bf16.msra.mxu1 %v1916_v26 }
 0x52e   : > { %1918 = vmatprep.subr.bf16.mxu1 %v2035_v5 }
 0x531   : > { %1920 = vmatpush3.bf16.msra.mxu1 %v1919_v29 }
 0x532   : > { %1921 = vmatprep.subr.bf16.mxu1 %v2035_v5 }
 0x535   : > { %1923 = vmatpush3.bf16.msra.mxu1 %v1922_v32 }
 0x536   : > { %1924 = vmatprep.subr.bf16.mxu1 %v2035_v5  ;;  %v1594_v5 = vld [vmem:[%s531_s19] ss:$0 sm:$0xff] }
 0x539   : > { %1926 = vmatpush3.bf16.msra.mxu1 %v1925_v36 }
 0x55e   : > { %v1359_v52 = vpop.f32.mrb[4].mxu0 }
 0x55f   : > { %v1842_v33 = vpop.f32.mrb[5].mxu0 }
 0x5b9   : > { %v1134_v37 = vpop.xlane.xlu1 %1133 }
 0x5ba   : > { %1993 = vrcp.f32 %v1134_v37 }
 0x5c4   : > { %v1994_v38 = vpop.eup %1993 }
 0x5c5   : > { %v1213_v39 = vmul.f32 %v1994_v38, %v1134_v37 }
 0x5c7   : > { %v1214_v27 = vsub.f32 2.0, %v1213_v39 }
 0x5c9   : > { %v1215_v40 = vmul.f32 %v1994_v38, %v1214_v27 }
 0x5fe   : > { %v1208_v41 = vpop.f32.mrb[8].mxu1 }
 0x5ff   : > { %v1216_v42 = vmul.f32 %v1215_v40, %v1208_v41  ;;  %v1804_v43 = vpop.f32.mrb[9].mxu1 }
 0x601   : > { %1822 = vmatmul.mubr.msk.f32.vlgmr.msra.gmra.mrb[10].mxu1 %vm883_vm1, %v1216_v42 }
 0x6d4   : > { %v1286_v44 = vpop.f32.mrb[10].mxu1 }
 0x6d5   : > { %v1360_v45 = vadd.f32 %v1359_v52, %v1286_v44  ;;  %v1823_v46 = vpop.f32.mrb[11].mxu1 }
 0x6d7   : > { %v1369_v47 = vadd.f32 %v1594_v5, %v1360_v45 }
 0x6d9   : > { %v1370_v48 = vadd.f32 %v1369_v47, %v2132_v1 }
 0x6db   : > { %1371 = vst [vmem:[%s542_s22] sm:$0xff] %v1370_v48 }
 0x6dc PF: > { %s19_s13 = sadd.s32 1, %s2033_s13   ;;  %s2345_s30 = smov %s2025_s11 }
 0x6dd   : > { %p16_p7 = scmp.ge.s32.totalorder %s19_s13, 6   ;;  %s2346_s10 = smov %s2029_s12 }
 0x6de   : > { %s2347_s11 = smov %s2350_s14  ;;  %s2348_s12 = smov %s2354_s15 }
 0x6df   :  { %18 = sbr.rel (!%p16_p7) target bundleno = 3 (0x3), region = 114 }

// kernel: dual_decoder_forward.7
= control target key start
LH: loop header
LB: loop body
LE: loop exit
PB: predicated region body
PF: predicated region fallthrough
CT: control target
= control target key end

     0   :  { %s2880_s18 = smov 0   ;;  %s2882_s19 = smov 0   ;;  %s3232_s0 = inlined_call_operand.vmem [shape: f32[2,1,128], index: 0, kind: input, shape index: {}]   ;;  %s3233_s1 = inlined_call_operand.vmem [shape: f32[2,1,128], index: 1, kind: input, shape index: {}]   ;;  %s3234_s2 = inlined_call_operand.vmem [shape: f32[2,2,8,128], index: 2, kind: input, shape index: {}, may-alias: {2,3}]   ;;  %s3235_s3 = inlined_call_operand.vmem [shape: f32[2,2,8,128], index: 3, kind: input, shape index: {}, may-alias: {2,3}]   ;;  %s3236_s4 = inlined_call_operand.vmem [shape: f32[2,128,128], index: 4, kind: input, shape index: {}]   ;;  %s3237_s5 = inlined_call_operand.vmem [shape: f32[2,128,128], index: 5, kind: input, shape index: {}]   ;;  %s3238_s6 = inlined_call_operand.vmem [shape: f32[2,128,128], index: 6, kind: input, shape index: {}]   ;;  %s3239_s7 = inlined_call_operand.vmem [shape: f32[2,128,128], index: 7, kind: input, shape index: {}]   ;;  %s3240_s8 = inlined_call_operand.vmem [shape: f32[2,1,128], index: 8, kind: input, shape index: {}]   ;;  %s3241_s9 = inlined_call_operand.vmem [shape: f32[2,1,128], index: 9, kind: input, shape index: {}]   ;;  %s3242_s10 = inlined_call_operand.vmem [shape: f32[2,1,128], index: 10, kind: input, shape index: {}]   ;;  %s3243_s11 = inlined_call_operand.vmem [shape: f32[2,128,256], index: 11, kind: input, shape index: {}]   ;;  %s3244_s12 = inlined_call_operand.vmem [shape: f32[2,1,256], index: 12, kind: input, shape index: {}]   ;;  %s3245_s13 = inlined_call_operand.vmem [shape: f32[2,256,128], index: 13, kind: input, shape index: {}]   ;;  %s3246_s14 = inlined_call_operand.vmem [shape: f32[2,1,128], index: 14, kind: input, shape index: {}]   ;;  %s3247_s15 = inlined_call_operand.vmem [shape: f32[2,2,8,128], index: 15, kind: output, shape index: {}]  }
   0x1   :  { %s2884_s20 = smov 0   ;;  %s2886_s21 = smov 0  }
   0x2   :  { %s2888_s22 = smov 0  }
   0x3 LB: > { %3251 = sst [smem:[#allocation4_spill]] %s2786_s20  ;;  %s40_s23 = sadd.s32 1, %s2786_s20  ;;  %s2794_s22 = sphi %s2888_s22, %s25_s22   ;;  %s2790_s21 = sphi %s2886_s21, %s3260_s21   ;;  %s2786_s20 = sphi %s2884_s20, %s3259_s20   ;;  %s2782_s19 = sphi %s2882_s19, %s3258_s19   ;;  %s2778_s18 = sphi %s2880_s18, %s3257_s18  }
   0x4   : > { %3252 = sst [smem:[#allocation5_spill]] %s2790_s21  ;;  %s44_s24 = sadd.s32 1, %s2790_s21 }
   0x5   : > { %3253 = sst [smem:[#allocation6_spill]] %s2794_s22  ;;  %p42_p0 = scmp.ge.s32.totalorder %s40_s23, 2 }
   0x6   : > { %p2213_p1 = scmp.ge.s32.totalorder %s2794_s22, 1  ;;  %p606_p2 = scmp.lt.s32.totalorder %s2794_s22, 5 }
   0x7   : > { %s3262_s23 = smov (%p42_p0, %s40_s23), 0  ;;  %s3264_s24 = smov (!%p42_p0, %s44_s24), %s2790_s21 }
   0x8   : > { %3254 = sst [smem:[#allocation7_spill]] %s3262_s23  ;;  %p607_p3 = pnand %p2213_p1, %p606_p2 }
   0x9   : > { %p46_p4 = scmp.ge.s32.totalorder %s3264_s24, 2  ;;  %p735_p5 = scmp.lt.s32.totalorder (!%p607_p3), %s2778_s18, 1  ;;  %v2796_v2 = vmov (!%p607_p3), 0.0|0.0   ;;  %vm2797_vm0 = vmmov (!%p607_p3), 0   ;;  %v2798_v52 = vmov (!%p607_p3), 0.0   ;;  %vm1151_vm1 = vcmask (!%p607_p3), 523264  }
   0xa   : > { %610 = sbr.rel (%p607_p3) target bundleno = 2557 (0x9fd), region = 80  ;;  %s744_s25 = ssub.s32 (!%p607_p3), 1, %s2782_s19  ;;  %2530 = vmatprep.subr.bf16.mxu0 (!%p607_p3), %v2796_v2  ;;  %2554 = vmatprep.subr.bf16.mxu1 (!%p607_p3), %v2796_v2  ;;  %vm1228_vm2 = vcmask (!%p607_p3), 64512  }
   0xb   : > { %s3266_s24 = smov (%p46_p4, %s3264_s24), 0  ;;  %p745_p6 = scmp.lt.s32.totalorder (!%p607_p3), %s744_s25, 1  ;;  %2399 = vmatprep.mubr.msk.f32.mxu0 (!%p607_p3), %vm2797_vm0, %v2798_v52  ;;  %2434 = vmatprep.mubr.msk.f32.mxu1 (!%p607_p3), %vm2797_vm0, %v2798_v52 }
   0xc   : > { %3255 = sst [smem:[#allocation8_spill]] %s3266_s24  ;;  %p727_p7 = scmp.lt.s32.totalorder (!%p607_p3), %s2782_s19, 1 }
  0x11   : > { %s3268_s18 = smov (!%p735_p5, %s2778_s18), 1  ;;  %s3270_s25 = smov (!%p745_p6, %s744_s25), 1 }
  0x12   : > { %s3272_s19 = smov (!%p727_p7, %s2782_s19), 1  ;;  %s2216_s26 = sshll.u32 %s3270_s25, 1 }
  0x13   : > { %s750_s27 = sadd.s32 %s2216_s26, %s3268_s18  ;;  %s2214_s28 = sshll.u32 %s3272_s19, 1 }
  0x14   : > { %s2217_s29 = sshll.u32 %s750_s27, 3  ;;  %s2915_s30 = sadd.s32 %s2214_s28, %s3268_s18 }
  0x15   : > { %s752_s24 = scalar_lea.vmem %s3235_s3, %s2217_s29  ;;  %s2215_s23 = sshll.u32 %s2915_s30, 3 }
  0x16   : > { %v817_v0 = vld [vmem:[%s752_s24] sm:$0xff]  ;;  %s743_s22 = scalar_lea.vmem %s3234_s2, %s2215_s23  ;;  %s2930_s18 = sshll.u32 %s3272_s19, 7 }
  0x17   : > { %818 = vadd.xlane.f32.xlu0 %v817_v0  ;;  %v2926_v1 = vld [vmem:[%s743_s22] sm:$0xff]  ;;  %s2937_s24 = scalar_lea.vmem %s3237_s5, %s2930_s18  ;;  %s2944_s22 = scalar_lea.vmem %s3238_s6, %s2930_s18 }
  0x18   : > { %v844_v3 = vld [vmem:[%s2937_s24] sm:$0xff]  ;;  %v845_v4 = vld [vmem:[%s2937_s24 + $0x8] sm:$0xff]  ;;  %v846_v8 = vld [vmem:[%s2937_s24 + $0x10] sm:$0xff]  ;;  %s729_s16 = scalar_lea.vmem %s3232_s0, %s3272_s19  ;;  %s3015_s26 = scalar_lea.vmem %s3236_s4, %s2930_s18 }
  0x19   : > { %v931_v5 = vld [vmem:[%s2944_s22] sm:$0xff]  ;;  %v2531_v6 = vpack.c.bf16 %v845_v4, %v844_v3  ;;  %v932_v7 = vld [vmem:[%s2944_s22 + $0x8] sm:$0xff]  ;;  %v847_v9 = vld [vmem:[%s2937_s24 + $0x18] sm:$0xff]  ;;  %s732_s21 = scalar_lea.vmem %s3233_s1, %s3272_s19  ;;  %s776_s25 = scalar_lea.vmem %s3240_s8, %s3272_s19 }
  0x1a   : > { %v2555_v10 = vpack.c.bf16 %v932_v7, %v931_v5  ;;  %v933_v11 = vld [vmem:[%s2944_s22 + $0x10] sm:$0xff]  ;;  %v934_v12 = vld [vmem:[%s2944_s22 + $0x18] sm:$0xff]  ;;  %v2534_v13 = vpack.c.bf16 %v847_v9, %v846_v8  ;;  %v848_v15 = vld [vmem:[%s2937_s24 + $0x20] sm:$0xff]  ;;  %s779_s29 = scalar_lea.vmem %s3241_s9, %s3272_s19  ;;  %s782_s17 = scalar_lea.vmem %s3242_s10, %s3272_s19 }
  0x1b   : > { %1019 = vadd.xlane.f32.xlu0 %v2926_v1  ;;  %2532 = vmatpush3.bf16.msra.mxu0 %v2531_v6  ;;  %v2558_v14 = vpack.c.bf16 %v934_v12, %v933_v11  ;;  %v849_v16 = vld [vmem:[%s2937_s24 + $0x28] sm:$0xff]  ;;  %v935_v17 = vld [vmem:[%s2944_s22 + $0x20] sm:$0xff]  ;;  %v850_v29 = vld [vmem:[%s2937_s24 + $0x30] sm:$0xff] }
  0x1c   : > { %2556 = vmatpush3.bf16.msra.mxu1 %v2555_v10  ;;  %2533 = vmatprep.subr.bf16.mxu0 %v2796_v2  ;;  %v936_v18 = vld [vmem:[%s2944_s22 + $0x28] sm:$0xff]  ;;  %v2537_v19 = vpack.c.bf16 %v849_v16, %v848_v15  ;;  %v851_v30 = vld [vmem:[%s2937_s24 + $0x38] sm:$0xff]  ;;  %v937_v32 = vld [vmem:[%s2944_s22 + $0x30] sm:$0xff] }
  0x1d   : > { %2557 = vmatprep.subr.bf16.mxu1 %v2796_v2  ;;  %v2561_v20 = vpack.c.bf16 %v936_v18, %v935_v17  ;;  %v2540_v31 = vpack.c.bf16 %v851_v30, %v850_v29  ;;  %v938_v33 = vld [vmem:[%s2944_s22 + $0x38] sm:$0xff]  ;;  %v852_v35 = vld [vmem:[%s2937_s24 + $0x40] sm:$0xff]  ;;  %v853_v36 = vld [vmem:[%s2937_s24 + $0x48] sm:$0xff] }
  0x1e   : > { %v2564_v34 = vpack.c.bf16 %v938_v33, %v937_v32  ;;  %v2543_v37 = vpack.c.bf16 %v853_v36, %v852_v35  ;;  %v939_v38 = vld [vmem:[%s2944_s22 + $0x40] sm:$0xff]  ;;  %v940_v39 = vld [vmem:[%s2944_s22 + $0x48] sm:$0xff]  ;;  %v854_v41 = vld [vmem:[%s2937_s24 + $0x50] sm:$0xff] }
  0x1f   : > { %2535 = vmatpush3.bf16.msra.mxu0 %v2534_v13  ;;  %v2567_v40 = vpack.c.bf16 %v940_v39, %v939_v38  ;;  %v855_v42 = vld [vmem:[%s2937_s24 + $0x58] sm:$0xff]  ;;  %v941_v44 = vld [vmem:[%s2944_s22 + $0x50] sm:$0xff]  ;;  %v856_v47 = vld [vmem:[%s2937_s24 + $0x60] sm:$0xff] }
  0x20   : > { %2559 = vmatpush3.bf16.msra.mxu1 %v2558_v14  ;;  %2536 = vmatprep.subr.bf16.mxu0 %v2796_v2  ;;  %v2546_v43 = vpack.c.bf16 %v855_v42, %v854_v41  ;;  %v942_v45 = vld [vmem:[%s2944_s22 + $0x58] sm:$0xff]  ;;  %v857_v48 = vld [vmem:[%s2937_s24 + $0x68] sm:$0xff]  ;;  %v943_v49 = vld [vmem:[%s2944_s22 + $0x60] sm:$0xff] }
  0x21   : > { %2560 = vmatprep.subr.bf16.mxu1 %v2796_v2  ;;  %v2570_v46 = vpack.c.bf16 %v942_v45, %v941_v44  ;;  %v2549_v50 = vpack.c.bf16 %v857_v48, %v856_v47  ;;  %v944_v51 = vld [vmem:[%s2944_s22 + $0x68] sm:$0xff]  ;;  %v858_v54 = vld [vmem:[%s2937_s24 + $0x70] sm:$0xff]  ;;  %v859_v55 = vld [vmem:[%s2937_s24 + $0x78] sm:$0xff] }
  0x22   : > { %v2573_v53 = vpack.c.bf16 %v944_v51, %v943_v49  ;;  %v945_v56 = vld [vmem:[%s2944_s22 + $0x70] sm:$0xff]  ;;  %v946_v57 = vld [vmem:[%s2944_s22 + $0x78] sm:$0xff]  ;;  %v2552_v58 = vpack.c.bf16 %v859_v55, %v858_v54  ;;  %v1047_v4 = vld [vmem:[%s3015_s26] sm:$0xff]  ;;  %s2799_s22 = smov 64  }
  0x23   : > { %2538 = vmatpush3.bf16.msra.mxu0 %v2537_v19  ;;  %v2576_v59 = vpack.c.bf16 %v946_v57, %v945_v56  ;;  %v1048_v5 = vld [vmem:[%s3015_s26 + $0x8] sm:$0xff]  ;;  %v2254_v6 = vld [vmem:[%s732_s21] ss:$0 sm:$0xff]  ;;  %v1049_v11 = vld [vmem:[%s3015_s26 + $0x10] sm:$0xff] }
  0x24   : > { %2562 = vmatpush3.bf16.msra.mxu1 %v2561_v20  ;;  %2539 = vmatprep.subr.bf16.mxu0 %v2796_v2  ;;  %v2579_v8 = vpack.c.bf16 %v1048_v5, %v1047_v4  ;;  %v1050_v12 = vld [vmem:[%s3015_s26 + $0x18] sm:$0xff]  ;;  %v1051_v15 = vld [vmem:[%s3015_s26 + $0x20] sm:$0xff]  ;;  %v1052_v16 = vld [vmem:[%s3015_s26 + $0x28] sm:$0xff] }
  0x25   : > { %2563 = vmatprep.subr.bf16.mxu1 %v2796_v2  ;;  %v2582_v14 = vpack.c.bf16 %v1050_v12, %v1049_v11  ;;  %v2585_v18 = vpack.c.bf16 %v1052_v16, %v1051_v15  ;;  %v1053_v19 = vld [vmem:[%s3015_s26 + $0x30] sm:$0xff]  ;;  %v1054_v20 = vld [vmem:[%s3015_s26 + $0x38] sm:$0xff]  ;;  %v1059_v29 = vld [vmem:[%s3015_s26 + $0x60] sm:$0xff] }
  0x26   : > { %v1060_v30 = vld [vmem:[%s3015_s26 + $0x68] sm:$0xff]  ;;  %v1062_v35 = vld [vmem:[%s3015_s26 + $0x78] sm:$0xff] }
  0x27   : > { %2541 = vmatpush3.bf16.msra.mxu0 %v2540_v31  ;;  %v2597_v32 = vpack.c.bf16 %v1060_v30, %v1059_v29 }
  0x28   : > { %2565 = vmatpush3.bf16.msra.mxu1 %v2564_v34  ;;  %2542 = vmatprep.subr.bf16.mxu0 %v2796_v2  ;;  %v1061_v34 = vld [vmem:[%s3015_s26 + $0x70] sm:$0xff] }
  0x29   : > { %2566 = vmatprep.subr.bf16.mxu1 %v2796_v2  ;;  %v2600_v36 = vpack.c.bf16 %v1062_v35, %v1061_v34 }
  0x2b   : > { %2544 = vmatpush3.bf16.msra.mxu0 %v2543_v37 }
  0x2c   : > { %2568 = vmatpush3.bf16.msra.mxu1 %v2567_v40  ;;  %2545 = vmatprep.subr.bf16.mxu0 %v2796_v2 }
  0x2d   : > { %2569 = vmatprep.subr.bf16.mxu1 %v2796_v2 }
  0x2f   : > { %2547 = vmatpush3.bf16.msra.mxu0 %v2546_v43 }
  0x30   : > { %2571 = vmatpush3.bf16.msra.mxu1 %v2570_v46  ;;  %2548 = vmatprep.subr.bf16.mxu0 %v2796_v2 }
  0x31   : > { %2572 = vmatprep.subr.bf16.mxu1 %v2796_v2 }
  0x33   : > { %2550 = vmatpush3.bf16.msra.mxu0 %v2549_v50 }
  0x34   : > { %2574 = vmatpush3.bf16.msra.mxu1 %v2573_v53  ;;  %2551 = vmatprep.subr.bf16.mxu0 %v2796_v2 }
  0x35   : > { %2575 = vmatprep.subr.bf16.mxu1 %v2796_v2 }
  0x37   : > { %2553 = vmatpush3.bf16.msra.mxu0 %v2552_v58 }
  0x38   : > { %2577 = vmatpush3.bf16.msra.mxu1 %v2576_v59  ;;  %2578 = vmatprep.subr.bf16.mxu0 %v2796_v2 }
  0x39   : > { %2472 = vmatprep.subr.mxu1 %v2798_v52 }
  0xa4   : > { %v819_v21 = vpop.xlane.xlu0 %818 }
  0xa5   : > { %v821_v22 = vmul.f32 0.0078125, %v819_v21  ;;  %v2588_v21 = vpack.c.bf16 %v1054_v20, %v1053_v19 }
  0xa7   : > { %v2964_v23 = vsub.f32 %v817_v0, %v821_v22  ;;  %v2253_v0 = vld [vmem:[%s729_s16] ss:$0 sm:$0xff]  ;;  %s3074_s16 = scalar_lea.vmem %s3239_s7, %s2930_s18 }
  0xa8   : > { %v1020_v24 = vpop.xlane.xlu0 %1019  ;;  %v1055_v22 = vld [vmem:[%s3015_s26 + $0x40] sm:$0xff]  ;;  %v1064_v58 = vld [vmem:[%s3074_s16 + $0x8] sm:$0xff]  ;;  %v1065_v59 = vld [vmem:[%s3074_s16 + $0x10] sm:$0xff] }
  0xa9   : > { %v1022_v25 = vmul.f32 0.0078125, %v1020_v24  ;;  %v823_v26 = vmul.f32 %v2964_v23, %v2964_v23  ;;  %v1063_v57 = vld [vmem:[%s3074_s16] sm:$0xff]  ;;  %v1069_v4 = vld [vmem:[%s3074_s16 + $0x30] sm:$0xff]  ;;  %v1070_v5 = vld [vmem:[%s3074_s16 + $0x38] sm:$0xff] }
  0xaa   : > { %v1075_v30 = vld [vmem:[%s3074_s16 + $0x60] sm:$0xff]  ;;  %v1077_v35 = vld [vmem:[%s3074_s16 + $0x70] sm:$0xff] }
  0xab   : > { %v2969_v27 = vsub.f32 %v2926_v1, %v1022_v25  ;;  %824 = vadd.xlane.f32.xlu1 %v823_v26  ;;  %v1057_v25 = vld [vmem:[%s3015_s26 + $0x50] sm:$0xff]  ;;  %v1058_v26 = vld [vmem:[%s3015_s26 + $0x58] sm:$0xff] }
  0xad   : > { %v1024_v28 = vmul.f32 %v2969_v27, %v2969_v27 }
  0xaf   : > { %1025 = vadd.xlane.f32.xlu1 %v1024_v28  ;;  %v2594_v28 = vpack.c.bf16 %v1058_v26, %v1057_v25  ;;  %v1073_v25 = vld [vmem:[%s3074_s16 + $0x50] sm:$0xff] }
 0x138   : > { %v825_v60 = vpop.xlane.xlu1 %824 }
 0x139   : > { %v826_v61 = vmul.f32 0.0078125, %v825_v60  ;;  %v2615_v60 = vpack.c.bf16 %v1064_v58, %v1063_v57 }
 0x13b   : > { %v827_v62 = vadd.f32 1e-05, %v826_v61  ;;  %v1066_v61 = vld [vmem:[%s3074_s16 + $0x18] sm:$0xff] }
 0x13c   : > { %v1026_v9 = vpop.xlane.xlu1 %1025 }
 0x13d   : > { %2734 = vrsqrt.f32 %v827_v62  ;;  %v1027_v13 = vmul.f32 0.0078125, %v1026_v9  ;;  %v2618_v62 = vpack.c.bf16 %v1066_v61, %v1065_v59 }
 0x13f   : > { %v1028_v17 = vadd.f32 1e-05, %v1027_v13 }
 0x141   : > { %2736 = vrsqrt.f32 %v1028_v17 }
 0x147   : > { %v2735_v63 = vpop.eup %2734 }
 0x148   : > { %v829_v3 = vmul.f32 %v2735_v63, %v2964_v23  ;;  %v1056_v23 = vld [vmem:[%s3015_s26 + $0x48] sm:$0xff]  ;;  %v1067_v63 = vld [vmem:[%s3074_s16 + $0x20] sm:$0xff]  ;;  %s2251_s26 = sshll.u32 %s3272_s19, 8 }
 0x149   : > { %v2591_v24 = vpack.c.bf16 %v1056_v23, %v1055_v22  ;;  %v1071_v23 = vld [vmem:[%s3074_s16 + $0x40] sm:$0xff]  ;;  %s3120_s21 = scalar_lea.vmem %s3243_s11, %s2251_s26  ;;  %s3168_s20 = scalar_lea.vmem %s3245_s13, %s2251_s26 }
 0x14a   : > { %v836_v7 = vmul.f32 %v2253_v0, %v829_v3  ;;  %v1670_v58 = vld [vmem:[%s3120_s21 + $0x20] sm:$0xff]  ;;  %v1672_v59 = vld [vmem:[%s3120_s21 + $0x30] sm:$0xff]  ;;  %v1677_v61 = vld [vmem:[%s3120_s21 + $0x58] sm:$0xff] }
 0x14b   : > { %v2737_v31 = vpop.eup %2736 }
 0x14c   : > { %v843_v10 = vadd.f32 %v2254_v6, %v836_v7  ;;  %v1030_v33 = vmul.f32 %v2737_v31, %v2969_v27  ;;  %v1076_v31 = vld [vmem:[%s3074_s16 + $0x68] sm:$0xff] }
 0x14e   : > { %2400 = vmatmul.mubr.f32.vlgmr.msra.gmra.mrb[0].mxu0 %v843_v10  ;;  %2435 = vmatmul.mubr.f32.vlgmr.msra.gmra.mrb[0].mxu1 %v843_v10  ;;  %v1037_v37 = vmul.f32 %v2253_v0, %v1030_v33  ;;  %v1068_v0 = vld [vmem:[%s3074_s16 + $0x28] sm:$0xff] }
 0x14f   : > { %2580 = vmatpush3.bf16.msra.mxu0 %v2579_v8  ;;  %2469 = vmatprep.mubr.msk.f32.mxu0 %vm2797_vm0, %v2798_v52  ;;  %v2621_v3 = vpack.c.bf16 %v1068_v0, %v1067_v63  ;;  %v1674_v0 = vld [vmem:[%s3120_s21 + $0x40] sm:$0xff] }
 0x150   : > { %2581 = vmatprep.subr.bf16.mxu0 %v2796_v2  ;;  %2474 = vmatprep.mubr.msk.f32.mxu1 %vm2797_vm0, %v2798_v52  ;;  %v1044_v38 = vadd.f32 %v2254_v6, %v1037_v37  ;;  %v2624_v6 = vpack.c.bf16 %v1070_v5, %v1069_v4 }
 0x153   : > { %2583 = vmatpush3.bf16.msra.mxu0 %v2582_v14 }
 0x154   : > { %2584 = vmatprep.subr.bf16.mxu0 %v2796_v2 }
 0x157   : > { %2586 = vmatpush3.bf16.msra.mxu0 %v2585_v18 }
 0x158   : > { %2587 = vmatprep.subr.bf16.mxu0 %v2796_v2 }
 0x15b   : > { %2589 = vmatpush3.bf16.msra.mxu0 %v2588_v21 }
 0x15c   : > { %2590 = vmatprep.subr.bf16.mxu0 %v2796_v2 }
 0x15f   : > { %2592 = vmatpush3.bf16.msra.mxu0 %v2591_v24  ;;  %v1072_v24 = vld [vmem:[%s3074_s16 + $0x48] sm:$0xff] }
 0x160   : > { %2593 = vmatprep.subr.bf16.mxu0 %v2796_v2  ;;  %v2603_v26 = vpack.c.bf16 %v1072_v24, %v1071_v23  ;;  %v1686_v23 = vld [vmem:[%s3120_s21 + $0xa0] sm:$0xff]  ;;  %v1688_v24 = vld [vmem:[%s3120_s21 + $0xb0] sm:$0xff] }
 0x163   : > { %2595 = vmatpush3.bf16.msra.mxu0 %v2594_v28  ;;  %v1074_v28 = vld [vmem:[%s3074_s16 + $0x58] sm:$0xff] }
 0x164   : > { %2596 = vmatprep.subr.bf16.mxu0 %v2796_v2  ;;  %v2606_v29 = vpack.c.bf16 %v1074_v28, %v1073_v25  ;;  %v1693_v28 = vld [vmem:[%s3120_s21 + $0xd8] sm:$0xff] }
 0x167   : > { %2598 = vmatpush3.bf16.msra.mxu0 %v2597_v32  ;;  %v2609_v32 = vpack.c.bf16 %v1076_v31, %v1075_v30  ;;  %v1690_v31 = vld [vmem:[%s3120_s21 + $0xc0] sm:$0xff] }
 0x168   : > { %2599 = vmatprep.subr.bf16.mxu0 %v2796_v2 }
 0x16b   : > { %2601 = vmatpush3.bf16.msra.mxu0 %v2600_v36  ;;  %v1078_v36 = vld [vmem:[%s3074_s16 + $0x78] sm:$0xff] }
 0x16c   : > { %2614 = vmatprep.subr.bf16.mxu0 %v2796_v2  ;;  %v2612_v37 = vpack.c.bf16 %v1078_v36, %v1077_v35 }
 0x16e   : > { %2470 = vmatmul.mubr.f32.vlgmr.msra.gmra.mrb[2].mxu0 %v1044_v38 }
 0x16f   : > { %2527 = vmatprep.mubr.msk.f32.mxu0 %vm2797_vm0, %v2798_v52  ;;  %2616 = vmatpush3.bf16.msra.mxu0 %v2615_v60  ;;  %v1675_v60 = vld [vmem:[%s3120_s21 + $0x48] sm:$0xff] }
 0x170   : > { %2617 = vmatprep.subr.bf16.mxu0 %v2796_v2  ;;  %v2634_v63 = vpack.c.bf16 %v1677_v61, %v1675_v60  ;;  %v1860_v60 = vld [vmem:[%s3168_s20 + $0xa8] sm:$0xff] }
 0x173   : > { %2619 = vmatpush3.bf16.msra.mxu0 %v2618_v62  ;;  %v2632_v62 = vpack.c.bf16 %v1672_v59, %v1670_v58  ;;  %v1859_v59 = vld [vmem:[%s3168_s20 + $0xa0] sm:$0xff] }
 0x174   : > { %2620 = vmatprep.subr.bf16.mxu0 %v2796_v2  ;;  %v2666_v61 = vpack.c.bf16 %v1860_v60, %v1859_v59 }
 0x177   : > { %2622 = vmatpush3.bf16.msra.mxu0 %v2621_v3  ;;  %v1676_v3 = vld [vmem:[%s3120_s21 + $0x50] sm:$0xff] }
 0x178   : > { %2623 = vmatprep.subr.bf16.mxu0 %v2796_v2  ;;  %v2636_v4 = vpack.c.bf16 %v1676_v3, %v1674_v0  ;;  %v1861_v3 = vld [vmem:[%s3168_s20 + $0xb0] sm:$0xff] }
 0x17b   : > { %2625 = vmatpush3.bf16.msra.mxu0 %v2624_v6 }
 0x221   : > { %v926_v39 = vpop.f32.mrb[0].mxu0  ;;  %v1013_v27 = vpop.f32.mrb[0].mxu1 }
 0x222   : > { %v2436_v40 = vpop.f32.mrb[1].mxu1  ;;  %1318 = vrot.lane.b32.xlu1 %v926_v39, %s2799_s22  ;;  %v2401_v41 = vpop.f32.mrb[1].mxu0  ;;  %2473 = vmatpush3.xpose.msk.msra.mxu1 %vm1151_vm1, %v926_v39 }
 0x223   : > { %2477 = vmatprep.subr.mxu1 %v2798_v52 }
 0x241   : > { %v1146_v42 = vpop.f32.mrb[2].mxu0 }
 0x242   : > { %v1150_v43 = vmul.f32 0.088388346, %v1146_v42  ;;  %v2471_v44 = vpop.f32.mrb[3].mxu0 }
 0x244   : > { %2475 = vmatmul.mubr.msk.f32.vlgmr.msra.gmra.mrb[2].mxu1 %vm1151_vm1, %v1150_v43 }
 0x245   : > { %2478 = vmatpush3.msra.mxu1 %v1013_v27  ;;  %2479 = vmatprep.mubr.msk.f32.mxu1 %vm2797_vm0, %v2798_v52 }
 0x246   : > { %2482 = vmatprep.subr.mxu1 %v2798_v52 }
 0x294   : > { %v1319_v54 = vpop.permute.xlu1 %1318 }
 0x317   : > { %v1224_v45 = vpop.f32.mrb[2].mxu1 }
 0x318   : > { %v2476_v46 = vpop.f32.mrb[3].mxu1  ;;  %v1229_v47 = vsel %vm1228_vm2, %v1224_v45, -inf }
 0x319   : > { %1230 = vmax.xlane.f32.xlu0 %v1229_v47 }
 0x32f   : > { %1316 = vrot.lane.b32.xlu0 %v1150_v43, %s2799_s22 }
 0x333   : > { %1404 = vrot.lane.b32.xlu0 %v1013_v27, %s2799_s22  ;;  %s791_s22 = scalar_lea.vmem %s3244_s12, %s2214_s28 }
 0x3a6   : > { %v1231_v48 = vpop.xlane.xlu0 %1230 }
 0x3a7   : > { %v1232_v49 = vsub.f32 %v1224_v45, %v1231_v48 }
 0x3a9   : > { %v1233_v50 = vmul.f32 1.442695, %v1232_v49 }
 0x3aa   : > { %v1317_v51 = vpop.permute.xlu0 %1316 }
 0x3ab   : > { %2738 = vpow2.f32 %v1233_v50  ;;  %v1666_v50 = vld [vmem:[%s3120_s21] sm:$0xff] }
 0x3ae   : > { %v1405_v56 = vpop.permute.xlu0 %1404 }
 0x3b5   : > { %v2739_v53 = vpop.eup %2738 }
 0x3b6   : > { %2480 = vmatmul.mubr.msk.f32.vlgmr.msra.gmra.mrb[4].mxu1 %vm1228_vm2, %v2739_v53  ;;  %v1235_v55 = vsel %vm1228_vm2, %v2739_v53, 0.0  ;;  %v1668_v53 = vld [vmem:[%s3120_s21 + $0x10] sm:$0xff] }
 0x3b7   : > { %2483 = vmatpush3.xpose.msk.msra.mxu1 %vm1151_vm1, %v1319_v54  ;;  %1236 = vadd.xlane.f32.xlu0 %v1235_v55  ;;  %v1671_v54 = vld [vmem:[%s3120_s21 + $0x28] sm:$0xff]  ;;  %v1673_v55 = vld [vmem:[%s3120_s21 + $0x38] sm:$0xff] }
 0x3b8   : > { %2484 = vmatprep.mubr.msk.f32.mxu1 %vm2797_vm0, %v2798_v52  ;;  %2487 = vmatprep.subr.mxu1 %v2798_v52  ;;  %v2630_v57 = vpack.c.bf16 %v1673_v55, %v1671_v54  ;;  %v1858_v54 = vld [vmem:[%s3168_s20 + $0x98] sm:$0xff] }
 0x3ba   : > { %2485 = vmatmul.mubr.msk.f32.vlgmr.msra.gmra.mrb[6].mxu1 %vm1151_vm1, %v1317_v51 }
 0x3bb   : > { %2488 = vmatpush3.msra.mxu1 %v1405_v56  ;;  %2489 = vmatprep.mubr.msk.f32.mxu1 %vm2797_vm0, %v2798_v52  ;;  %v2628_v56 = vpack.c.bf16 %v1668_v53, %v1666_v50  ;;  %v1840_v50 = vld [vmem:[%s3168_s20 + $0x8] sm:$0xff]  ;;  %v1857_v53 = vld [vmem:[%s3168_s20 + $0x90] sm:$0xff] }
 0x3bc   : > { %2602 = vmatprep.subr.bf16.mxu1 %v2796_v2  ;;  %v2662_v55 = vpack.c.bf16 %v1858_v54, %v1857_v53 }
 0x444   : > { %v1237_v7 = vpop.xlane.xlu0 %1236 }
 0x445   : > { %2740 = vrcp.f32 %v1237_v7 }
 0x44f   : > { %v2741_v8 = vpop.eup %2740 }
 0x450   : > { %v1312_v9 = vmul.f32 %v2741_v8, %v1237_v7 }
 0x452   : > { %v1313_v10 = vsub.f32 2.0, %v1312_v9  ;;  %v1679_v9 = vld [vmem:[%s3120_s21 + $0x68] sm:$0xff] }
 0x454   : > { %v1314_v11 = vmul.f32 %v2741_v8, %v1313_v10  ;;  %v1681_v10 = vld [vmem:[%s3120_s21 + $0x78] sm:$0xff] }
 0x489   : > { %v1307_v12 = vpop.f32.mrb[4].mxu1 }
 0x48a   : > { %v1315_v13 = vmul.f32 %v1314_v11, %v1307_v12  ;;  %v2481_v14 = vpop.f32.mrb[5].mxu1  ;;  %v2638_v11 = vpack.c.bf16 %v1681_v10, %v1679_v9  ;;  %v1678_v12 = vld [vmem:[%s3120_s21 + $0x60] sm:$0xff]  ;;  %v1864_v10 = vld [vmem:[%s3168_s20 + $0xc8] sm:$0xff] }
 0x48b   : > { %v1863_v9 = vld [vmem:[%s3168_s20 + $0xc0] sm:$0xff] }
 0x48c   : > { %2528 = vmatmul.mubr.msk.f32.vlgmr.msra.gmra.mrb[4].mxu0 %vm1151_vm1, %v1315_v13  ;;  %v1680_v13 = vld [vmem:[%s3120_s21 + $0x70] sm:$0xff] }
 0x48d   : > { %v1390_v15 = vpop.f32.mrb[6].mxu1  ;;  %v2640_v14 = vpack.c.bf16 %v1680_v13, %v1678_v12  ;;  %v1847_v12 = vld [vmem:[%s3168_s20 + $0x40] sm:$0xff]  ;;  %v1848_v13 = vld [vmem:[%s3168_s20 + $0x48] sm:$0xff] }
 0x48e   : > { %v2486_v16 = vpop.f32.mrb[7].mxu1  ;;  %v1394_v17 = vsel %vm1228_vm2, %v1390_v15, -inf }
 0x48f   : > { %1395 = vmax.xlane.f32.xlu1 %v1394_v17  ;;  %v1685_v16 = vld [vmem:[%s3120_s21 + $0x98] sm:$0xff] }
 0x51c   : > { %v1396_v18 = vpop.xlane.xlu1 %1395 }
 0x51d   : > { %v1397_v19 = vsub.f32 %v1390_v15, %v1396_v18  ;;  %v1683_v15 = vld [vmem:[%s3120_s21 + $0x88] sm:$0xff]  ;;  %v1682_v18 = vld [vmem:[%s3120_s21 + $0x80] sm:$0xff] }
 0x51e   : > { %v2642_v17 = vpack.c.bf16 %v1685_v16, %v1683_v15  ;;  %v1865_v15 = vld [vmem:[%s3168_s20 + $0xd0] sm:$0xff]  ;;  %v1866_v16 = vld [vmem:[%s3168_s20 + $0xd8] sm:$0xff] }
 0x51f   : > { %v1398_v20 = vmul.f32 1.442695, %v1397_v19  ;;  %v1684_v19 = vld [vmem:[%s3120_s21 + $0x90] sm:$0xff] }
 0x521   : > { %2742 = vpow2.f32 %v1398_v20  ;;  %v1687_v20 = vld [vmem:[%s3120_s21 + $0xa8] sm:$0xff] }
 0x52b   : > { %v2743_v21 = vpop.eup %2742 }
 0x52c   : > { %2490 = vmatmul.mubr.msk.f32.vlgmr.msra.gmra.mrb[8].mxu1 %vm1228_vm2, %v2743_v21  ;;  %v1400_v22 = vsel %vm1228_vm2, %v2743_v21, 0.0  ;;  %v2644_v21 = vpack.c.bf16 %v1684_v19, %v1682_v18  ;;  %v1849_v18 = vld [vmem:[%s3168_s20 + $0x50] sm:$0xff]  ;;  %v1850_v19 = vld [vmem:[%s3168_s20 + $0x58] sm:$0xff] }
 0x52d   : > { %1401 = vadd.xlane.f32.xlu1 %v1400_v22  ;;  %2508 = vmatprep.mubr.msk.f32.mxu1 %vm2797_vm0, %v2798_v52  ;;  %v1689_v22 = vld [vmem:[%s3120_s21 + $0xb8] sm:$0xff] }
 0x52e   : > { %2604 = vmatpush3.bf16.msra.mxu1 %v2603_v26  ;;  %v2646_v25 = vpack.c.bf16 %v1689_v22, %v1687_v20  ;;  %v1691_v26 = vld [vmem:[%s3120_s21 + $0xc8] sm:$0xff]  ;;  %v2680_v20 = vpack.c.bf16 %v1850_v19, %v1849_v18 }
 0x52f   : > { %2605 = vmatprep.subr.bf16.mxu1 %v2796_v2  ;;  %v2650_v30 = vpack.c.bf16 %v1693_v28, %v1691_v26  ;;  %v1868_v22 = vld [vmem:[%s3168_s20 + $0xe8] sm:$0xff]  ;;  %v1869_v28 = vld [vmem:[%s3168_s20 + $0xf0] sm:$0xff] }
 0x532   : > { %2607 = vmatpush3.bf16.msra.mxu1 %v2606_v29  ;;  %v2648_v29 = vpack.c.bf16 %v1688_v24, %v1686_v23  ;;  %v1851_v24 = vld [vmem:[%s3168_s20 + $0x60] sm:$0xff] }
 0x533   : > { %2608 = vmatprep.subr.bf16.mxu1 %v2796_v2 }
 0x536   : > { %2610 = vmatpush3.bf16.msra.mxu1 %v2609_v32  ;;  %v1692_v32 = vld [vmem:[%s3120_s21 + $0xd0] sm:$0xff] }
 0x537   : > { %2611 = vmatprep.subr.bf16.mxu1 %v2796_v2  ;;  %v2241_v2 = vld [vmem:[%s776_s25] ss:$0 sm:$0xff]  ;;  %v2652_v35 = vpack.c.bf16 %v1692_v32, %v1690_v31  ;;  %v1853_v31 = vld [vmem:[%s3168_s20 + $0x70] sm:$0xff]  ;;  %v1854_v32 = vld [vmem:[%s3168_s20 + $0x78] sm:$0xff] }
 0x53a   : > { %2613 = vmatpush3.bf16.msra.mxu1 %v2612_v37  ;;  %v1694_v37 = vld [vmem:[%s3120_s21 + $0xe0] sm:$0xff] }
 0x55f   : > { %v1627_v33 = vpop.f32.mrb[4].mxu0 }
 0x560   : > { %v2529_v34 = vpop.f32.mrb[5].mxu0 }
 0x561   : > { %v1697_v34 = vld [vmem:[%s3120_s21 + $0xf8] sm:$0xff] }
 0x5ba   : > { %v1402_v38 = vpop.xlane.xlu1 %1401 }
 0x5bb   : > { %2744 = vrcp.f32 %v1402_v38 }
 0x5c5   : > { %v2745_v39 = vpop.eup %2744 }
 0x5c6   : > { %v1481_v27 = vmul.f32 %v2745_v39, %v1402_v38  ;;  %v1696_v38 = vld [vmem:[%s3120_s21 + $0xf0] sm:$0xff] }
 0x5c8   : > { %v1482_v40 = vsub.f32 2.0, %v1481_v27 }
 0x5ca   : > { %v1483_v41 = vmul.f32 %v2745_v39, %v1482_v40  ;;  %v2656_v39 = vpack.c.bf16 %v1696_v38, %v1694_v37  ;;  %v1698_v37 = vld [vmem:[%s791_s22] sm:$0x3] }
 0x5ff   : > { %v1476_v42 = vpop.f32.mrb[8].mxu1 }
 0x600   : > { %v1484_v43 = vmul.f32 %v1483_v41, %v1476_v42  ;;  %v2491_v44 = vpop.f32.mrb[9].mxu1 }
 0x602   : > { %2509 = vmatmul.mubr.msk.f32.vlgmr.msra.gmra.mrb[10].mxu1 %vm1151_vm1, %v1484_v43  ;;  %v2242_v43 = vld [vmem:[%s779_s29] ss:$0 sm:$0xff]  ;;  %s799_s29 = scalar_lea.vmem %s3246_s14, %s3272_s19 }
 0x603   : > { %1774 = vmatprep.mubr.f32.mxu1 %v2798_v52  ;;  %v1669_v52 = vld [vmem:[%s3120_s21 + $0x18] sm:$0xff] }
 0x6d5   : > { %v1554_v45 = vpop.f32.mrb[10].mxu1 }
 0x6d6   : > { %v1628_v46 = vadd.f32 %v1627_v33, %v1554_v45  ;;  %v2510_v47 = vpop.f32.mrb[11].mxu1  ;;  %v1695_v33 = vld [vmem:[%s3120_s21 + $0xe8] sm:$0xff] }
 0x6d7   : > { %v2654_v36 = vpack.c.bf16 %v1697_v34, %v1695_v33  ;;  %v1855_v47 = vld [vmem:[%s3168_s20 + $0x80] sm:$0xff]  ;;  %v2688_v33 = vpack.c.bf16 %v1854_v32, %v1853_v31  ;;  %v831_v34 = vlaneseq }
 0x6d8   : > { %v1637_v48 = vadd.f32 %v2241_v2, %v1628_v46  ;;  %v2243_v2 = vld [vmem:[%s782_s17] ss:$0 sm:$0xff]  ;;  %s810_s17 = scalar_lea.vmem %s3247_s15, %s2215_s23 }
 0x6da   : > { %v3111_v49 = vadd.f32 %v1637_v48, %v2926_v1  ;;  %v1667_v1 = vld [vmem:[%s3120_s21 + $0x8] sm:$0xff] }
 0x6db   : > { %v2626_v51 = vpack.c.bf16 %v1669_v52, %v1667_v1  ;;  %v1856_v48 = vld [vmem:[%s3168_s20 + $0x88] sm:$0xff]  ;;  %v1839_v52 = vld [vmem:[%s3168_s20] sm:$0xff] }
 0x6dc   : > { %1641 = vadd.xlane.f32.xlu1 %v3111_v49  ;;  %v2658_v1 = vpack.c.bf16 %v1856_v48, %v1855_v47 }
 0x6dd   : > { %2627 = vmatprep.subr.bf16.mxu1 %v2626_v51  ;;  %v2660_v51 = vpack.c.bf16 %v1840_v50, %v1839_v52 }
 0x6de   : > { %2629 = vmatpush1.bf16.msra.mxu1 %v2628_v56  ;;  %2659 = vmatprep.subr.bf16.mxu0 %v2658_v1  ;;  %v1841_v56 = vld [vmem:[%s3168_s20 + $0x10] sm:$0xff] }
 0x6df   : > { %2631 = vmatprep.subr.bf16.mxu1 %v2630_v57  ;;  %2661 = vmatpush3.bf16.msra.mxu0 %v2660_v51  ;;  %v1842_v57 = vld [vmem:[%s3168_s20 + $0x18] sm:$0xff] }
 0x6e0   : > { %v2664_v58 = vpack.c.bf16 %v1842_v57, %v1841_v56  ;;  %2663 = vmatprep.subr.bf16.mxu0 %v2662_v55 }
 0x6e2   : > { %2633 = vmatpush1.bf16.msra.mxu1 %v2632_v62  ;;  %v1843_v62 = vld [vmem:[%s3168_s20 + $0x20] sm:$0xff] }
 0x6e3   : > { %2635 = vmatprep.subr.bf16.mxu1 %v2634_v63  ;;  %2665 = vmatpush3.bf16.msra.mxu0 %v2664_v58  ;;  %v1844_v63 = vld [vmem:[%s3168_s20 + $0x28] sm:$0xff] }
 0x6e4   : > { %v2668_v0 = vpack.c.bf16 %v1844_v63, %v1843_v62  ;;  %2667 = vmatprep.subr.bf16.mxu0 %v2666_v61 }
 0x6e6   : > { %2637 = vmatpush1.bf16.msra.mxu1 %v2636_v4  ;;  %v1862_v4 = vld [vmem:[%s3168_s20 + $0xb8] sm:$0xff] }
 0x6e7   : > { %2639 = vmatprep.subr.bf16.mxu1 %v2638_v11  ;;  %2669 = vmatpush3.bf16.msra.mxu0 %v2668_v0  ;;  %v2674_v11 = vpack.c.bf16 %v1864_v10, %v1863_v9 }
 0x6ea   : > { %2641 = vmatpush1.bf16.msra.mxu1 %v2640_v14  ;;  %v2676_v14 = vpack.c.bf16 %v1848_v13, %v1847_v12 }
 0x6eb   : > { %2643 = vmatprep.subr.bf16.mxu1 %v2642_v17  ;;  %v2678_v17 = vpack.c.bf16 %v1866_v16, %v1865_v15 }
 0x6ee   : > { %2645 = vmatpush1.bf16.msra.mxu1 %v2644_v21  ;;  %v1867_v21 = vld [vmem:[%s3168_s20 + $0xe0] sm:$0xff] }
 0x6ef   : > { %2647 = vmatprep.subr.bf16.mxu1 %v2646_v25  ;;  %v2682_v23 = vpack.c.bf16 %v1868_v22, %v1867_v21  ;;  %v1852_v25 = vld [vmem:[%s3168_s20 + $0x68] sm:$0xff] }
 0x6f0   : > { %v2684_v26 = vpack.c.bf16 %v1852_v25, %v1851_v24 }
 0x6f2   : > { %2649 = vmatpush1.bf16.msra.mxu1 %v2648_v29  ;;  %v1870_v29 = vld [vmem:[%s3168_s20 + $0xf8] sm:$0xff] }
 0x6f3   : > { %2651 = vmatprep.subr.bf16.mxu1 %v2650_v30  ;;  %v2686_v30 = vpack.c.bf16 %v1870_v29, %v1869_v28 }
 0x6f6   : > { %2653 = vmatpush1.bf16.msra.mxu1 %v2652_v35  ;;  %v832_v35 = vshrl.u32 %v831_v34, 7 }
 0x6f7   : > { %2655 = vmatprep.subr.bf16.mxu1 %v2654_v36 }
 0x6f8   : > { %v833_v36 = vsub.s32 0, %v832_v35  ;;  %v1706_v38 = vsub.s32 1, %v832_v35 }
 0x6fa   : > { %2657 = vmatpush1.bf16.msra.mxu1 %v2656_v39  ;;  %v1703_v39 = vrot.slane %v1698_v37, %v833_v36 }
 0x769   : > { %v1642_v5 = vpop.xlane.xlu1 %1641 }
 0x76a   : > { %v1643_v6 = vmul.f32 0.0078125, %v1642_v5  ;;  %v2670_v5 = vpack.c.bf16 %v1862_v4, %v1861_v3 }
 0x76c   : > { %v1644_v7 = vsub.f32 %v3111_v49, %v1643_v6  ;;  %v1845_v6 = vld [vmem:[%s3168_s20 + $0x30] sm:$0xff]  ;;  %2671 = vmatprep.subr.bf16.mxu0 %v2670_v5 }
 0x76e   : > { %v1645_v8 = vmul.f32 %v1644_v7, %v1644_v7 }
 0x770   : > { %1646 = vadd.xlane.f32.xlu0 %v1645_v8 }
 0x7fd   : > { %v1647_v27 = vpop.xlane.xlu0 %1646 }
 0x7fe   : > { %v1648_v40 = vmul.f32 0.0078125, %v1647_v27  ;;  %v1707_v27 = vrot.slane %v1698_v37, %v1706_v38 }
 0x800   : > { %v1649_v41 = vadd.f32 1e-05, %v1648_v40 }
 0x802   : > { %2746 = vrsqrt.f32 %v1649_v41 }
 0x80c   : > { %v2747_v42 = vpop.eup %2746 }
 0x80d   : > { %v1651_v44 = vmul.f32 %v2747_v42, %v1644_v7  ;;  %v1846_v7 = vld [vmem:[%s3168_s20 + $0x38] sm:$0xff] }
 0x80e   : > { %v2672_v8 = vpack.c.bf16 %v1846_v7, %v1845_v6 }
 0x80f   : > { %v1658_v45 = vmul.f32 %v2242_v43, %v1651_v44 }
 0x810   : > { %2673 = vmatpush3.bf16.msra.mxu0 %v2672_v8 }
 0x811   : > { %v1665_v46 = vadd.f32 %v2243_v2, %v1658_v45  ;;  %2675 = vmatprep.subr.bf16.mxu0 %v2674_v11 }
 0x813   : > { %1775 = vmatmul.mubr.f32.vlgmr.msra.gmra.mrb[12].mxu1 %v1665_v46 }
 0x814   : > { %2677 = vmatpush3.bf16.msra.mxu0 %v2676_v14 }
 0x815   : > { %2679 = vmatprep.subr.bf16.mxu0 %v2678_v17 }
 0x818   : > { %2681 = vmatpush3.bf16.msra.mxu0 %v2680_v20 }
 0x819   : > { %2683 = vmatprep.subr.bf16.mxu0 %v2682_v23 }
 0x81c   : > { %2685 = vmatpush3.bf16.msra.mxu0 %v2684_v26 }
 0x81d   : > { %2687 = vmatprep.subr.bf16.mxu0 %v2686_v30 }
 0x820   : > { %2689 = vmatpush3.bf16.msra.mxu0 %v2688_v33 }
 0x8e6   : > { %v1776_v40 = vpop.f32.mrb[12].mxu1 }
 0x8e7   : > { %v1777_v41 = vadd.f32 %v1776_v40, %v1703_v39  ;;  %v1778_v42 = vpop.f32.mrb[13].mxu1  ;;  %v2244_v40 = vld [vmem:[%s799_s29] ss:$0 sm:$0xff] }
 0x8e8   : > { %v1779_v43 = vadd.f32 %v1778_v42, %v1707_v27 }
 0x8e9   : > { %v1783_v44 = vmul.f32 0.70710677, %v1777_v41  ;;  %v1781_v35 = vmul.f32 0.5, %v1777_v41 }
 0x8ea   : > { %v1784_v2 = vmul.f32 0.70710677, %v1779_v43  ;;  %v1782_v33 = vmul.f32 0.5, %v1779_v43 }
 0x8eb   : > { %v1785_v45 = vand.u32 2147483647, %v1783_v44  ;;  %vm1829_vm3 = vcmp.ge.f32.partialorder %v1783_v44, 0.0 }
 0x8ec   : > { %v1786_v46 = vand.u32 2147483647, %v1784_v2  ;;  %vm1830_vm4 = vcmp.ge.f32.partialorder %v1784_v2, 0.0 }
 0x8ed   : > { %v1787_v47 = vmul.f32 0.3275911, %v1785_v45  ;;  %v1817_v54 = vmul.f32 %v1785_v45, %v1785_v45 }
 0x8ee   : > { %v1788_v48 = vmul.f32 0.3275911, %v1786_v46  ;;  %v1818_v57 = vmul.f32 %v1786_v46, %v1786_v46 }
 0x8ef   : > { %v1789_v1 = vadd.f32 1.0, %v1787_v47  ;;  %v1819_v60 = vsub.f32 0.0, %v1817_v54 }
 0x8f0   : > { %v1790_v52 = vadd.f32 1.0, %v1788_v48  ;;  %v1820_v63 = vsub.f32 0.0, %v1818_v57 }
 0x8f1   : > { %2748 = vrcp.f32 %v1789_v1  ;;  %v1821_v4 = vmul.f32 1.442695, %v1819_v60 }
 0x8f2   : > { %2750 = vrcp.f32 %v1790_v52  ;;  %v1823_v7 = vmul.f32 1.442695, %v1820_v63 }
 0x8f3   : > { %2752 = vpow2.f32 %v1821_v4 }
 0x8f4   : > { %2754 = vpow2.f32 %v1823_v7 }
 0x8fb   : > { %v2749_v50 = vpop.eup %2748 }
 0x8fc   : > { %v2751_v51 = vpop.eup %2750  ;;  %v1793_v53 = vmul.f32 %v2749_v50, %v1789_v1 }
 0x8fd   : > { %v1794_v55 = vmul.f32 %v2751_v51, %v1790_v52  ;;  %v2753_v20 = vpop.eup %2752 }
 0x8fe   : > { %v1795_v56 = vsub.f32 2.0, %v1793_v53  ;;  %v2755_v22 = vpop.eup %2754 }
 0x8ff   : > { %v1796_v58 = vsub.f32 2.0, %v1794_v55 }
 0x900   : > { %v1797_v59 = vmul.f32 %v2749_v50, %v1795_v56 }
 0x901   : > { %v1798_v61 = vmul.f32 %v2751_v51, %v1796_v58 }
 0x902   : > { %v1799_v62 = vmul.f32 1.0614054, %v1797_v59 }
 0x903   : > { %v1800_v0 = vmul.f32 1.0614054, %v1798_v61 }
 0x904   : > { %v1801_v3 = vadd.f32 -1.4531521, %v1799_v62 }
 0x905   : > { %v1802_v5 = vadd.f32 -1.4531521, %v1800_v0 }
 0x906   : > { %v1803_v6 = vmul.f32 %v1801_v3, %v1797_v59 }
 0x907   : > { %v1804_v8 = vmul.f32 %v1802_v5, %v1798_v61 }
 0x908   : > { %v1805_v9 = vadd.f32 1.4214138, %v1803_v6 }
 0x909   : > { %v1806_v10 = vadd.f32 1.4214138, %v1804_v8 }
 0x90a   : > { %v1807_v11 = vmul.f32 %v1805_v9, %v1797_v59 }
 0x90b   : > { %v1808_v12 = vmul.f32 %v1806_v10, %v1798_v61 }
 0x90c   : > { %v1809_v13 = vadd.f32 -0.28449672, %v1807_v11 }
 0x90d   : > { %v1810_v14 = vadd.f32 -0.28449672, %v1808_v12 }
 0x90e   : > { %v1811_v15 = vmul.f32 %v1809_v13, %v1797_v59 }
 0x90f   : > { %v1812_v16 = vmul.f32 %v1810_v14, %v1798_v61 }
 0x910   : > { %v1813_v17 = vadd.f32 0.2548296, %v1811_v15 }
 0x911   : > { %v1814_v18 = vadd.f32 0.2548296, %v1812_v16 }
 0x912   : > { %v1815_v19 = vmul.f32 %v1813_v17, %v1797_v59 }
 0x913   : > { %v1816_v21 = vmul.f32 %v1814_v18, %v1798_v61 }
 0x914   : > { %v1825_v23 = vmul.f32 %v2753_v20, %v1815_v19 }
 0x915   : > { %v1826_v24 = vmul.f32 %v2755_v22, %v1816_v21 }
 0x916   : > { %v1827_v25 = vsub.f32 1.0, %v1825_v23 }
 0x917   : > { %v1828_v26 = vsub.f32 1.0, %v1826_v24 }
 0x918   : > { %v1831_v28 = vsub.f32 0.0, %v1827_v25 }
 0x919   : > { %v1832_v29 = vsub.f32 0.0, %v1828_v26 }
 0x91a   : > { %v1833_v30 = vsel %vm1829_vm3, %v1827_v25, %v1831_v28 }
 0x91b   : > { %v1835_v31 = vadd.f32 1.0, %v1833_v30  ;;  %v1834_v32 = vsel %vm1830_vm4, %v1828_v26, %v1832_v29 }
 0x91c   : > { %v1836_v34 = vadd.f32 1.0, %v1834_v32 }
 0x91d   : > { %v1837_v37 = vmul.f32 %v1835_v31, %v1781_v35 }
 0x91e   : > { %v1838_v36 = vmul.f32 %v1836_v34, %v1782_v33 }
 0x920   : > { %1935 = vmatprep.mubr.f32.mxu0 %v1838_v36 }
 0x921   : > { %1936 = vmatmul.mubr.f32.vlgmr.msra.gmra.mrb[6].mxu0 %v1837_v37 }
 0x9f4   : > { %v2364_v38 = vpop.f32.mrb[6].mxu0 }
 0x9f5   : > { %v2365_v39 = vpop.f32.mrb[7].mxu0 }
 0x9f6   : > { %v2366_v27 = vadd.f32 %v2365_v39, %v2364_v38 }
 0x9f8   : > { %v1941_v42 = vadd.f32 %v2366_v27, %v3111_v49 }
 0x9fa   : > { %v1949_v41 = vadd.f32 %v2244_v40, %v1941_v42 }
 0x9fc   : > { %1950 = vst [vmem:[%s810_s17] sm:$0xff] %v1949_v41 }
 0x9fd PF: > { %s3256_s25 = sld [smem:[#allocation6_spill]]  ;;  %s3257_s18 = sld [smem:[#allocation4_spill]] }
 0x9fe   : > { %s3258_s19 = sld [smem:[#allocation5_spill]]  ;;  %s3259_s20 = sld [smem:[#allocation7_spill]] }
 0x9ff   : > { %s3260_s21 = sld [smem:[#allocation8_spill]] }
 0xa03   : > { %s25_s22 = sadd.s32 1, %s3256_s25  }
 0xa04   : > { %p22_p8 = scmp.ge.s32.totalorder %s25_s22, 6  }
 0xa06   :  { %24 = sbr.rel (!%p22_p8) target bundleno = 3 (0x3), region = 156 }

</bundles_post_ra>
